<compile_context>
chip_gen: v5e
topology: v5e:2x2
jax: 0.10.0
libtpu: 0.0.40
codegen_flags: <defaults>
</compile_context>

<pallas_src>
import functools

import jax
import jax.numpy as jnp
from jax import lax
from jax.experimental import pallas as pl
from jax.experimental.pallas import tpu as pltpu


_VMEM_BUDGET = 28 * 1024 * 1024   # tile-selection budget (double buffers included)
_VMEM_LIMIT = 48 * 1024 * 1024    # scoped VMEM limit: < v7x's 64 MiB physical


# ----------------------------------------------------------------------------
# Tile pickers (respect the (8,128) block constraints, fall back to full dims)
# ----------------------------------------------------------------------------

def _tile_sub(dim, target):
    """Second-to-last (sublane) tile: multiple of 16 (or 8) dividing dim, else full."""
    for mult in (16, 8):
        t = min(target, dim)
        t -= t % mult
        while t >= mult:
            if dim % t == 0:
                return t
            t -= mult
    return dim


def _tile_lane(dim, target):
    """Last (lane) tile: multiple of 128 dividing dim, else full."""
    t = min(target, dim)
    t -= t % 128
    while t >= 128:
        if dim % t == 0:
            return t
        t -= 128
    return dim


def _gemm_vmem_cost(tm, tk, tn, in_bytes, out_bytes, res_cols=0):
    return (2 * tm * tk * in_bytes            # x tile (double-buffered)
            + 2 * tk * tn * in_bytes          # w tile (double-buffered)
            + tm * tn * 4                     # f32 accumulator scratch
            + 2 * tm * tn * out_bytes         # output tile (double-buffered)
            + 2 * tm * res_cols * in_bytes    # residual tile (LN variant)
            + 8 * tn * 4)                     # bias / gamma / beta blocks


def _pick_gemm_tiles(M, K, N, in_bytes, out_bytes, budget=_VMEM_BUDGET):
    """Prefer a resident weight (tk=K, tn=N) so it is DMA'd once per call."""
    for tk_t, tn_t in ((K, N), (K, 1024), (1024, 1024), (1024, 512),
                       (512, 512), (512, 256), (256, 256), (128, 128)):
        tk = _tile_lane(K, tk_t)
        tn = _tile_lane(N, tn_t)
        for tm_t in (512, 256, 128, 64, 32, 16, 8):
            tm = _tile_sub(M, tm_t)
            if _gemm_vmem_cost(tm, tk, tn, in_bytes, out_bytes) <= budget:
                return tm, tk, tn
    return _tile_sub(M, 8), _tile_lane(K, 128), _tile_lane(N, 128)


def _pick_ln_gemm_tiles(M, K, D, in_bytes, out_bytes, budget=_VMEM_BUDGET):
    """Same, but the output width is pinned to D (LayerNorm row must be local)."""
    for tk_t in (K, 1024, 512, 256, 128):
        tk = _tile_lane(K, tk_t)
        for tm_t in (512, 256, 128, 64, 32, 16, 8):
            tm = _tile_sub(M, tm_t)
            if _gemm_vmem_cost(tm, tk, D, in_bytes, out_bytes, res_cols=D) <= budget:
                return tm, tk
    return _tile_sub(M, 8), _tile_lane(K, 128)


def _pick_attn_tiles(S, D, itemsize, split, budget=_VMEM_BUDGET):
    width = D if split else 3 * D
    for tq_t, tkv_t in ((256, 512), (256, 256), (128, 256), (128, 128),
                        (64, 128), (64, 64), (32, 32), (16, 16), (8, 8)):
        tq = _tile_sub(S, tq_t)
        tkv = _tile_sub(S, tkv_t)
        cost = (2 * tq * width * itemsize          # q block
                + 4 * tkv * width * itemsize       # k + v blocks
                + 2 * tq * D * itemsize            # residual block
                + 2 * D * D * itemsize             # wo (resident)
                + 2 * tq * D * itemsize            # output block
                + tq * D * 4                       # f32 acc scratch
                + 2 * tq * tkv * 4)                # live score tile
        if cost <= budget:
            return tq, tkv
    return _tile_sub(S, 8), _tile_sub(S, 8)


# ----------------------------------------------------------------------------
# Kernel 1: tiled matmul + bias (+ optional ReLU)
# ----------------------------------------------------------------------------

def _matmul_bias_kernel(x_ref, w_ref, b_ref, o_ref, acc_ref, *, relu):
    k = pl.program_id(2)

    @pl.when(k == 0)
    def _():
        acc_ref[...] = jnp.zeros_like(acc_ref)

    acc_ref[...] += jnp.dot(x_ref[...], w_ref[...],
                            preferred_element_type=jnp.float32)

    @pl.when(k == pl.num_programs(2) - 1)
    def _():
        y = acc_ref[...] + b_ref[...].astype(jnp.float32)
        if relu:
            y = jnp.maximum(y, 0.0)
        o_ref[...] = y.astype(o_ref.dtype)


def matmul_bias(x, w, b, *, relu=False, out_dtype=None):
    """y = x @ w + b (optionally ReLU). Tiled, f32 accumulation."""
    M, K = x.shape
    K2, N = w.shape
    assert K == K2
    out_dtype = out_dtype or x.dtype
    in_bytes = jnp.dtype(x.dtype).itemsize
    out_bytes = jnp.dtype(out_dtype).itemsize
    tm, tk, tn = _pick_gemm_tiles(M, K, N, in_bytes, out_bytes)
    grid = (M // tm, N // tn, K // tk)
    return pl.pallas_call(
        functools.partial(_matmul_bias_kernel, relu=relu),
        out_shape=jax.ShapeDtypeStruct((M, N), out_dtype),
        grid=grid,
        in_specs=[
            pl.BlockSpec((tm, tk), lambda i, j, k: (i, k)),
            pl.BlockSpec((tk, tn), lambda i, j, k: (k, j)),
            pl.BlockSpec((1, tn), lambda i, j, k: (0, j)),
        ],
        out_specs=pl.BlockSpec((tm, tn), lambda i, j, k: (i, j)),
        scratch_shapes=[pltpu.VMEM((tm, tn), jnp.float32)],
        compiler_params=pltpu.CompilerParams(
            dimension_semantics=("parallel", "parallel", "arbitrary"),
            vmem_limit_bytes=_VMEM_LIMIT),
    )(x, w, b.reshape(1, N))


# ----------------------------------------------------------------------------
# Kernel 2: tiled matmul + bias + residual add + LayerNorm (fused epilogue)
# ----------------------------------------------------------------------------

def _matmul_add_ln_kernel(x_ref, w_ref, b_ref, res_ref, g_ref, bt_ref,
                          o_ref, acc_ref, *, eps):
    k = pl.program_id(1)

    @pl.when(k == 0)
    def _():
        acc_ref[...] = jnp.zeros_like(acc_ref)

    acc_ref[...] += jnp.dot(x_ref[...], w_ref[...],
                            preferred_element_type=jnp.float32)

    @pl.when(k == pl.num_programs(1) - 1)
    def _():
        y = (acc_ref[...] + b_ref[...].astype(jnp.float32)
             + res_ref[...].astype(jnp.float32))
        mean = jnp.mean(y, axis=-1, keepdims=True)
        var = jnp.mean((y - mean) ** 2, axis=-1, keepdims=True)  # biased (torch LN)
        yhat = (y - mean) * lax.rsqrt(var + eps)
        o_ref[...] = (yhat * g_ref[...].astype(jnp.float32)
                      + bt_ref[...].astype(jnp.float32)).astype(o_ref.dtype)


def matmul_add_layernorm(x, w, b, res, gamma, beta, *, eps, out_dtype=None):
    """out = LayerNorm((x @ w + b) + res), fused in one kernel."""
    M, K = x.shape
    K2, D = w.shape
    assert K == K2
    out_dtype = out_dtype or res.dtype
    in_bytes = jnp.dtype(x.dtype).itemsize
    out_bytes = jnp.dtype(out_dtype).itemsize
    tm, tk = _pick_ln_gemm_tiles(M, K, D, in_bytes, out_bytes)
    grid = (M // tm, K // tk)
    return pl.pallas_call(
        functools.partial(_matmul_add_ln_kernel, eps=eps),
        out_shape=jax.ShapeDtypeStruct((M, D), out_dtype),
        grid=grid,
        in_specs=[
            pl.BlockSpec((tm, tk), lambda i, k: (i, k)),
            pl.BlockSpec((tk, D), lambda i, k: (k, 0)),
            pl.BlockSpec((1, D), lambda i, k: (0, 0)),
            pl.BlockSpec((tm, D), lambda i, k: (i, 0)),
            pl.BlockSpec((1, D), lambda i, k: (0, 0)),
            pl.BlockSpec((1, D), lambda i, k: (0, 0)),
        ],
        out_specs=pl.BlockSpec((tm, D), lambda i, k: (i, 0)),
        scratch_shapes=[pltpu.VMEM((tm, D), jnp.float32)],
        compiler_params=pltpu.CompilerParams(
            dimension_semantics=("parallel", "arbitrary"),
            vmem_limit_bytes=_VMEM_LIMIT),
    )(x, w, b.reshape(1, D), res, gamma.reshape(1, D), beta.reshape(1, D))


# ----------------------------------------------------------------------------
# Kernel 3: flash-style multi-head self-attention, fused with
#           o-projection + bias + residual + LayerNorm epilogue.
#   grid = (B, S/tq, S/tkv); KV axis is the ("arbitrary") online-softmax axis.
# ----------------------------------------------------------------------------

def _flash_attn_oproj_ln_kernel(q_ref, k_ref, v_ref, res_ref, wo_ref, bo_ref,
                                g_ref, bt_ref, o_ref, m_sc, l_sc, acc_sc, *,
                                num_heads, scale, d_model, split, eps, exact):
    ki = pl.program_id(2)

    @pl.when(ki == 0)
    def _():
        m_sc[...] = jnp.full_like(m_sc, -jnp.inf)
        l_sc[...] = jnp.zeros_like(l_sc)
        acc_sc[...] = jnp.zeros_like(acc_sc)

    D = d_model
    dk = D // num_heads
    if split:
        q = q_ref[0]                      # (tq, D)  lane-block view (free)
        k = k_ref[0]                      # (tkv, D)
        v = v_ref[0]                      # (tkv, D)
    else:
        qkv_q = q_ref[0]                  # (tq, 3D) — toy dims only
        qkv_kv = k_ref[0]                 # (tkv, 3D)
        qkv_v = v_ref[0]
        q = qkv_q[:, 0:D]
        k = qkv_kv[:, D:2 * D]
        v = qkv_v[:, 2 * D:3 * D]

    # Static head loop; per-head results retire straight into lane slices of
    # the f32 accumulator (no concatenate, nothing kept live across heads).
    for h in range(num_heads):
        qh = q[:, h * dk:(h + 1) * dk]
        kh = k[:, h * dk:(h + 1) * dk]
        vh = v[:, h * dk:(h + 1) * dk]
        # Contract last dims directly: no explicit (S, dk) transpose.
        s = lax.dot_general(qh, kh, (((1,), (1,)), ((), ())),
                            preferred_element_type=jnp.float32) * scale
        m_prev = m_sc[h]                                        # (tq, 1)
        m_new = jnp.maximum(m_prev, jnp.max(s, axis=-1, keepdims=True))
        alpha = jnp.exp(m_prev - m_new)
        p = jnp.exp(s - m_new)
        l_sc[h] = alpha * l_sc[h] + jnp.sum(p, axis=-1, keepdims=True)
        pv = jnp.dot(p.astype(vh.dtype), vh, preferred_element_type=jnp.float32)
        acc_sc[:, h * dk:(h + 1) * dk] = (
            alpha * acc_sc[:, h * dk:(h + 1) * dk] + pv)
        m_sc[h] = m_new

    @pl.when(ki == pl.num_programs(2) - 1)
    def _():
        # Normalize each head in place, then fused o-proj + residual + LN.
        for h in range(num_heads):
            l_h = l_sc[h]
            inv = (1.0 / l_h) if exact else pl.reciprocal(l_h, approx=True)
            acc_sc[:, h * dk:(h + 1) * dk] = acc_sc[:, h * dk:(h + 1) * dk] * inv
        attn = acc_sc[...].astype(wo_ref.dtype)                 # (tq, D)
        proj = jnp.dot(attn, wo_ref[...], preferred_element_type=jnp.float32)
        y = (proj + bo_ref[...].astype(jnp.float32)
             + res_ref[0].astype(jnp.float32))
        mean = jnp.mean(y, axis=-1, keepdims=True)
        var = jnp.mean((y - mean) ** 2, axis=-1, keepdims=True)
        yhat = (y - mean) * lax.rsqrt(var + eps)
        o_ref[0] = (yhat * g_ref[...].astype(jnp.float32)
                    + bt_ref[...].astype(jnp.float32)).astype(o_ref.dtype)


def flash_mha_oproj_layernorm(qkv3, res3, wo, bo, gamma, beta, *, num_heads,
                              eps, exact, out_dtype=None):
    """(B,S,3D) fused qkv -> LayerNorm(attn @ wo + bo + residual), (B,S,D)."""
    B, S, D3 = qkv3.shape
    D = D3 // 3
    assert 3 * D == D3 and D % num_heads == 0
    dk = D // num_heads
    scale = 1.0 / (dk ** 0.5)
    out_dtype = out_dtype or res3.dtype
    split = (D % 128 == 0)                     # lane-block q/k/v views when aligned
    itemsize = jnp.dtype(qkv3.dtype).itemsize
    tq, tkv = _pick_attn_tiles(S, D, itemsize, split)
    grid = (B, S // tq, S // tkv)

    if split:
        q_spec = pl.BlockSpec((1, tq, D), lambda b, qi, ki: (b, qi, 0))
        k_spec = pl.BlockSpec((1, tkv, D), lambda b, qi, ki: (b, ki, 1))
        v_spec = pl.BlockSpec((1, tkv, D), lambda b, qi, ki: (b, ki, 2))
    else:
        q_spec = pl.BlockSpec((1, tq, D3), lambda b, qi, ki: (b, qi, 0))
        k_spec = pl.BlockSpec((1, tkv, D3), lambda b, qi, ki: (b, ki, 0))
        v_spec = pl.BlockSpec((1, tkv, D3), lambda b, qi, ki: (b, ki, 0))

    return pl.pallas_call(
        functools.partial(_flash_attn_oproj_ln_kernel, num_heads=num_heads,
                          scale=scale, d_model=D, split=split, eps=eps,
                          exact=exact),
        out_shape=jax.ShapeDtypeStruct((B, S, D), out_dtype),
        grid=grid,
        in_specs=[
            q_spec, k_spec, v_spec,
            pl.BlockSpec((1, tq, D), lambda b, qi, ki: (b, qi, 0)),   # residual
            pl.BlockSpec((D, D), lambda b, qi, ki: (0, 0)),           # wo (resident)
            pl.BlockSpec((1, D), lambda b, qi, ki: (0, 0)),           # bo
            pl.BlockSpec((1, D), lambda b, qi, ki: (0, 0)),           # gamma
            pl.BlockSpec((1, D), lambda b, qi, ki: (0, 0)),           # beta
        ],
        out_specs=pl.BlockSpec((1, tq, D), lambda b, qi, ki: (b, qi, 0)),
        scratch_shapes=[
            pltpu.VMEM((num_heads, tq, 1), jnp.float32),   # running max
            pltpu.VMEM((num_heads, tq, 1), jnp.float32),   # running sum
            pltpu.VMEM((tq, D), jnp.float32),              # output accumulator
        ],
        compiler_params=pltpu.CompilerParams(
            dimension_semantics=("parallel", "parallel", "arbitrary"),
            vmem_limit_bytes=_VMEM_LIMIT),
    )(qkv3, qkv3, qkv3, res3, wo, bo.reshape(1, D),
      gamma.reshape(1, D), beta.reshape(1, D))


# ----------------------------------------------------------------------------
# Encoder layer / Encoder stack (glue in plain JAX, all compute in kernels)
# ----------------------------------------------------------------------------

def init_layer_params(key, d_model, hidden_units):
    ks = jax.random.split(key, 6)
    s = 0.02
    wq = jax.random.normal(ks[0], (d_model, d_model), jnp.float32) * s
    wk = jax.random.normal(ks[1], (d_model, d_model), jnp.float32) * s
    wv = jax.random.normal(ks[2], (d_model, d_model), jnp.float32) * s
    return dict(
        w_qkv=jnp.concatenate([wq, wk, wv], axis=1),          # (D, 3D) fused
        b_qkv=jnp.zeros((3 * d_model,), jnp.float32),
        wo=jax.random.normal(ks[3], (d_model, d_model), jnp.float32) * s,
        bo=jnp.zeros((d_model,), jnp.float32),
        w1=jax.random.normal(ks[4], (d_model, hidden_units), jnp.float32) * s,
        b1=jnp.zeros((hidden_units,), jnp.float32),
        w2=jax.random.normal(ks[5], (hidden_units, d_model), jnp.float32) * s,
        b2=jnp.zeros((d_model,), jnp.float32),
        ln1_g=jnp.ones((d_model,), jnp.float32),
        ln1_b=jnp.zeros((d_model,), jnp.float32),
        ln2_g=jnp.ones((d_model,), jnp.float32),
        ln2_b=jnp.zeros((d_model,), jnp.float32),
    )


def prepare_params(layer_params, compute_dtype):
    """Cast MXU weight operands to the compute dtype ONCE (not per forward)."""
    prepped = []
    for p in layer_params:
        q = dict(p)
        for name in ("w_qkv", "wo", "w1", "w2"):
            q[name] = p[name].astype(compute_dtype)
        prepped.append(q)
    return prepped


def encoder_layer(x2d, B, S, p, num_heads, eps, compute_dtype, exact):
    D = x2d.shape[-1]

    # ---- fused Q|K|V projection (one weight-resident matmul) ----
    qkv = matmul_bias(x2d, p["w_qkv"], p["b_qkv"], out_dtype=compute_dtype)
    qkv3 = qkv.reshape(B, S, 3 * D)                            # free reshape
    x3 = x2d.reshape(B, S, D)                                  # residual, free

    # ---- flash attention + o-proj + residual + LayerNorm (one kernel) ----
    y3 = flash_mha_oproj_layernorm(qkv3, x3, p["wo"], p["bo"],
                                   p["ln1_g"], p["ln1_b"], num_heads=num_heads,
                                   eps=eps, exact=exact, out_dtype=compute_dtype)
    y2d = y3.reshape(B * S, D)

    # ---- position-wise FFN: (matmul+bias+ReLU), then (matmul+add+LN) fused ----
    h = matmul_bias(y2d, p["w1"], p["b1"], relu=True, out_dtype=compute_dtype)
    out2d = matmul_add_layernorm(h, p["w2"], p["b2"], y2d,
                                 p["ln2_g"], p["ln2_b"], eps=eps,
                                 out_dtype=compute_dtype)
    return out2d


def encoder(x, layer_params, num_heads, eps, compute_dtype=jnp.bfloat16):
    # NOTE: the residual stream is carried in compute_dtype between layers;
    # with bf16 the error vs an f32 reference grows slowly with depth.
    B, S, D = x.shape
    exact = jnp.dtype(compute_dtype) == jnp.dtype(jnp.float32)
    out2d = x.reshape(B * S, D).astype(compute_dtype)
    for p in layer_params:
        out2d = encoder_layer(out2d, B, S, p, num_heads, eps, compute_dtype, exact)
    return out2d.reshape(B, S, D).astype(x.dtype)


# ----------------------------------------------------------------------------
# Pure-JAX reference (for correctness sanity check)
# ----------------------------------------------------------------------------

def encoder_ref(x, layer_params, num_heads, eps):
    def ln(y, g, b):
        m = jnp.mean(y, -1, keepdims=True)
        v = jnp.mean((y - m) ** 2, -1, keepdims=True)
        return (y - m) / jnp.sqrt(v + eps) * g + b

    for p in layer_params:
        B, S, D = x.shape
        dk = D // num_heads
        qkv = x @ p["w_qkv"] + p["b_qkv"]
        q, k, v = qkv[..., :D], qkv[..., D:2 * D], qkv[..., 2 * D:]
        q = q.reshape(B, S, num_heads, dk).transpose(0, 2, 1, 3)
        k = k.reshape(B, S, num_heads, dk).transpose(0, 2, 1, 3)
        v = v.reshape(B, S, num_heads, dk).transpose(0, 2, 1, 3)
        s = jnp.einsum("bhqd,bhkd->bhqk", q, k) / (dk ** 0.5)
        a = jax.nn.softmax(s, axis=-1)
        o = jnp.einsum("bhqk,bhkd->bhqd", a, v).transpose(0, 2, 1, 3).reshape(B, S, D)
        o = o @ p["wo"] + p["bo"]
        y = ln(o + x, p["ln1_g"], p["ln1_b"])
        h = jnp.maximum(y @ p["w1"] + p["b1"], 0.0)
        ff = h @ p["w2"] + p["b2"]
        x = ln(ff + y, p["ln2_g"], p["ln2_b"])
    return x


# ----------------------------------------------------------------------------
# Main
# ----------------------------------------------------------------------------

if __name__ == "__main__":
    # Small, shape-consistent config:
    batch, seq, d_model = 2, 8, 32
    hidden_units = 64
    attention_heads = 4
    num_layers = 2
    eps = 1e-5

    key = jax.random.PRNGKey(0)
    kx, *kl = jax.random.split(key, 1 + num_layers)
    x = jax.random.normal(kx, (batch, seq, d_model), jnp.float32)
    layer_params = [init_layer_params(k, d_model, hidden_units) for k in kl]

    ref = encoder_ref(x, layer_params, attention_heads, eps)

    # Correctness path: f32 MXU operands, exact softmax normalization.
    params_f32 = prepare_params(layer_params, jnp.float32)
    run_f32 = jax.jit(functools.partial(
        encoder, num_heads=attention_heads, eps=eps, compute_dtype=jnp.float32))
    out_f32 = jax.block_until_ready(run_f32(x, params_f32))
    assert out_f32.shape == (batch, seq, d_model)
    assert jnp.allclose(out_f32, ref, atol=1e-2, rtol=1e-2), \
        "f32-path mismatch vs JAX reference"

    # Fast path: bf16 MXU operands, f32 accumulation / softmax / LayerNorm,
    # approximate (EUP) reciprocal for the softmax denominator.
    params_bf16 = prepare_params(layer_params, jnp.bfloat16)
    run_bf16 = jax.jit(functools.partial(
        encoder, num_heads=attention_heads, eps=eps, compute_dtype=jnp.bfloat16))
    out_bf16 = jax.block_until_ready(run_bf16(x, params_bf16))
    assert out_bf16.shape == (batch, seq, d_model)
    assert jnp.allclose(out_bf16, ref, atol=7e-2, rtol=7e-2), \
        "bf16-path mismatch vs JAX reference"

    print("KERNEL_OK")
</pallas_src>

<mosaic_0001>
module attributes {stable_mosaic.version = 11 : i64} {
  func.func @_matmul_bias_kernel(%arg0: i32, %arg1: i32, %arg2: i32, %arg3: memref<16x32xf32, #tpu.memory_space<vmem>>, %arg4: memref<32x96xf32, #tpu.memory_space<vmem>>, %arg5: memref<1x96xf32, #tpu.memory_space<vmem>>, %arg6: memref<16x96xf32, #tpu.memory_space<vmem>>, %arg7: memref<16x96xf32, #tpu.memory_space<vmem>>) attributes {dimension_semantics = [#tpu.dimension_semantics<parallel>, #tpu.dimension_semantics<parallel>, #tpu.dimension_semantics<arbitrary>], iteration_bounds = array<i64: 1, 1, 1>, scalar_prefetch = 0 : i64, scratch_operands = 1 : i64, tpu.core_type = #tpu.core_type<tc>, window_params = [{transform_indices = @transform_0, window_bounds = array<i64: 16, 32>}, {transform_indices = @transform_1, window_bounds = array<i64: 32, 96>}, {transform_indices = @transform_2, window_bounds = array<i64: 1, 96>}, {transform_indices = @transform_3, window_bounds = array<i64: 16, 96>}]} {
    %c0_i32 = arith.constant 0 : i32
    %0 = arith.cmpi eq, %arg2, %c0_i32 : i32
    %1 = arith.extui %0 : i1 to i32
    %c0_i32_0 = arith.constant 0 : i32
    %2 = arith.cmpi ne, %1, %c0_i32_0 : i32
    scf.if %2 {
      %cst_10 = arith.constant 0.000000e+00 : f32
      %12 = vector.broadcast %cst_10 : f32 to vector<16x96xf32>
      %c0_11 = arith.constant 0 : index
      %c0_12 = arith.constant 0 : index
      %13 = vector.load %arg7[%c0_11, %c0_12] : memref<16x96xf32, #tpu.memory_space<vmem>>, vector<16x96xf32>
      tpu.vector_store %arg7[%c0_11, %c0_12], %12 {strides = array<i32>} : memref<16x96xf32, #tpu.memory_space<vmem>>, vector<16x96xf32>,
    } else {
    }
    %c0 = arith.constant 0 : index
    %c0_1 = arith.constant 0 : index
    %3 = vector.load %arg7[%c0, %c0_1] : memref<16x96xf32, #tpu.memory_space<vmem>>, vector<16x96xf32>
    %c0_2 = arith.constant 0 : index
    %c0_3 = arith.constant 0 : index
    %4 = vector.load %arg3[%c0_2, %c0_3] : memref<16x32xf32, #tpu.memory_space<vmem>>, vector<16x32xf32>
    %c0_4 = arith.constant 0 : index
    %c0_5 = arith.constant 0 : index
    %5 = vector.load %arg4[%c0_4, %c0_5] : memref<32x96xf32, #tpu.memory_space<vmem>>, vector<32x96xf32>
    %cst = arith.constant dense<0.000000e+00> : vector<16x96xf32>
    %6 = tpu.matmul %4, %5, %cst {dimension_numbers = #tpu.dot_dimension_numbers<[1], [0], [0], [1], [0, 0, 1, 1], [], []>} : vector<16x32xf32>, vector<32x96xf32>, vector<16x96xf32> -> vector<16x96xf32>
    %7 = arith.addf %3, %6 : vector<16x96xf32>
    %c0_6 = arith.constant 0 : index
    %c0_7 = arith.constant 0 : index
    %8 = vector.load %arg7[%c0_6, %c0_7] : memref<16x96xf32, #tpu.memory_space<vmem>>, vector<16x96xf32>
    tpu.vector_store %arg7[%c0_6, %c0_7], %7 {strides = array<i32>} : memref<16x96xf32, #tpu.memory_space<vmem>>, vector<16x96xf32>,
    %c0_i32_8 = arith.constant 0 : i32
    %9 = arith.cmpi eq, %arg2, %c0_i32_8 : i32
    %10 = arith.extui %9 : i1 to i32
    %c0_i32_9 = arith.constant 0 : i32
    %11 = arith.cmpi ne, %10, %c0_i32_9 : i32
    scf.if %11 {
      %c0_10 = arith.constant 0 : index
      %c0_11 = arith.constant 0 : index
      %12 = vector.load %arg7[%c0_10, %c0_11] : memref<16x96xf32, #tpu.memory_space<vmem>>, vector<16x96xf32>
      %c0_12 = arith.constant 0 : index
      %c0_13 = arith.constant 0 : index
      %13 = vector.load %arg5[%c0_12, %c0_13] : memref<1x96xf32, #tpu.memory_space<vmem>>, vector<1x96xf32>
      %14 = vector.broadcast %13 : vector<1x96xf32> to vector<16x96xf32>
      %15 = arith.addf %12, %14 : vector<16x96xf32>
      %c0_14 = arith.constant 0 : index
      %c0_15 = arith.constant 0 : index
      %16 = vector.load %arg6[%c0_14, %c0_15] : memref<16x96xf32, #tpu.memory_space<vmem>>, vector<16x96xf32>
      tpu.vector_store %arg6[%c0_14, %c0_15], %15 {strides = array<i32>} : memref<16x96xf32, #tpu.memory_space<vmem>>, vector<16x96xf32>,
    } else {
    }
    return
  }
  func.func @transform_0(%arg0: i32, %arg1: i32, %arg2: i32) -> (i32, i32) {
    %c0_i32 = arith.constant 0 : i32
    return %arg0, %arg2 : i32, i32
  }
  func.func @transform_1(%arg0: i32, %arg1: i32, %arg2: i32) -> (i32, i32) {
    %c0_i32 = arith.constant 0 : i32
    return %arg2, %arg1 : i32, i32
  }
  func.func @transform_2(%arg0: i32, %arg1: i32, %arg2: i32) -> (i32, i32) {
    %c0_i32 = arith.constant 0 : i32
    %c0_i32_0 = arith.constant 0 : i32
    return %c0_i32, %arg1 : i32, i32
  }
  func.func @transform_3(%arg0: i32, %arg1: i32, %arg2: i32) -> (i32, i32) {
    %c0_i32 = arith.constant 0 : i32
    return %arg0, %arg1 : i32, i32
  }
}

module attributes {stable_mosaic.version = 11 : i64} {
  func.func @_matmul_bias_kernel(%arg0: i32, %arg1: i32, %arg2: i32, %arg3: memref<16x32xf32, #tpu.memory_space<vmem>>, %arg4: memref<32x64xf32, #tpu.memory_space<vmem>>, %arg5: memref<1x64xf32, #tpu.memory_space<vmem>>, %arg6: memref<16x64xf32, #tpu.memory_space<vmem>>, %arg7: memref<16x64xf32, #tpu.memory_space<vmem>>) attributes {dimension_semantics = [#tpu.dimension_semantics<parallel>, #tpu.dimension_semantics<parallel>, #tpu.dimension_semantics<arbitrary>], iteration_bounds = array<i64: 1, 1, 1>, scalar_prefetch = 0 : i64, scratch_operands = 1 : i64, tpu.core_type = #tpu.core_type<tc>, window_params = [{transform_indices = @transform_0, window_bounds = array<i64: 16, 32>}, {transform_indices = @transform_1, window_bounds = array<i64: 32, 64>}, {transform_indices = @transform_2, window_bounds = array<i64: 1, 64>}, {transform_indices = @transform_3, window_bounds = array<i64: 16, 64>}]} {
    %c0_i32 = arith.constant 0 : i32
    %0 = arith.cmpi eq, %arg2, %c0_i32 : i32
    %1 = arith.extui %0 : i1 to i32
    %c0_i32_0 = arith.constant 0 : i32
    %2 = arith.cmpi ne, %1, %c0_i32_0 : i32
    scf.if %2 {
      %cst_10 = arith.constant 0.000000e+00 : f32
      %12 = vector.broadcast %cst_10 : f32 to vector<16x64xf32>
      %c0_11 = arith.constant 0 : index
      %c0_12 = arith.constant 0 : index
      %13 = vector.load %arg7[%c0_11, %c0_12] : memref<16x64xf32, #tpu.memory_space<vmem>>, vector<16x64xf32>
      tpu.vector_store %arg7[%c0_11, %c0_12], %12 {strides = array<i32>} : memref<16x64xf32, #tpu.memory_space<vmem>>, vector<16x64xf32>,
    } else {
    }
    %c0 = arith.constant 0 : index
    %c0_1 = arith.constant 0 : index
    %3 = vector.load %arg7[%c0, %c0_1] : memref<16x64xf32, #tpu.memory_space<vmem>>, vector<16x64xf32>
    %c0_2 = arith.constant 0 : index
    %c0_3 = arith.constant 0 : index
    %4 = vector.load %arg3[%c0_2, %c0_3] : memref<16x32xf32, #tpu.memory_space<vmem>>, vector<16x32xf32>
    %c0_4 = arith.constant 0 : index
    %c0_5 = arith.constant 0 : index
    %5 = vector.load %arg4[%c0_4, %c0_5] : memref<32x64xf32, #tpu.memory_space<vmem>>, vector<32x64xf32>
    %cst = arith.constant dense<0.000000e+00> : vector<16x64xf32>
    %6 = tpu.matmul %4, %5, %cst {dimension_numbers = #tpu.dot_dimension_numbers<[1], [0], [0], [1], [0, 0, 1, 1], [], []>} : vector<16x32xf32>, vector<32x64xf32>, vector<16x64xf32> -> vector<16x64xf32>
    %7 = arith.addf %3, %6 : vector<16x64xf32>
    %c0_6 = arith.constant 0 : index
    %c0_7 = arith.constant 0 : index
    %8 = vector.load %arg7[%c0_6, %c0_7] : memref<16x64xf32, #tpu.memory_space<vmem>>, vector<16x64xf32>
    tpu.vector_store %arg7[%c0_6, %c0_7], %7 {strides = array<i32>} : memref<16x64xf32, #tpu.memory_space<vmem>>, vector<16x64xf32>,
    %c0_i32_8 = arith.constant 0 : i32
    %9 = arith.cmpi eq, %arg2, %c0_i32_8 : i32
    %10 = arith.extui %9 : i1 to i32
    %c0_i32_9 = arith.constant 0 : i32
    %11 = arith.cmpi ne, %10, %c0_i32_9 : i32
    scf.if %11 {
      %c0_10 = arith.constant 0 : index
      %c0_11 = arith.constant 0 : index
      %12 = vector.load %arg7[%c0_10, %c0_11] : memref<16x64xf32, #tpu.memory_space<vmem>>, vector<16x64xf32>
      %c0_12 = arith.constant 0 : index
      %c0_13 = arith.constant 0 : index
      %13 = vector.load %arg5[%c0_12, %c0_13] : memref<1x64xf32, #tpu.memory_space<vmem>>, vector<1x64xf32>
      %14 = vector.broadcast %13 : vector<1x64xf32> to vector<16x64xf32>
      %15 = arith.addf %12, %14 : vector<16x64xf32>
      %cst_14 = arith.constant 0.000000e+00 : f32
      %16 = vector.broadcast %cst_14 : f32 to vector<16x64xf32>
      %17 = arith.maximumf %15, %16 : vector<16x64xf32>
      %c0_15 = arith.constant 0 : index
      %c0_16 = arith.constant 0 : index
      %18 = vector.load %arg6[%c0_15, %c0_16] : memref<16x64xf32, #tpu.memory_space<vmem>>, vector<16x64xf32>
      tpu.vector_store %arg6[%c0_15, %c0_16], %17 {strides = array<i32>} : memref<16x64xf32, #tpu.memory_space<vmem>>, vector<16x64xf32>,
    } else {
    }
    return
  }
  func.func @transform_0(%arg0: i32, %arg1: i32, %arg2: i32) -> (i32, i32) {
    %c0_i32 = arith.constant 0 : i32
    return %arg0, %arg2 : i32, i32
  }
  func.func @transform_1(%arg0: i32, %arg1: i32, %arg2: i32) -> (i32, i32) {
    %c0_i32 = arith.constant 0 : i32
    return %arg2, %arg1 : i32, i32
  }
  func.func @transform_2(%arg0: i32, %arg1: i32, %arg2: i32) -> (i32, i32) {
    %c0_i32 = arith.constant 0 : i32
    %c0_i32_0 = arith.constant 0 : i32
    return %c0_i32, %arg1 : i32, i32
  }
  func.func @transform_3(%arg0: i32, %arg1: i32, %arg2: i32) -> (i32, i32) {
    %c0_i32 = arith.constant 0 : i32
    return %arg0, %arg1 : i32, i32
  }
}

module attributes {stable_mosaic.version = 11 : i64} {
  func.func @_flash_attn_oproj_ln_kernel(%arg0: i32, %arg1: i32, %arg2: i32, %arg3: memref<1x8x96xf32, #tpu.memory_space<vmem>>, %arg4: memref<1x8x96xf32, #tpu.memory_space<vmem>>, %arg5: memref<1x8x96xf32, #tpu.memory_space<vmem>>, %arg6: memref<1x8x32xf32, #tpu.memory_space<vmem>>, %arg7: memref<32x32xf32, #tpu.memory_space<vmem>>, %arg8: memref<1x32xf32, #tpu.memory_space<vmem>>, %arg9: memref<1x32xf32, #tpu.memory_space<vmem>>, %arg10: memref<1x32xf32, #tpu.memory_space<vmem>>, %arg11: memref<1x8x32xf32, #tpu.memory_space<vmem>>, %arg12: memref<4x8x1xf32, #tpu.memory_space<vmem>>, %arg13: memref<4x8x1xf32, #tpu.memory_space<vmem>>, %arg14: memref<8x32xf32, #tpu.memory_space<vmem>>) attributes {dimension_semantics = [#tpu.dimension_semantics<parallel>, #tpu.dimension_semantics<parallel>, #tpu.dimension_semantics<arbitrary>], iteration_bounds = array<i64: 2, 1, 1>, scalar_prefetch = 0 : i64, scratch_operands = 3 : i64, tpu.core_type = #tpu.core_type<tc>, window_params = [{transform_indices = @transform_0, window_bounds = array<i64: 1, 8, 96>}, {transform_indices = @transform_1, window_bounds = array<i64: 1, 8, 96>}, {transform_indices = @transform_2, window_bounds = array<i64: 1, 8, 96>}, {transform_indices = @transform_3, window_bounds = array<i64: 1, 8, 32>}, {pipeline_mode = #tpu.pipeline_mode<synchronous>, transform_indices = @transform_4, window_bounds = array<i64: 32, 32>}, {pipeline_mode = #tpu.pipeline_mode<synchronous>, transform_indices = @transform_5, window_bounds = array<i64: 1, 32>}, {pipeline_mode = #tpu.pipeline_mode<synchronous>, transform_indices = @transform_6, window_bounds = array<i64: 1, 32>}, {pipeline_mode = #tpu.pipeline_mode<synchronous>, transform_indices = @transform_7, window_bounds = array<i64: 1, 32>}, {transform_indices = @transform_8, window_bounds = array<i64: 1, 8, 32>}]} {
    %c0_i32 = arith.constant 0 : i32
    %0 = arith.cmpi eq, %arg2, %c0_i32 : i32
    %1 = arith.extui %0 : i1 to i32
    %c0_i32_0 = arith.constant 0 : i32
    %2 = arith.cmpi ne, %1, %c0_i32_0 : i32
    scf.if %2 {
      %cst_88 = arith.constant 0xFF800000 : f32
      %151 = vector.broadcast %cst_88 : f32 to vector<4x8x1xf32>
      %c0_89 = arith.constant 0 : index
      %c0_90 = arith.constant 0 : index
      %c0_91 = arith.constant 0 : index
      %152 = vector.load %arg12[%c0_89, %c0_90, %c0_91] : memref<4x8x1xf32, #tpu.memory_space<vmem>>, vector<4x8x1xf32>
      tpu.vector_store %arg12[%c0_89, %c0_90, %c0_91], %151 {strides = array<i32>} : memref<4x8x1xf32, #tpu.memory_space<vmem>>, vector<4x8x1xf32>,
      %cst_92 = arith.constant 0.000000e+00 : f32
      %153 = vector.broadcast %cst_92 : f32 to vector<4x8x1xf32>
      %c0_93 = arith.constant 0 : index
      %c0_94 = arith.constant 0 : index
      %c0_95 = arith.constant 0 : index
      %154 = vector.load %arg13[%c0_93, %c0_94, %c0_95] : memref<4x8x1xf32, #tpu.memory_space<vmem>>, vector<4x8x1xf32>
      tpu.vector_store %arg13[%c0_93, %c0_94, %c0_95], %153 {strides = array<i32>} : memref<4x8x1xf32, #tpu.memory_space<vmem>>, vector<4x8x1xf32>,
      %cst_96 = arith.constant 0.000000e+00 : f32
      %155 = vector.broadcast %cst_96 : f32 to vector<8x32xf32>
      %c0_97 = arith.constant 0 : index
      %c0_98 = arith.constant 0 : index
      %156 = vector.load %arg14[%c0_97, %c0_98] : memref<8x32xf32, #tpu.memory_space<vmem>>, vector<8x32xf32>
      tpu.vector_store %arg14[%c0_97, %c0_98], %155 {strides = array<i32>} : memref<8x32xf32, #tpu.memory_space<vmem>>, vector<8x32xf32>,
    } else {
    }
    %c0 = arith.constant 0 : index
    %c0_1 = arith.constant 0 : index
    %c0_2 = arith.constant 0 : index
    %3 = vector.load %arg3[%c0, %c0_1, %c0_2] : memref<1x8x96xf32, #tpu.memory_space<vmem>>, vector<1x8x96xf32>
    %4 = vector.shape_cast %3 : vector<1x8x96xf32> to vector<8x96xf32>
    %c0_3 = arith.constant 0 : index
    %c0_4 = arith.constant 0 : index
    %c0_5 = arith.constant 0 : index
    %5 = vector.load %arg4[%c0_3, %c0_4, %c0_5] : memref<1x8x96xf32, #tpu.memory_space<vmem>>, vector<1x8x96xf32>
    %6 = vector.shape_cast %5 : vector<1x8x96xf32> to vector<8x96xf32>
    %c0_6 = arith.constant 0 : index
    %c0_7 = arith.constant 0 : index
    %c0_8 = arith.constant 0 : index
    %7 = vector.load %arg5[%c0_6, %c0_7, %c0_8] : memref<1x8x96xf32, #tpu.memory_space<vmem>>, vector<1x8x96xf32>
    %8 = vector.shape_cast %7 : vector<1x8x96xf32> to vector<8x96xf32>
    %9 = vector.extract_strided_slice %4 {offsets = [0, 0], sizes = [8, 32], strides = [1, 1]} : vector<8x96xf32> to vector<8x32xf32>
    %10 = vector.extract_strided_slice %6 {offsets = [0, 32], sizes = [8, 32], strides = [1, 1]} : vector<8x96xf32> to vector<8x32xf32>
    %11 = vector.extract_strided_slice %8 {offsets = [0, 64], sizes = [8, 32], strides = [1, 1]} : vector<8x96xf32> to vector<8x32xf32>
    %12 = vector.extract_strided_slice %9 {offsets = [0, 0], sizes = [8, 8], strides = [1, 1]} : vector<8x32xf32> to vector<8x8xf32>
    %13 = vector.extract_strided_slice %10 {offsets = [0, 0], sizes = [8, 8], strides = [1, 1]} : vector<8x32xf32> to vector<8x8xf32>
    %14 = vector.extract_strided_slice %11 {offsets = [0, 0], sizes = [8, 8], strides = [1, 1]} : vector<8x32xf32> to vector<8x8xf32>
    %cst = arith.constant dense<0.000000e+00> : vector<8x8xf32>
    %15 = tpu.matmul %12, %13, %cst {dimension_numbers = #tpu.dot_dimension_numbers<[1], [1], [0], [0], [0, 0, 1, 0], [], []>} : vector<8x8xf32>, vector<8x8xf32>, vector<8x8xf32> -> vector<8x8xf32>
    %cst_9 = arith.constant 0.353553385 : f32
    %16 = vector.broadcast %cst_9 : f32 to vector<8x8xf32>
    %17 = arith.mulf %15, %16 : vector<8x8xf32>
    %c0_10 = arith.constant 0 : index
    %c0_11 = arith.constant 0 : index
    %c0_12 = arith.constant 0 : index
    %18 = vector.load %arg12[%c0_10, %c0_11, %c0_12] : memref<4x8x1xf32, #tpu.memory_space<vmem>>, vector<1x8x1xf32>
    %19 = vector.shape_cast %18 : vector<1x8x1xf32> to vector<8x1xf32>
    %cst_13 = arith.constant dense<0xFF800000> : vector<8xf32>
    %20 = vector.multi_reduction <maximumf>, %17, %cst_13 [1] : vector<8x8xf32> to vector<8xf32>
    %21 = vector.shape_cast %20 : vector<8xf32> to vector<8x1xf32>
    %22 = arith.maximumf %19, %21 : vector<8x1xf32>
    %23 = arith.subf %19, %22 : vector<8x1xf32>
    %24 = math.exp %23 : vector<8x1xf32>
    %25 = vector.broadcast %22 : vector<8x1xf32> to vector<8x8xf32>
    %26 = arith.subf %17, %25 : vector<8x8xf32>
    %27 = math.exp %26 : vector<8x8xf32>
    %c0_14 = arith.constant 0 : index
    %c0_15 = arith.constant 0 : index
    %c0_16 = arith.constant 0 : index
    %28 = vector.load %arg13[%c0_14, %c0_15, %c0_16] : memref<4x8x1xf32, #tpu.memory_space<vmem>>, vector<1x8x1xf32>
    %29 = vector.shape_cast %28 : vector<1x8x1xf32> to vector<8x1xf32>
    %30 = arith.mulf %24, %29 : vector<8x1xf32>
    %cst_17 = arith.constant dense<0.000000e+00> : vector<8xf32>
    %31 = vector.multi_reduction <add>, %27, %cst_17 [1] : vector<8x8xf32> to vector<8xf32>
    %32 = vector.shape_cast %31 : vector<8xf32> to vector<8x1xf32>
    %33 = arith.addf %30, %32 : vector<8x1xf32>
    %c0_18 = arith.constant 0 : index
    %c0_19 = arith.constant 0 : index
    %c0_20 = arith.constant 0 : index
    %34 = vector.load %arg13[%c0_18, %c0_19, %c0_20] : memref<4x8x1xf32, #tpu.memory_space<vmem>>, vector<1x8x1xf32>
    %35 = vector.shape_cast %34 : vector<1x8x1xf32> to vector<8x1xf32>
    %36 = vector.shape_cast %33 : vector<8x1xf32> to vector<1x8x1xf32>
    tpu.vector_store %arg13[%c0_18, %c0_19, %c0_20], %36 {strides = array<i32>} : memref<4x8x1xf32, #tpu.memory_space<vmem>>, vector<1x8x1xf32>,
    %cst_21 = arith.constant dense<0.000000e+00> : vector<8x8xf32>
    %37 = tpu.matmul %27, %14, %cst_21 {dimension_numbers = #tpu.dot_dimension_numbers<[1], [0], [0], [1], [0, 0, 1, 1], [], []>} : vector<8x8xf32>, vector<8x8xf32>, vector<8x8xf32> -> vector<8x8xf32>
    %c0_22 = arith.constant 0 : index
    %c0_23 = arith.constant 0 : index
    %38 = vector.load %arg14[%c0_22, %c0_23] : memref<8x32xf32, #tpu.memory_space<vmem>>, vector<8x8xf32>
    %39 = vector.broadcast %24 : vector<8x1xf32> to vector<8x8xf32>
    %40 = arith.mulf %39, %38 : vector<8x8xf32>
    %41 = arith.addf %40, %37 : vector<8x8xf32>
    %c0_24 = arith.constant 0 : index
    %c0_25 = arith.constant 0 : index
    %42 = vector.load %arg14[%c0_24, %c0_25] : memref<8x32xf32, #tpu.memory_space<vmem>>, vector<8x8xf32>
    tpu.vector_store %arg14[%c0_24, %c0_25], %41 {strides = array<i32>} : memref<8x32xf32, #tpu.memory_space<vmem>>, vector<8x8xf32>,
    %c0_26 = arith.constant 0 : index
    %c0_27 = arith.constant 0 : index
    %c0_28 = arith.constant 0 : index
    %43 = vector.load %arg12[%c0_26, %c0_27, %c0_28] : memref<4x8x1xf32, #tpu.memory_space<vmem>>, vector<1x8x1xf32>
    %44 = vector.shape_cast %43 : vector<1x8x1xf32> to vector<8x1xf32>
    %45 = vector.shape_cast %22 : vector<8x1xf32> to vector<1x8x1xf32>
    tpu.vector_store %arg12[%c0_26, %c0_27, %c0_28], %45 {strides = array<i32>} : memref<4x8x1xf32, #tpu.memory_space<vmem>>, vector<1x8x1xf32>,
    %46 = vector.extract_strided_slice %9 {offsets = [0, 8], sizes = [8, 8], strides = [1, 1]} : vector<8x32xf32> to vector<8x8xf32>
    %47 = vector.extract_strided_slice %10 {offsets = [0, 8], sizes = [8, 8], strides = [1, 1]} : vector<8x32xf32> to vector<8x8xf32>
    %48 = vector.extract_strided_slice %11 {offsets = [0, 8], sizes = [8, 8], strides = [1, 1]} : vector<8x32xf32> to vector<8x8xf32>
    %cst_29 = arith.constant dense<0.000000e+00> : vector<8x8xf32>
    %49 = tpu.matmul %46, %47, %cst_29 {dimension_numbers = #tpu.dot_dimension_numbers<[1], [1], [0], [0], [0, 0, 1, 0], [], []>} : vector<8x8xf32>, vector<8x8xf32>, vector<8x8xf32> -> vector<8x8xf32>
    %cst_30 = arith.constant 0.353553385 : f32
    %50 = vector.broadcast %cst_30 : f32 to vector<8x8xf32>
    %51 = arith.mulf %49, %50 : vector<8x8xf32>
    %c1 = arith.constant 1 : index
    %c0_31 = arith.constant 0 : index
    %c0_32 = arith.constant 0 : index
    %52 = vector.load %arg12[%c1, %c0_31, %c0_32] : memref<4x8x1xf32, #tpu.memory_space<vmem>>, vector<1x8x1xf32>
    %53 = vector.shape_cast %52 : vector<1x8x1xf32> to vector<8x1xf32>
    %cst_33 = arith.constant dense<0xFF800000> : vector<8xf32>
    %54 = vector.multi_reduction <maximumf>, %51, %cst_33 [1] : vector<8x8xf32> to vector<8xf32>
    %55 = vector.shape_cast %54 : vector<8xf32> to vector<8x1xf32>
    %56 = arith.maximumf %53, %55 : vector<8x1xf32>
    %57 = arith.subf %53, %56 : vector<8x1xf32>
    %58 = math.exp %57 : vector<8x1xf32>
    %59 = vector.broadcast %56 : vector<8x1xf32> to vector<8x8xf32>
    %60 = arith.subf %51, %59 : vector<8x8xf32>
    %61 = math.exp %60 : vector<8x8xf32>
    %c1_34 = arith.constant 1 : index
    %c0_35 = arith.constant 0 : index
    %c0_36 = arith.constant 0 : index
    %62 = vector.load %arg13[%c1_34, %c0_35, %c0_36] : memref<4x8x1xf32, #tpu.memory_space<vmem>>, vector<1x8x1xf32>
    %63 = vector.shape_cast %62 : vector<1x8x1xf32> to vector<8x1xf32>
    %64 = arith.mulf %58, %63 : vector<8x1xf32>
    %cst_37 = arith.constant dense<0.000000e+00> : vector<8xf32>
    %65 = vector.multi_reduction <add>, %61, %cst_37 [1] : vector<8x8xf32> to vector<8xf32>
    %66 = vector.shape_cast %65 : vector<8xf32> to vector<8x1xf32>
    %67 = arith.addf %64, %66 : vector<8x1xf32>
    %c1_38 = arith.constant 1 : index
    %c0_39 = arith.constant 0 : index
    %c0_40 = arith.constant 0 : index
    %68 = vector.load %arg13[%c1_38, %c0_39, %c0_40] : memref<4x8x1xf32, #tpu.memory_space<vmem>>, vector<1x8x1xf32>
    %69 = vector.shape_cast %68 : vector<1x8x1xf32> to vector<8x1xf32>
    %70 = vector.shape_cast %67 : vector<8x1xf32> to vector<1x8x1xf32>
    tpu.vector_store %arg13[%c1_38, %c0_39, %c0_40], %70 {strides = array<i32>} : memref<4x8x1xf32, #tpu.memory_space<vmem>>, vector<1x8x1xf32>,
    %cst_41 = arith.constant dense<0.000000e+00> : vector<8x8xf32>
    %71 = tpu.matmul %61, %48, %cst_41 {dimension_numbers = #tpu.dot_dimension_numbers<[1], [0], [0], [1], [0, 0, 1, 1], [], []>} : vector<8x8xf32>, vector<8x8xf32>, vector<8x8xf32> -> vector<8x8xf32>
    %c0_42 = arith.constant 0 : index
    %c8 = arith.constant 8 : index
    %72 = vector.load %arg14[%c0_42, %c8] : memref<8x32xf32, #tpu.memory_space<vmem>>, vector<8x8xf32>
    %73 = vector.broadcast %58 : vector<8x1xf32> to vector<8x8xf32>
    %74 = arith.mulf %73, %72 : vector<8x8xf32>
    %75 = arith.addf %74, %71 : vector<8x8xf32>
    %c0_43 = arith.constant 0 : index
    %c8_44 = arith.constant 8 : index
    %76 = vector.load %arg14[%c0_43, %c8_44] : memref<8x32xf32, #tpu.memory_space<vmem>>, vector<8x8xf32>
    tpu.vector_store %arg14[%c0_43, %c8_44], %75 {strides = array<i32>} : memref<8x32xf32, #tpu.memory_space<vmem>>, vector<8x8xf32>,
    %c1_45 = arith.constant 1 : index
    %c0_46 = arith.constant 0 : index
    %c0_47 = arith.constant 0 : index
    %77 = vector.load %arg12[%c1_45, %c0_46, %c0_47] : memref<4x8x1xf32, #tpu.memory_space<vmem>>, vector<1x8x1xf32>
    %78 = vector.shape_cast %77 : vector<1x8x1xf32> to vector<8x1xf32>
    %79 = vector.shape_cast %56 : vector<8x1xf32> to vector<1x8x1xf32>
    tpu.vector_store %arg12[%c1_45, %c0_46, %c0_47], %79 {strides = array<i32>} : memref<4x8x1xf32, #tpu.memory_space<vmem>>, vector<1x8x1xf32>,
    %80 = vector.extract_strided_slice %9 {offsets = [0, 16], sizes = [8, 8], strides = [1, 1]} : vector<8x32xf32> to vector<8x8xf32>
    %81 = vector.extract_strided_slice %10 {offsets = [0, 16], sizes = [8, 8], strides = [1, 1]} : vector<8x32xf32> to vector<8x8xf32>
    %82 = vector.extract_strided_slice %11 {offsets = [0, 16], sizes = [8, 8], strides = [1, 1]} : vector<8x32xf32> to vector<8x8xf32>
    %cst_48 = arith.constant dense<0.000000e+00> : vector<8x8xf32>
    %83 = tpu.matmul %80, %81, %cst_48 {dimension_numbers = #tpu.dot_dimension_numbers<[1], [1], [0], [0], [0, 0, 1, 0], [], []>} : vector<8x8xf32>, vector<8x8xf32>, vector<8x8xf32> -> vector<8x8xf32>
    %cst_49 = arith.constant 0.353553385 : f32
    %84 = vector.broadcast %cst_49 : f32 to vector<8x8xf32>
    %85 = arith.mulf %83, %84 : vector<8x8xf32>
    %c2 = arith.constant 2 : index
    %c0_50 = arith.constant 0 : index
    %c0_51 = arith.constant 0 : index
    %86 = vector.load %arg12[%c2, %c0_50, %c0_51] : memref<4x8x1xf32, #tpu.memory_space<vmem>>, vector<1x8x1xf32>
    %87 = vector.shape_cast %86 : vector<1x8x1xf32> to vector<8x1xf32>
    %cst_52 = arith.constant dense<0xFF800000> : vector<8xf32>
    %88 = vector.multi_reduction <maximumf>, %85, %cst_52 [1] : vector<8x8xf32> to vector<8xf32>
    %89 = vector.shape_cast %88 : vector<8xf32> to vector<8x1xf32>
    %90 = arith.maximumf %87, %89 : vector<8x1xf32>
    %91 = arith.subf %87, %90 : vector<8x1xf32>
    %92 = math.exp %91 : vector<8x1xf32>
    %93 = vector.broadcast %90 : vector<8x1xf32> to vector<8x8xf32>
    %94 = arith.subf %85, %93 : vector<8x8xf32>
    %95 = math.exp %94 : vector<8x8xf32>
    %c2_53 = arith.constant 2 : index
    %c0_54 = arith.constant 0 : index
    %c0_55 = arith.constant 0 : index
    %96 = vector.load %arg13[%c2_53, %c0_54, %c0_55] : memref<4x8x1xf32, #tpu.memory_space<vmem>>, vector<1x8x1xf32>
    %97 = vector.shape_cast %96 : vector<1x8x1xf32> to vector<8x1xf32>
    %98 = arith.mulf %92, %97 : vector<8x1xf32>
    %cst_56 = arith.constant dense<0.000000e+00> : vector<8xf32>
    %99 = vector.multi_reduction <add>, %95, %cst_56 [1] : vector<8x8xf32> to vector<8xf32>
    %100 = vector.shape_cast %99 : vector<8xf32> to vector<8x1xf32>
    %101 = arith.addf %98, %100 : vector<8x1xf32>
    %c2_57 = arith.constant 2 : index
    %c0_58 = arith.constant 0 : index
    %c0_59 = arith.constant 0 : index
    %102 = vector.load %arg13[%c2_57, %c0_58, %c0_59] : memref<4x8x1xf32, #tpu.memory_space<vmem>>, vector<1x8x1xf32>
    %103 = vector.shape_cast %102 : vector<1x8x1xf32> to vector<8x1xf32>
    %104 = vector.shape_cast %101 : vector<8x1xf32> to vector<1x8x1xf32>
    tpu.vector_store %arg13[%c2_57, %c0_58, %c0_59], %104 {strides = array<i32>} : memref<4x8x1xf32, #tpu.memory_space<vmem>>, vector<1x8x1xf32>,
    %cst_60 = arith.constant dense<0.000000e+00> : vector<8x8xf32>
    %105 = tpu.matmul %95, %82, %cst_60 {dimension_numbers = #tpu.dot_dimension_numbers<[1], [0], [0], [1], [0, 0, 1, 1], [], []>} : vector<8x8xf32>, vector<8x8xf32>, vector<8x8xf32> -> vector<8x8xf32>
    %c0_61 = arith.constant 0 : index
    %c16 = arith.constant 16 : index
    %106 = vector.load %arg14[%c0_61, %c16] : memref<8x32xf32, #tpu.memory_space<vmem>>, vector<8x8xf32>
    %107 = vector.broadcast %92 : vector<8x1xf32> to vector<8x8xf32>
    %108 = arith.mulf %107, %106 : vector<8x8xf32>
    %109 = arith.addf %108, %105 : vector<8x8xf32>
    %c0_62 = arith.constant 0 : index
    %c16_63 = arith.constant 16 : index
    %110 = vector.load %arg14[%c0_62, %c16_63] : memref<8x32xf32, #tpu.memory_space<vmem>>, vector<8x8xf32>
    tpu.vector_store %arg14[%c0_62, %c16_63], %109 {strides = array<i32>} : memref<8x32xf32, #tpu.memory_space<vmem>>, vector<8x8xf32>,
    %c2_64 = arith.constant 2 : index
    %c0_65 = arith.constant 0 : index
    %c0_66 = arith.constant 0 : index
    %111 = vector.load %arg12[%c2_64, %c0_65, %c0_66] : memref<4x8x1xf32, #tpu.memory_space<vmem>>, vector<1x8x1xf32>
    %112 = vector.shape_cast %111 : vector<1x8x1xf32> to vector<8x1xf32>
    %113 = vector.shape_cast %90 : vector<8x1xf32> to vector<1x8x1xf32>
    tpu.vector_store %arg12[%c2_64, %c0_65, %c0_66], %113 {strides = array<i32>} : memref<4x8x1xf32, #tpu.memory_space<vmem>>, vector<1x8x1xf32>,
    %114 = vector.extract_strided_slice %9 {offsets = [0, 24], sizes = [8, 8], strides = [1, 1]} : vector<8x32xf32> to vector<8x8xf32>
    %115 = vector.extract_strided_slice %10 {offsets = [0, 24], sizes = [8, 8], strides = [1, 1]} : vector<8x32xf32> to vector<8x8xf32>
    %116 = vector.extract_strided_slice %11 {offsets = [0, 24], sizes = [8, 8], strides = [1, 1]} : vector<8x32xf32> to vector<8x8xf32>
    %cst_67 = arith.constant dense<0.000000e+00> : vector<8x8xf32>
    %117 = tpu.matmul %114, %115, %cst_67 {dimension_numbers = #tpu.dot_dimension_numbers<[1], [1], [0], [0], [0, 0, 1, 0], [], []>} : vector<8x8xf32>, vector<8x8xf32>, vector<8x8xf32> -> vector<8x8xf32>
    %cst_68 = arith.constant 0.353553385 : f32
    %118 = vector.broadcast %cst_68 : f32 to vector<8x8xf32>
    %119 = arith.mulf %117, %118 : vector<8x8xf32>
    %c3 = arith.constant 3 : index
    %c0_69 = arith.constant 0 : index
    %c0_70 = arith.constant 0 : index
    %120 = vector.load %arg12[%c3, %c0_69, %c0_70] : memref<4x8x1xf32, #tpu.memory_space<vmem>>, vector<1x8x1xf32>
    %121 = vector.shape_cast %120 : vector<1x8x1xf32> to vector<8x1xf32>
    %cst_71 = arith.constant dense<0xFF800000> : vector<8xf32>
    %122 = vector.multi_reduction <maximumf>, %119, %cst_71 [1] : vector<8x8xf32> to vector<8xf32>
    %123 = vector.shape_cast %122 : vector<8xf32> to vector<8x1xf32>
    %124 = arith.maximumf %121, %123 : vector<8x1xf32>
    %125 = arith.subf %121, %124 : vector<8x1xf32>
    %126 = math.exp %125 : vector<8x1xf32>
    %127 = vector.broadcast %124 : vector<8x1xf32> to vector<8x8xf32>
    %128 = arith.subf %119, %127 : vector<8x8xf32>
    %129 = math.exp %128 : vector<8x8xf32>
    %c3_72 = arith.constant 3 : index
    %c0_73 = arith.constant 0 : index
    %c0_74 = arith.constant 0 : index
    %130 = vector.load %arg13[%c3_72, %c0_73, %c0_74] : memref<4x8x1xf32, #tpu.memory_space<vmem>>, vector<1x8x1xf32>
    %131 = vector.shape_cast %130 : vector<1x8x1xf32> to vector<8x1xf32>
    %132 = arith.mulf %126, %131 : vector<8x1xf32>
    %cst_75 = arith.constant dense<0.000000e+00> : vector<8xf32>
    %133 = vector.multi_reduction <add>, %129, %cst_75 [1] : vector<8x8xf32> to vector<8xf32>
    %134 = vector.shape_cast %133 : vector<8xf32> to vector<8x1xf32>
    %135 = arith.addf %132, %134 : vector<8x1xf32>
    %c3_76 = arith.constant 3 : index
    %c0_77 = arith.constant 0 : index
    %c0_78 = arith.constant 0 : index
    %136 = vector.load %arg13[%c3_76, %c0_77, %c0_78] : memref<4x8x1xf32, #tpu.memory_space<vmem>>, vector<1x8x1xf32>
    %137 = vector.shape_cast %136 : vector<1x8x1xf32> to vector<8x1xf32>
    %138 = vector.shape_cast %135 : vector<8x1xf32> to vector<1x8x1xf32>
    tpu.vector_store %arg13[%c3_76, %c0_77, %c0_78], %138 {strides = array<i32>} : memref<4x8x1xf32, #tpu.memory_space<vmem>>, vector<1x8x1xf32>,
    %cst_79 = arith.constant dense<0.000000e+00> : vector<8x8xf32>
    %139 = tpu.matmul %129, %116, %cst_79 {dimension_numbers = #tpu.dot_dimension_numbers<[1], [0], [0], [1], [0, 0, 1, 1], [], []>} : vector<8x8xf32>, vector<8x8xf32>, vector<8x8xf32> -> vector<8x8xf32>
    %c0_80 = arith.constant 0 : index
    %c24 = arith.constant 24 : index
    %140 = vector.load %arg14[%c0_80, %c24] : memref<8x32xf32, #tpu.memory_space<vmem>>, vector<8x8xf32>
    %141 = vector.broadcast %126 : vector<8x1xf32> to vector<8x8xf32>
    %142 = arith.mulf %141, %140 : vector<8x8xf32>
    %143 = arith.addf %142, %139 : vector<8x8xf32>
    %c0_81 = arith.constant 0 : index
    %c24_82 = arith.constant 24 : index
    %144 = vector.load %arg14[%c0_81, %c24_82] : memref<8x32xf32, #tpu.memory_space<vmem>>, vector<8x8xf32>
    tpu.vector_store %arg14[%c0_81, %c24_82], %143 {strides = array<i32>} : memref<8x32xf32, #tpu.memory_space<vmem>>, vector<8x8xf32>,
    %c3_83 = arith.constant 3 : index
    %c0_84 = arith.constant 0 : index
    %c0_85 = arith.constant 0 : index
    %145 = vector.load %arg12[%c3_83, %c0_84, %c0_85] : memref<4x8x1xf32, #tpu.memory_space<vmem>>, vector<1x8x1xf32>
    %146 = vector.shape_cast %145 : vector<1x8x1xf32> to vector<8x1xf32>
    %147 = vector.shape_cast %124 : vector<8x1xf32> to vector<1x8x1xf32>
    tpu.vector_store %arg12[%c3_83, %c0_84, %c0_85], %147 {strides = array<i32>} : memref<4x8x1xf32, #tpu.memory_space<vmem>>, vector<1x8x1xf32>,
    %c0_i32_86 = arith.constant 0 : i32
    %148 = arith.cmpi eq, %arg2, %c0_i32_86 : i32
    %149 = arith.extui %148 : i1 to i32
    %c0_i32_87 = arith.constant 0 : i32
    %150 = arith.cmpi ne, %149, %c0_i32_87 : i32
    scf.if %150 {
      %c0_88 = arith.constant 0 : index
      %c0_89 = arith.constant 0 : index
      %c0_90 = arith.constant 0 : index
      %151 = vector.load %arg13[%c0_88, %c0_89, %c0_90] : memref<4x8x1xf32, #tpu.memory_space<vmem>>, vector<1x8x1xf32>
      %152 = vector.shape_cast %151 : vector<1x8x1xf32> to vector<8x1xf32>
      %cst_91 = arith.constant 1.000000e+00 : f32
      %153 = vector.broadcast %cst_91 : f32 to vector<8x1xf32>
      %154 = arith.divf %153, %152 : vector<8x1xf32>
      %c0_92 = arith.constant 0 : index
      %c0_93 = arith.constant 0 : index
      %155 = vector.load %arg14[%c0_92, %c0_93] : memref<8x32xf32, #tpu.memory_space<vmem>>, vector<8x8xf32>
      %156 = vector.broadcast %154 : vector<8x1xf32> to vector<8x8xf32>
      %157 = arith.mulf %155, %156 : vector<8x8xf32>
      %c0_94 = arith.constant 0 : index
      %c0_95 = arith.constant 0 : index
      %158 = vector.load %arg14[%c0_94, %c0_95] : memref<8x32xf32, #tpu.memory_space<vmem>>, vector<8x8xf32>
      tpu.vector_store %arg14[%c0_94, %c0_95], %157 {strides = array<i32>} : memref<8x32xf32, #tpu.memory_space<vmem>>, vector<8x8xf32>,
      %c1_96 = arith.constant 1 : index
      %c0_97 = arith.constant 0 : index
      %c0_98 = arith.constant 0 : index
      %159 = vector.load %arg13[%c1_96, %c0_97, %c0_98] : memref<4x8x1xf32, #tpu.memory_space<vmem>>, vector<1x8x1xf32>
      %160 = vector.shape_cast %159 : vector<1x8x1xf32> to vector<8x1xf32>
      %cst_99 = arith.constant 1.000000e+00 : f32
      %161 = vector.broadcast %cst_99 : f32 to vector<8x1xf32>
      %162 = arith.divf %161, %160 : vector<8x1xf32>
      %c0_100 = arith.constant 0 : index
      %c8_101 = arith.constant 8 : index
      %163 = vector.load %arg14[%c0_100, %c8_101] : memref<8x32xf32, #tpu.memory_space<vmem>>, vector<8x8xf32>
      %164 = vector.broadcast %162 : vector<8x1xf32> to vector<8x8xf32>
      %165 = arith.mulf %163, %164 : vector<8x8xf32>
      %c0_102 = arith.constant 0 : index
      %c8_103 = arith.constant 8 : index
      %166 = vector.load %arg14[%c0_102, %c8_103] : memref<8x32xf32, #tpu.memory_space<vmem>>, vector<8x8xf32>
      tpu.vector_store %arg14[%c0_102, %c8_103], %165 {strides = array<i32>} : memref<8x32xf32, #tpu.memory_space<vmem>>, vector<8x8xf32>,
      %c2_104 = arith.constant 2 : index
      %c0_105 = arith.constant 0 : index
      %c0_106 = arith.constant 0 : index
      %167 = vector.load %arg13[%c2_104, %c0_105, %c0_106] : memref<4x8x1xf32, #tpu.memory_space<vmem>>, vector<1x8x1xf32>
      %168 = vector.shape_cast %167 : vector<1x8x1xf32> to vector<8x1xf32>
      %cst_107 = arith.constant 1.000000e+00 : f32
      %169 = vector.broadcast %cst_107 : f32 to vector<8x1xf32>
      %170 = arith.divf %169, %168 : vector<8x1xf32>
      %c0_108 = arith.constant 0 : index
      %c16_109 = arith.constant 16 : index
      %171 = vector.load %arg14[%c0_108, %c16_109] : memref<8x32xf32, #tpu.memory_space<vmem>>, vector<8x8xf32>
      %172 = vector.broadcast %170 : vector<8x1xf32> to vector<8x8xf32>
      %173 = arith.mulf %171, %172 : vector<8x8xf32>
      %c0_110 = arith.constant 0 : index
      %c16_111 = arith.constant 16 : index
      %174 = vector.load %arg14[%c0_110, %c16_111] : memref<8x32xf32, #tpu.memory_space<vmem>>, vector<8x8xf32>
      tpu.vector_store %arg14[%c0_110, %c16_111], %173 {strides = array<i32>} : memref<8x32xf32, #tpu.memory_space<vmem>>, vector<8x8xf32>,
      %c3_112 = arith.constant 3 : index
      %c0_113 = arith.constant 0 : index
      %c0_114 = arith.constant 0 : index
      %175 = vector.load %arg13[%c3_112, %c0_113, %c0_114] : memref<4x8x1xf32, #tpu.memory_space<vmem>>, vector<1x8x1xf32>
      %176 = vector.shape_cast %175 : vector<1x8x1xf32> to vector<8x1xf32>
      %cst_115 = arith.constant 1.000000e+00 : f32
      %177 = vector.broadcast %cst_115 : f32 to vector<8x1xf32>
      %178 = arith.divf %177, %176 : vector<8x1xf32>
      %c0_116 = arith.constant 0 : index
      %c24_117 = arith.constant 24 : index
      %179 = vector.load %arg14[%c0_116, %c24_117] : memref<8x32xf32, #tpu.memory_space<vmem>>, vector<8x8xf32>
      %180 = vector.broadcast %178 : vector<8x1xf32> to vector<8x8xf32>
      %181 = arith.mulf %179, %180 : vector<8x8xf32>
      %c0_118 = arith.constant 0 : index
      %c24_119 = arith.constant 24 : index
      %182 = vector.load %arg14[%c0_118, %c24_119] : memref<8x32xf32, #tpu.memory_space<vmem>>, vector<8x8xf32>
      tpu.vector_store %arg14[%c0_118, %c24_119], %181 {strides = array<i32>} : memref<8x32xf32, #tpu.memory_space<vmem>>, vector<8x8xf32>,
      %c0_120 = arith.constant 0 : index
      %c0_121 = arith.constant 0 : index
      %183 = vector.load %arg14[%c0_120, %c0_121] : memref<8x32xf32, #tpu.memory_space<vmem>>, vector<8x32xf32>
      %c0_122 = arith.constant 0 : index
      %c0_123 = arith.constant 0 : index
      %184 = vector.load %arg7[%c0_122, %c0_123] : memref<32x32xf32, #tpu.memory_space<vmem>>, vector<32x32xf32>
      %cst_124 = arith.constant dense<0.000000e+00> : vector<8x32xf32>
      %185 = tpu.matmul %183, %184, %cst_124 {dimension_numbers = #tpu.dot_dimension_numbers<[1], [0], [0], [1], [0, 0, 1, 1], [], []>} : vector<8x32xf32>, vector<32x32xf32>, vector<8x32xf32> -> vector<8x32xf32>
      %c0_125 = arith.constant 0 : index
      %c0_126 = arith.constant 0 : index
      %186 = vector.load %arg8[%c0_125, %c0_126] : memref<1x32xf32, #tpu.memory_space<vmem>>, vector<1x32xf32>
      %187 = vector.broadcast %186 : vector<1x32xf32> to vector<8x32xf32>
      %188 = arith.addf %185, %187 : vector<8x32xf32>
      %c0_127 = arith.constant 0 : index
      %c0_128 = arith.constant 0 : index
      %c0_129 = arith.constant 0 : index
      %189 = vector.load %arg6[%c0_127, %c0_128, %c0_129] : memref<1x8x32xf32, #tpu.memory_space<vmem>>, vector<1x8x32xf32>
      %190 = vector.shape_cast %189 : vector<1x8x32xf32> to vector<8x32xf32>
      %191 = arith.addf %188, %190 : vector<8x32xf32>
      %cst_130 = arith.constant dense<0.000000e+00> : vector<8xf32>
      %192 = vector.multi_reduction <add>, %191, %cst_130 [1] : vector<8x32xf32> to vector<8xf32>
      %193 = vector.shape_cast %192 : vector<8xf32> to vector<8x1xf32>
      %cst_131 = arith.constant 3.200000e+01 : f32
      %194 = vector.broadcast %cst_131 : f32 to vector<8x1xf32>
      %195 = arith.divf %193, %194 : vector<8x1xf32>
      %196 = vector.broadcast %195 : vector<8x1xf32> to vector<8x32xf32>
      %197 = arith.subf %191, %196 : vector<8x32xf32>
      %198 = arith.mulf %197, %197 : vector<8x32xf32>
      %cst_132 = arith.constant dense<0.000000e+00> : vector<8xf32>
      %199 = vector.multi_reduction <add>, %198, %cst_132 [1] : vector<8x32xf32> to vector<8xf32>
      %200 = vector.shape_cast %199 : vector<8xf32> to vector<8x1xf32>
      %cst_133 = arith.constant 3.200000e+01 : f32
      %201 = vector.broadcast %cst_133 : f32 to vector<8x1xf32>
      %202 = arith.divf %200, %201 : vector<8x1xf32>
      %203 = vector.broadcast %195 : vector<8x1xf32> to vector<8x32xf32>
      %204 = arith.subf %191, %203 : vector<8x32xf32>
      %cst_134 = arith.constant 9.99999974E-6 : f32
      %205 = vector.broadcast %cst_134 : f32 to vector<8x1xf32>
      %206 = arith.addf %202, %205 : vector<8x1xf32>
      %207 = math.rsqrt %206 : vector<8x1xf32>
      %208 = vector.broadcast %207 : vector<8x1xf32> to vector<8x32xf32>
      %209 = arith.mulf %204, %208 : vector<8x32xf32>
      %c0_135 = arith.constant 0 : index
      %c0_136 = arith.constant 0 : index
      %210 = vector.load %arg9[%c0_135, %c0_136] : memref<1x32xf32, #tpu.memory_space<vmem>>, vector<1x32xf32>
      %211 = vector.broadcast %210 : vector<1x32xf32> to vector<8x32xf32>
      %212 = arith.mulf %209, %211 : vector<8x32xf32>
      %c0_137 = arith.constant 0 : index
      %c0_138 = arith.constant 0 : index
      %213 = vector.load %arg10[%c0_137, %c0_138] : memref<1x32xf32, #tpu.memory_space<vmem>>, vector<1x32xf32>
      %214 = vector.broadcast %213 : vector<1x32xf32> to vector<8x32xf32>
      %215 = arith.addf %212, %214 : vector<8x32xf32>
      %c0_139 = arith.constant 0 : index
      %c0_140 = arith.constant 0 : index
      %c0_141 = arith.constant 0 : index
      %216 = vector.load %arg11[%c0_139, %c0_140, %c0_141] : memref<1x8x32xf32, #tpu.memory_space<vmem>>, vector<1x8x32xf32>
      %217 = vector.shape_cast %216 : vector<1x8x32xf32> to vector<8x32xf32>
      %218 = vector.shape_cast %215 : vector<8x32xf32> to vector<1x8x32xf32>
      tpu.vector_store %arg11[%c0_139, %c0_140, %c0_141], %218 {strides = array<i32>} : memref<1x8x32xf32, #tpu.memory_space<vmem>>, vector<1x8x32xf32>,
    } else {
    }
    return
  }
  func.func @transform_0(%arg0: i32, %arg1: i32, %arg2: i32) -> (i32, i32, i32) {
    %c0_i32 = arith.constant 0 : i32
    %c0_i32_0 = arith.constant 0 : i32
    return %arg0, %arg1, %c0_i32 : i32, i32, i32
  }
  func.func @transform_1(%arg0: i32, %arg1: i32, %arg2: i32) -> (i32, i32, i32) {
    %c0_i32 = arith.constant 0 : i32
    %c0_i32_0 = arith.constant 0 : i32
    return %arg0, %arg2, %c0_i32 : i32, i32, i32
  }
  func.func @transform_2(%arg0: i32, %arg1: i32, %arg2: i32) -> (i32, i32, i32) {
    %c0_i32 = arith.constant 0 : i32
    %c0_i32_0 = arith.constant 0 : i32
    return %arg0, %arg2, %c0_i32 : i32, i32, i32
  }
  func.func @transform_3(%arg0: i32, %arg1: i32, %arg2: i32) -> (i32, i32, i32) {
    %c0_i32 = arith.constant 0 : i32
    %c0_i32_0 = arith.constant 0 : i32
    return %arg0, %arg1, %c0_i32 : i32, i32, i32
  }
  func.func @transform_4(%arg0: i32, %arg1: i32, %arg2: i32) -> (i32, i32) {
    %c0_i32 = arith.constant 0 : i32
    %c0_i32_0 = arith.constant 0 : i32
    %c0_i32_1 = arith.constant 0 : i32
    return %c0_i32, %c0_i32_0 : i32, i32
  }
  func.func @transform_5(%arg0: i32, %arg1: i32, %arg2: i32) -> (i32, i32) {
    %c0_i32 = arith.constant 0 : i32
    %c0_i32_0 = arith.constant 0 : i32
    %c0_i32_1 = arith.constant 0 : i32
    return %c0_i32, %c0_i32_0 : i32, i32
  }
  func.func @transform_6(%arg0: i32, %arg1: i32, %arg2: i32) -> (i32, i32) {
    %c0_i32 = arith.constant 0 : i32
    %c0_i32_0 = arith.constant 0 : i32
    %c0_i32_1 = arith.constant 0 : i32
    return %c0_i32, %c0_i32_0 : i32, i32
  }
  func.func @transform_7(%arg0: i32, %arg1: i32, %arg2: i32) -> (i32, i32) {
    %c0_i32 = arith.constant 0 : i32
    %c0_i32_0 = arith.constant 0 : i32
    %c0_i32_1 = arith.constant 0 : i32
    return %c0_i32, %c0_i32_0 : i32, i32
  }
  func.func @transform_8(%arg0: i32, %arg1: i32, %arg2: i32) -> (i32, i32, i32) {
    %c0_i32 = arith.constant 0 : i32
    %c0_i32_0 = arith.constant 0 : i32
    return %arg0, %arg1, %c0_i32 : i32, i32, i32
  }
}

module attributes {stable_mosaic.version = 11 : i64} {
  func.func @_matmul_add_ln_kernel(%arg0: i32, %arg1: i32, %arg2: memref<16x64xf32, #tpu.memory_space<vmem>>, %arg3: memref<64x32xf32, #tpu.memory_space<vmem>>, %arg4: memref<1x32xf32, #tpu.memory_space<vmem>>, %arg5: memref<16x32xf32, #tpu.memory_space<vmem>>, %arg6: memref<1x32xf32, #tpu.memory_space<vmem>>, %arg7: memref<1x32xf32, #tpu.memory_space<vmem>>, %arg8: memref<16x32xf32, #tpu.memory_space<vmem>>, %arg9: memref<16x32xf32, #tpu.memory_space<vmem>>) attributes {dimension_semantics = [#tpu.dimension_semantics<parallel>, #tpu.dimension_semantics<arbitrary>], iteration_bounds = array<i64: 1, 1>, scalar_prefetch = 0 : i64, scratch_operands = 1 : i64, tpu.core_type = #tpu.core_type<tc>, window_params = [{transform_indices = @transform_0, window_bounds = array<i64: 16, 64>}, {transform_indices = @transform_1, window_bounds = array<i64: 64, 32>}, {pipeline_mode = #tpu.pipeline_mode<synchronous>, transform_indices = @transform_2, window_bounds = array<i64: 1, 32>}, {transform_indices = @transform_3, window_bounds = array<i64: 16, 32>}, {pipeline_mode = #tpu.pipeline_mode<synchronous>, transform_indices = @transform_4, window_bounds = array<i64: 1, 32>}, {pipeline_mode = #tpu.pipeline_mode<synchronous>, transform_indices = @transform_5, window_bounds = array<i64: 1, 32>}, {transform_indices = @transform_6, window_bounds = array<i64: 16, 32>}]} {
    %c0_i32 = arith.constant 0 : i32
    %0 = arith.cmpi eq, %arg1, %c0_i32 : i32
    %1 = arith.extui %0 : i1 to i32
    %c0_i32_0 = arith.constant 0 : i32
    %2 = arith.cmpi ne, %1, %c0_i32_0 : i32
    scf.if %2 {
      %cst_10 = arith.constant 0.000000e+00 : f32
      %12 = vector.broadcast %cst_10 : f32 to vector<16x32xf32>
      %c0_11 = arith.constant 0 : index
      %c0_12 = arith.constant 0 : index
      %13 = vector.load %arg9[%c0_11, %c0_12] : memref<16x32xf32, #tpu.memory_space<vmem>>, vector<16x32xf32>
      tpu.vector_store %arg9[%c0_11, %c0_12], %12 {strides = array<i32>} : memref<16x32xf32, #tpu.memory_space<vmem>>, vector<16x32xf32>,
    } else {
    }
    %c0 = arith.constant 0 : index
    %c0_1 = arith.constant 0 : index
    %3 = vector.load %arg9[%c0, %c0_1] : memref<16x32xf32, #tpu.memory_space<vmem>>, vector<16x32xf32>
    %c0_2 = arith.constant 0 : index
    %c0_3 = arith.constant 0 : index
    %4 = vector.load %arg2[%c0_2, %c0_3] : memref<16x64xf32, #tpu.memory_space<vmem>>, vector<16x64xf32>
    %c0_4 = arith.constant 0 : index
    %c0_5 = arith.constant 0 : index
    %5 = vector.load %arg3[%c0_4, %c0_5] : memref<64x32xf32, #tpu.memory_space<vmem>>, vector<64x32xf32>
    %cst = arith.constant dense<0.000000e+00> : vector<16x32xf32>
    %6 = tpu.matmul %4, %5, %cst {dimension_numbers = #tpu.dot_dimension_numbers<[1], [0], [0], [1], [0, 0, 1, 1], [], []>} : vector<16x64xf32>, vector<64x32xf32>, vector<16x32xf32> -> vector<16x32xf32>
    %7 = arith.addf %3, %6 : vector<16x32xf32>
    %c0_6 = arith.constant 0 : index
    %c0_7 = arith.constant 0 : index
    %8 = vector.load %arg9[%c0_6, %c0_7] : memref<16x32xf32, #tpu.memory_space<vmem>>, vector<16x32xf32>
    tpu.vector_store %arg9[%c0_6, %c0_7], %7 {strides = array<i32>} : memref<16x32xf32, #tpu.memory_space<vmem>>, vector<16x32xf32>,
    %c0_i32_8 = arith.constant 0 : i32
    %9 = arith.cmpi eq, %arg1, %c0_i32_8 : i32
    %10 = arith.extui %9 : i1 to i32
    %c0_i32_9 = arith.constant 0 : i32
    %11 = arith.cmpi ne, %10, %c0_i32_9 : i32
    scf.if %11 {
      %c0_10 = arith.constant 0 : index
      %c0_11 = arith.constant 0 : index
      %12 = vector.load %arg9[%c0_10, %c0_11] : memref<16x32xf32, #tpu.memory_space<vmem>>, vector<16x32xf32>
      %c0_12 = arith.constant 0 : index
      %c0_13 = arith.constant 0 : index
      %13 = vector.load %arg4[%c0_12, %c0_13] : memref<1x32xf32, #tpu.memory_space<vmem>>, vector<1x32xf32>
      %14 = vector.broadcast %13 : vector<1x32xf32> to vector<16x32xf32>
      %15 = arith.addf %12, %14 : vector<16x32xf32>
      %c0_14 = arith.constant 0 : index
      %c0_15 = arith.constant 0 : index
      %16 = vector.load %arg5[%c0_14, %c0_15] : memref<16x32xf32, #tpu.memory_space<vmem>>, vector<16x32xf32>
      %17 = arith.addf %15, %16 : vector<16x32xf32>
      %cst_16 = arith.constant dense<0.000000e+00> : vector<16xf32>
      %18 = vector.multi_reduction <add>, %17, %cst_16 [1] : vector<16x32xf32> to vector<16xf32>
      %19 = vector.shape_cast %18 : vector<16xf32> to vector<16x1xf32>
      %cst_17 = arith.constant 3.200000e+01 : f32
      %20 = vector.broadcast %cst_17 : f32 to vector<16x1xf32>
      %21 = arith.divf %19, %20 : vector<16x1xf32>
      %22 = vector.broadcast %21 : vector<16x1xf32> to vector<16x32xf32>
      %23 = arith.subf %17, %22 : vector<16x32xf32>
      %24 = arith.mulf %23, %23 : vector<16x32xf32>
      %cst_18 = arith.constant dense<0.000000e+00> : vector<16xf32>
      %25 = vector.multi_reduction <add>, %24, %cst_18 [1] : vector<16x32xf32> to vector<16xf32>
      %26 = vector.shape_cast %25 : vector<16xf32> to vector<16x1xf32>
      %cst_19 = arith.constant 3.200000e+01 : f32
      %27 = vector.broadcast %cst_19 : f32 to vector<16x1xf32>
      %28 = arith.divf %26, %27 : vector<16x1xf32>
      %29 = vector.broadcast %21 : vector<16x1xf32> to vector<16x32xf32>
      %30 = arith.subf %17, %29 : vector<16x32xf32>
      %cst_20 = arith.constant 9.99999974E-6 : f32
      %31 = vector.broadcast %cst_20 : f32 to vector<16x1xf32>
      %32 = arith.addf %28, %31 : vector<16x1xf32>
      %33 = math.rsqrt %32 : vector<16x1xf32>
      %34 = vector.broadcast %33 : vector<16x1xf32> to vector<16x32xf32>
      %35 = arith.mulf %30, %34 : vector<16x32xf32>
      %c0_21 = arith.constant 0 : index
      %c0_22 = arith.constant 0 : index
      %36 = vector.load %arg6[%c0_21, %c0_22] : memref<1x32xf32, #tpu.memory_space<vmem>>, vector<1x32xf32>
      %37 = vector.broadcast %36 : vector<1x32xf32> to vector<16x32xf32>
      %38 = arith.mulf %35, %37 : vector<16x32xf32>
      %c0_23 = arith.constant 0 : index
      %c0_24 = arith.constant 0 : index
      %39 = vector.load %arg7[%c0_23, %c0_24] : memref<1x32xf32, #tpu.memory_space<vmem>>, vector<1x32xf32>
      %40 = vector.broadcast %39 : vector<1x32xf32> to vector<16x32xf32>
      %41 = arith.addf %38, %40 : vector<16x32xf32>
      %c0_25 = arith.constant 0 : index
      %c0_26 = arith.constant 0 : index
      %42 = vector.load %arg8[%c0_25, %c0_26] : memref<16x32xf32, #tpu.memory_space<vmem>>, vector<16x32xf32>
      tpu.vector_store %arg8[%c0_25, %c0_26], %41 {strides = array<i32>} : memref<16x32xf32, #tpu.memory_space<vmem>>, vector<16x32xf32>,
    } else {
    }
    return
  }
  func.func @transform_0(%arg0: i32, %arg1: i32) -> (i32, i32) {
    %c0_i32 = arith.constant 0 : i32
    return %arg0, %arg1 : i32, i32
  }
  func.func @transform_1(%arg0: i32, %arg1: i32) -> (i32, i32) {
    %c0_i32 = arith.constant 0 : i32
    %c0_i32_0 = arith.constant 0 : i32
    return %arg1, %c0_i32 : i32, i32
  }
  func.func @transform_2(%arg0: i32, %arg1: i32) -> (i32, i32) {
    %c0_i32 = arith.constant 0 : i32
    %c0_i32_0 = arith.constant 0 : i32
    %c0_i32_1 = arith.constant 0 : i32
    return %c0_i32, %c0_i32_0 : i32, i32
  }
  func.func @transform_3(%arg0: i32, %arg1: i32) -> (i32, i32) {
    %c0_i32 = arith.constant 0 : i32
    %c0_i32_0 = arith.constant 0 : i32
    return %arg0, %c0_i32 : i32, i32
  }
  func.func @transform_4(%arg0: i32, %arg1: i32) -> (i32, i32) {
    %c0_i32 = arith.constant 0 : i32
    %c0_i32_0 = arith.constant 0 : i32
    %c0_i32_1 = arith.constant 0 : i32
    return %c0_i32, %c0_i32_0 : i32, i32
  }
  func.func @transform_5(%arg0: i32, %arg1: i32) -> (i32, i32) {
    %c0_i32 = arith.constant 0 : i32
    %c0_i32_0 = arith.constant 0 : i32
    %c0_i32_1 = arith.constant 0 : i32
    return %c0_i32, %c0_i32_0 : i32, i32
  }
  func.func @transform_6(%arg0: i32, %arg1: i32) -> (i32, i32) {
    %c0_i32 = arith.constant 0 : i32
    %c0_i32_0 = arith.constant 0 : i32
    return %arg0, %c0_i32 : i32, i32
  }
}

module attributes {stable_mosaic.version = 11 : i64} {
  func.func @_matmul_bias_kernel(%arg0: i32, %arg1: i32, %arg2: i32, %arg3: memref<16x32xf32, #tpu.memory_space<vmem>>, %arg4: memref<32x96xf32, #tpu.memory_space<vmem>>, %arg5: memref<1x96xf32, #tpu.memory_space<vmem>>, %arg6: memref<16x96xf32, #tpu.memory_space<vmem>>, %arg7: memref<16x96xf32, #tpu.memory_space<vmem>>) attributes {dimension_semantics = [#tpu.dimension_semantics<parallel>, #tpu.dimension_semantics<parallel>, #tpu.dimension_semantics<arbitrary>], iteration_bounds = array<i64: 1, 1, 1>, scalar_prefetch = 0 : i64, scratch_operands = 1 : i64, tpu.core_type = #tpu.core_type<tc>, window_params = [{transform_indices = @transform_0, window_bounds = array<i64: 16, 32>}, {transform_indices = @transform_1, window_bounds = array<i64: 32, 96>}, {transform_indices = @transform_2, window_bounds = array<i64: 1, 96>}, {transform_indices = @transform_3, window_bounds = array<i64: 16, 96>}]} {
    %c0_i32 = arith.constant 0 : i32
    %0 = arith.cmpi eq, %arg2, %c0_i32 : i32
    %1 = arith.extui %0 : i1 to i32
    %c0_i32_0 = arith.constant 0 : i32
    %2 = arith.cmpi ne, %1, %c0_i32_0 : i32
    scf.if %2 {
      %cst_10 = arith.constant 0.000000e+00 : f32
      %12 = vector.broadcast %cst_10 : f32 to vector<16x96xf32>
      %c0_11 = arith.constant 0 : index
      %c0_12 = arith.constant 0 : index
      %13 = vector.load %arg7[%c0_11, %c0_12] : memref<16x96xf32, #tpu.memory_space<vmem>>, vector<16x96xf32>
      tpu.vector_store %arg7[%c0_11, %c0_12], %12 {strides = array<i32>} : memref<16x96xf32, #tpu.memory_space<vmem>>, vector<16x96xf32>,
    } else {
    }
    %c0 = arith.constant 0 : index
    %c0_1 = arith.constant 0 : index
    %3 = vector.load %arg7[%c0, %c0_1] : memref<16x96xf32, #tpu.memory_space<vmem>>, vector<16x96xf32>
    %c0_2 = arith.constant 0 : index
    %c0_3 = arith.constant 0 : index
    %4 = vector.load %arg3[%c0_2, %c0_3] : memref<16x32xf32, #tpu.memory_space<vmem>>, vector<16x32xf32>
    %c0_4 = arith.constant 0 : index
    %c0_5 = arith.constant 0 : index
    %5 = vector.load %arg4[%c0_4, %c0_5] : memref<32x96xf32, #tpu.memory_space<vmem>>, vector<32x96xf32>
    %cst = arith.constant dense<0.000000e+00> : vector<16x96xf32>
    %6 = tpu.matmul %4, %5, %cst {dimension_numbers = #tpu.dot_dimension_numbers<[1], [0], [0], [1], [0, 0, 1, 1], [], []>} : vector<16x32xf32>, vector<32x96xf32>, vector<16x96xf32> -> vector<16x96xf32>
    %7 = arith.addf %3, %6 : vector<16x96xf32>
    %c0_6 = arith.constant 0 : index
    %c0_7 = arith.constant 0 : index
    %8 = vector.load %arg7[%c0_6, %c0_7] : memref<16x96xf32, #tpu.memory_space<vmem>>, vector<16x96xf32>
    tpu.vector_store %arg7[%c0_6, %c0_7], %7 {strides = array<i32>} : memref<16x96xf32, #tpu.memory_space<vmem>>, vector<16x96xf32>,
    %c0_i32_8 = arith.constant 0 : i32
    %9 = arith.cmpi eq, %arg2, %c0_i32_8 : i32
    %10 = arith.extui %9 : i1 to i32
    %c0_i32_9 = arith.constant 0 : i32
    %11 = arith.cmpi ne, %10, %c0_i32_9 : i32
    scf.if %11 {
      %c0_10 = arith.constant 0 : index
      %c0_11 = arith.constant 0 : index
      %12 = vector.load %arg7[%c0_10, %c0_11] : memref<16x96xf32, #tpu.memory_space<vmem>>, vector<16x96xf32>
      %c0_12 = arith.constant 0 : index
      %c0_13 = arith.constant 0 : index
      %13 = vector.load %arg5[%c0_12, %c0_13] : memref<1x96xf32, #tpu.memory_space<vmem>>, vector<1x96xf32>
      %14 = vector.broadcast %13 : vector<1x96xf32> to vector<16x96xf32>
      %15 = arith.addf %12, %14 : vector<16x96xf32>
      %c0_14 = arith.constant 0 : index
      %c0_15 = arith.constant 0 : index
      %16 = vector.load %arg6[%c0_14, %c0_15] : memref<16x96xf32, #tpu.memory_space<vmem>>, vector<16x96xf32>
      tpu.vector_store %arg6[%c0_14, %c0_15], %15 {strides = array<i32>} : memref<16x96xf32, #tpu.memory_space<vmem>>, vector<16x96xf32>,
    } else {
    }
    return
  }
  func.func @transform_0(%arg0: i32, %arg1: i32, %arg2: i32) -> (i32, i32) {
    %c0_i32 = arith.constant 0 : i32
    return %arg0, %arg2 : i32, i32
  }
  func.func @transform_1(%arg0: i32, %arg1: i32, %arg2: i32) -> (i32, i32) {
    %c0_i32 = arith.constant 0 : i32
    return %arg2, %arg1 : i32, i32
  }
  func.func @transform_2(%arg0: i32, %arg1: i32, %arg2: i32) -> (i32, i32) {
    %c0_i32 = arith.constant 0 : i32
    %c0_i32_0 = arith.constant 0 : i32
    return %c0_i32, %arg1 : i32, i32
  }
  func.func @transform_3(%arg0: i32, %arg1: i32, %arg2: i32) -> (i32, i32) {
    %c0_i32 = arith.constant 0 : i32
    return %arg0, %arg1 : i32, i32
  }
}

module attributes {stable_mosaic.version = 11 : i64} {
  func.func @_matmul_bias_kernel(%arg0: i32, %arg1: i32, %arg2: i32, %arg3: memref<16x32xf32, #tpu.memory_space<vmem>>, %arg4: memref<32x64xf32, #tpu.memory_space<vmem>>, %arg5: memref<1x64xf32, #tpu.memory_space<vmem>>, %arg6: memref<16x64xf32, #tpu.memory_space<vmem>>, %arg7: memref<16x64xf32, #tpu.memory_space<vmem>>) attributes {dimension_semantics = [#tpu.dimension_semantics<parallel>, #tpu.dimension_semantics<parallel>, #tpu.dimension_semantics<arbitrary>], iteration_bounds = array<i64: 1, 1, 1>, scalar_prefetch = 0 : i64, scratch_operands = 1 : i64, tpu.core_type = #tpu.core_type<tc>, window_params = [{transform_indices = @transform_0, window_bounds = array<i64: 16, 32>}, {transform_indices = @transform_1, window_bounds = array<i64: 32, 64>}, {transform_indices = @transform_2, window_bounds = array<i64: 1, 64>}, {transform_indices = @transform_3, window_bounds = array<i64: 16, 64>}]} {
    %c0_i32 = arith.constant 0 : i32
    %0 = arith.cmpi eq, %arg2, %c0_i32 : i32
    %1 = arith.extui %0 : i1 to i32
    %c0_i32_0 = arith.constant 0 : i32
    %2 = arith.cmpi ne, %1, %c0_i32_0 : i32
    scf.if %2 {
      %cst_10 = arith.constant 0.000000e+00 : f32
      %12 = vector.broadcast %cst_10 : f32 to vector<16x64xf32>
      %c0_11 = arith.constant 0 : index
      %c0_12 = arith.constant 0 : index
      %13 = vector.load %arg7[%c0_11, %c0_12] : memref<16x64xf32, #tpu.memory_space<vmem>>, vector<16x64xf32>
      tpu.vector_store %arg7[%c0_11, %c0_12], %12 {strides = array<i32>} : memref<16x64xf32, #tpu.memory_space<vmem>>, vector<16x64xf32>,
    } else {
    }
    %c0 = arith.constant 0 : index
    %c0_1 = arith.constant 0 : index
    %3 = vector.load %arg7[%c0, %c0_1] : memref<16x64xf32, #tpu.memory_space<vmem>>, vector<16x64xf32>
    %c0_2 = arith.constant 0 : index
    %c0_3 = arith.constant 0 : index
    %4 = vector.load %arg3[%c0_2, %c0_3] : memref<16x32xf32, #tpu.memory_space<vmem>>, vector<16x32xf32>
    %c0_4 = arith.constant 0 : index
    %c0_5 = arith.constant 0 : index
    %5 = vector.load %arg4[%c0_4, %c0_5] : memref<32x64xf32, #tpu.memory_space<vmem>>, vector<32x64xf32>
    %cst = arith.constant dense<0.000000e+00> : vector<16x64xf32>
    %6 = tpu.matmul %4, %5, %cst {dimension_numbers = #tpu.dot_dimension_numbers<[1], [0], [0], [1], [0, 0, 1, 1], [], []>} : vector<16x32xf32>, vector<32x64xf32>, vector<16x64xf32> -> vector<16x64xf32>
    %7 = arith.addf %3, %6 : vector<16x64xf32>
    %c0_6 = arith.constant 0 : index
    %c0_7 = arith.constant 0 : index
    %8 = vector.load %arg7[%c0_6, %c0_7] : memref<16x64xf32, #tpu.memory_space<vmem>>, vector<16x64xf32>
    tpu.vector_store %arg7[%c0_6, %c0_7], %7 {strides = array<i32>} : memref<16x64xf32, #tpu.memory_space<vmem>>, vector<16x64xf32>,
    %c0_i32_8 = arith.constant 0 : i32
    %9 = arith.cmpi eq, %arg2, %c0_i32_8 : i32
    %10 = arith.extui %9 : i1 to i32
    %c0_i32_9 = arith.constant 0 : i32
    %11 = arith.cmpi ne, %10, %c0_i32_9 : i32
    scf.if %11 {
      %c0_10 = arith.constant 0 : index
      %c0_11 = arith.constant 0 : index
      %12 = vector.load %arg7[%c0_10, %c0_11] : memref<16x64xf32, #tpu.memory_space<vmem>>, vector<16x64xf32>
      %c0_12 = arith.constant 0 : index
      %c0_13 = arith.constant 0 : index
      %13 = vector.load %arg5[%c0_12, %c0_13] : memref<1x64xf32, #tpu.memory_space<vmem>>, vector<1x64xf32>
      %14 = vector.broadcast %13 : vector<1x64xf32> to vector<16x64xf32>
      %15 = arith.addf %12, %14 : vector<16x64xf32>
      %cst_14 = arith.constant 0.000000e+00 : f32
      %16 = vector.broadcast %cst_14 : f32 to vector<16x64xf32>
      %17 = arith.maximumf %15, %16 : vector<16x64xf32>
      %c0_15 = arith.constant 0 : index
      %c0_16 = arith.constant 0 : index
      %18 = vector.load %arg6[%c0_15, %c0_16] : memref<16x64xf32, #tpu.memory_space<vmem>>, vector<16x64xf32>
      tpu.vector_store %arg6[%c0_15, %c0_16], %17 {strides = array<i32>} : memref<16x64xf32, #tpu.memory_space<vmem>>, vector<16x64xf32>,
    } else {
    }
    return
  }
  func.func @transform_0(%arg0: i32, %arg1: i32, %arg2: i32) -> (i32, i32) {
    %c0_i32 = arith.constant 0 : i32
    return %arg0, %arg2 : i32, i32
  }
  func.func @transform_1(%arg0: i32, %arg1: i32, %arg2: i32) -> (i32, i32) {
    %c0_i32 = arith.constant 0 : i32
    return %arg2, %arg1 : i32, i32
  }
  func.func @transform_2(%arg0: i32, %arg1: i32, %arg2: i32) -> (i32, i32) {
    %c0_i32 = arith.constant 0 : i32
    %c0_i32_0 = arith.constant 0 : i32
    return %c0_i32, %arg1 : i32, i32
  }
  func.func @transform_3(%arg0: i32, %arg1: i32, %arg2: i32) -> (i32, i32) {
    %c0_i32 = arith.constant 0 : i32
    return %arg0, %arg1 : i32, i32
  }
}

module attributes {stable_mosaic.version = 11 : i64} {
  func.func @_matmul_add_ln_kernel(%arg0: i32, %arg1: i32, %arg2: memref<16x64xf32, #tpu.memory_space<vmem>>, %arg3: memref<64x32xf32, #tpu.memory_space<vmem>>, %arg4: memref<1x32xf32, #tpu.memory_space<vmem>>, %arg5: memref<16x32xf32, #tpu.memory_space<vmem>>, %arg6: memref<1x32xf32, #tpu.memory_space<vmem>>, %arg7: memref<1x32xf32, #tpu.memory_space<vmem>>, %arg8: memref<16x32xf32, #tpu.memory_space<vmem>>, %arg9: memref<16x32xf32, #tpu.memory_space<vmem>>) attributes {dimension_semantics = [#tpu.dimension_semantics<parallel>, #tpu.dimension_semantics<arbitrary>], iteration_bounds = array<i64: 1, 1>, scalar_prefetch = 0 : i64, scratch_operands = 1 : i64, tpu.core_type = #tpu.core_type<tc>, window_params = [{transform_indices = @transform_0, window_bounds = array<i64: 16, 64>}, {transform_indices = @transform_1, window_bounds = array<i64: 64, 32>}, {pipeline_mode = #tpu.pipeline_mode<synchronous>, transform_indices = @transform_2, window_bounds = array<i64: 1, 32>}, {transform_indices = @transform_3, window_bounds = array<i64: 16, 32>}, {pipeline_mode = #tpu.pipeline_mode<synchronous>, transform_indices = @transform_4, window_bounds = array<i64: 1, 32>}, {pipeline_mode = #tpu.pipeline_mode<synchronous>, transform_indices = @transform_5, window_bounds = array<i64: 1, 32>}, {transform_indices = @transform_6, window_bounds = array<i64: 16, 32>}]} {
    %c0_i32 = arith.constant 0 : i32
    %0 = arith.cmpi eq, %arg1, %c0_i32 : i32
    %1 = arith.extui %0 : i1 to i32
    %c0_i32_0 = arith.constant 0 : i32
    %2 = arith.cmpi ne, %1, %c0_i32_0 : i32
    scf.if %2 {
      %cst_10 = arith.constant 0.000000e+00 : f32
      %12 = vector.broadcast %cst_10 : f32 to vector<16x32xf32>
      %c0_11 = arith.constant 0 : index
      %c0_12 = arith.constant 0 : index
      %13 = vector.load %arg9[%c0_11, %c0_12] : memref<16x32xf32, #tpu.memory_space<vmem>>, vector<16x32xf32>
      tpu.vector_store %arg9[%c0_11, %c0_12], %12 {strides = array<i32>} : memref<16x32xf32, #tpu.memory_space<vmem>>, vector<16x32xf32>,
    } else {
    }
    %c0 = arith.constant 0 : index
    %c0_1 = arith.constant 0 : index
    %3 = vector.load %arg9[%c0, %c0_1] : memref<16x32xf32, #tpu.memory_space<vmem>>, vector<16x32xf32>
    %c0_2 = arith.constant 0 : index
    %c0_3 = arith.constant 0 : index
    %4 = vector.load %arg2[%c0_2, %c0_3] : memref<16x64xf32, #tpu.memory_space<vmem>>, vector<16x64xf32>
    %c0_4 = arith.constant 0 : index
    %c0_5 = arith.constant 0 : index
    %5 = vector.load %arg3[%c0_4, %c0_5] : memref<64x32xf32, #tpu.memory_space<vmem>>, vector<64x32xf32>
    %cst = arith.constant dense<0.000000e+00> : vector<16x32xf32>
    %6 = tpu.matmul %4, %5, %cst {dimension_numbers = #tpu.dot_dimension_numbers<[1], [0], [0], [1], [0, 0, 1, 1], [], []>} : vector<16x64xf32>, vector<64x32xf32>, vector<16x32xf32> -> vector<16x32xf32>
    %7 = arith.addf %3, %6 : vector<16x32xf32>
    %c0_6 = arith.constant 0 : index
    %c0_7 = arith.constant 0 : index
    %8 = vector.load %arg9[%c0_6, %c0_7] : memref<16x32xf32, #tpu.memory_space<vmem>>, vector<16x32xf32>
    tpu.vector_store %arg9[%c0_6, %c0_7], %7 {strides = array<i32>} : memref<16x32xf32, #tpu.memory_space<vmem>>, vector<16x32xf32>,
    %c0_i32_8 = arith.constant 0 : i32
    %9 = arith.cmpi eq, %arg1, %c0_i32_8 : i32
    %10 = arith.extui %9 : i1 to i32
    %c0_i32_9 = arith.constant 0 : i32
    %11 = arith.cmpi ne, %10, %c0_i32_9 : i32
    scf.if %11 {
      %c0_10 = arith.constant 0 : index
      %c0_11 = arith.constant 0 : index
      %12 = vector.load %arg9[%c0_10, %c0_11] : memref<16x32xf32, #tpu.memory_space<vmem>>, vector<16x32xf32>
      %c0_12 = arith.constant 0 : index
      %c0_13 = arith.constant 0 : index
      %13 = vector.load %arg4[%c0_12, %c0_13] : memref<1x32xf32, #tpu.memory_space<vmem>>, vector<1x32xf32>
      %14 = vector.broadcast %13 : vector<1x32xf32> to vector<16x32xf32>
      %15 = arith.addf %12, %14 : vector<16x32xf32>
      %c0_14 = arith.constant 0 : index
      %c0_15 = arith.constant 0 : index
      %16 = vector.load %arg5[%c0_14, %c0_15] : memref<16x32xf32, #tpu.memory_space<vmem>>, vector<16x32xf32>
      %17 = arith.addf %15, %16 : vector<16x32xf32>
      %cst_16 = arith.constant dense<0.000000e+00> : vector<16xf32>
      %18 = vector.multi_reduction <add>, %17, %cst_16 [1] : vector<16x32xf32> to vector<16xf32>
      %19 = vector.shape_cast %18 : vector<16xf32> to vector<16x1xf32>
      %cst_17 = arith.constant 3.200000e+01 : f32
      %20 = vector.broadcast %cst_17 : f32 to vector<16x1xf32>
      %21 = arith.divf %19, %20 : vector<16x1xf32>
      %22 = vector.broadcast %21 : vector<16x1xf32> to vector<16x32xf32>
      %23 = arith.subf %17, %22 : vector<16x32xf32>
      %24 = arith.mulf %23, %23 : vector<16x32xf32>
      %cst_18 = arith.constant dense<0.000000e+00> : vector<16xf32>
      %25 = vector.multi_reduction <add>, %24, %cst_18 [1] : vector<16x32xf32> to vector<16xf32>
      %26 = vector.shape_cast %25 : vector<16xf32> to vector<16x1xf32>
      %cst_19 = arith.constant 3.200000e+01 : f32
      %27 = vector.broadcast %cst_19 : f32 to vector<16x1xf32>
      %28 = arith.divf %26, %27 : vector<16x1xf32>
      %29 = vector.broadcast %21 : vector<16x1xf32> to vector<16x32xf32>
      %30 = arith.subf %17, %29 : vector<16x32xf32>
      %cst_20 = arith.constant 9.99999974E-6 : f32
      %31 = vector.broadcast %cst_20 : f32 to vector<16x1xf32>
      %32 = arith.addf %28, %31 : vector<16x1xf32>
      %33 = math.rsqrt %32 : vector<16x1xf32>
      %34 = vector.broadcast %33 : vector<16x1xf32> to vector<16x32xf32>
      %35 = arith.mulf %30, %34 : vector<16x32xf32>
      %c0_21 = arith.constant 0 : index
      %c0_22 = arith.constant 0 : index
      %36 = vector.load %arg6[%c0_21, %c0_22] : memref<1x32xf32, #tpu.memory_space<vmem>>, vector<1x32xf32>
      %37 = vector.broadcast %36 : vector<1x32xf32> to vector<16x32xf32>
      %38 = arith.mulf %35, %37 : vector<16x32xf32>
      %c0_23 = arith.constant 0 : index
      %c0_24 = arith.constant 0 : index
      %39 = vector.load %arg7[%c0_23, %c0_24] : memref<1x32xf32, #tpu.memory_space<vmem>>, vector<1x32xf32>
      %40 = vector.broadcast %39 : vector<1x32xf32> to vector<16x32xf32>
      %41 = arith.addf %38, %40 : vector<16x32xf32>
      %c0_25 = arith.constant 0 : index
      %c0_26 = arith.constant 0 : index
      %42 = vector.load %arg8[%c0_25, %c0_26] : memref<16x32xf32, #tpu.memory_space<vmem>>, vector<16x32xf32>
      tpu.vector_store %arg8[%c0_25, %c0_26], %41 {strides = array<i32>} : memref<16x32xf32, #tpu.memory_space<vmem>>, vector<16x32xf32>,
    } else {
    }
    return
  }
  func.func @transform_0(%arg0: i32, %arg1: i32) -> (i32, i32) {
    %c0_i32 = arith.constant 0 : i32
    return %arg0, %arg1 : i32, i32
  }
  func.func @transform_1(%arg0: i32, %arg1: i32) -> (i32, i32) {
    %c0_i32 = arith.constant 0 : i32
    %c0_i32_0 = arith.constant 0 : i32
    return %arg1, %c0_i32 : i32, i32
  }
  func.func @transform_2(%arg0: i32, %arg1: i32) -> (i32, i32) {
    %c0_i32 = arith.constant 0 : i32
    %c0_i32_0 = arith.constant 0 : i32
    %c0_i32_1 = arith.constant 0 : i32
    return %c0_i32, %c0_i32_0 : i32, i32
  }
  func.func @transform_3(%arg0: i32, %arg1: i32) -> (i32, i32) {
    %c0_i32 = arith.constant 0 : i32
    %c0_i32_0 = arith.constant 0 : i32
    return %arg0, %c0_i32 : i32, i32
  }
  func.func @transform_4(%arg0: i32, %arg1: i32) -> (i32, i32) {
    %c0_i32 = arith.constant 0 : i32
    %c0_i32_0 = arith.constant 0 : i32
    %c0_i32_1 = arith.constant 0 : i32
    return %c0_i32, %c0_i32_0 : i32, i32
  }
  func.func @transform_5(%arg0: i32, %arg1: i32) -> (i32, i32) {
    %c0_i32 = arith.constant 0 : i32
    %c0_i32_0 = arith.constant 0 : i32
    %c0_i32_1 = arith.constant 0 : i32
    return %c0_i32, %c0_i32_0 : i32, i32
  }
  func.func @transform_6(%arg0: i32, %arg1: i32) -> (i32, i32) {
    %c0_i32 = arith.constant 0 : i32
    %c0_i32_0 = arith.constant 0 : i32
    return %arg0, %c0_i32 : i32, i32
  }
}

module attributes {stable_mosaic.version = 11 : i64} {
  func.func @_flash_attn_oproj_ln_kernel(%arg0: i32, %arg1: i32, %arg2: i32, %arg3: memref<1x8x96xf32, #tpu.memory_space<vmem>>, %arg4: memref<1x8x96xf32, #tpu.memory_space<vmem>>, %arg5: memref<1x8x96xf32, #tpu.memory_space<vmem>>, %arg6: memref<1x8x32xf32, #tpu.memory_space<vmem>>, %arg7: memref<32x32xf32, #tpu.memory_space<vmem>>, %arg8: memref<1x32xf32, #tpu.memory_space<vmem>>, %arg9: memref<1x32xf32, #tpu.memory_space<vmem>>, %arg10: memref<1x32xf32, #tpu.memory_space<vmem>>, %arg11: memref<1x8x32xf32, #tpu.memory_space<vmem>>, %arg12: memref<4x8x1xf32, #tpu.memory_space<vmem>>, %arg13: memref<4x8x1xf32, #tpu.memory_space<vmem>>, %arg14: memref<8x32xf32, #tpu.memory_space<vmem>>) attributes {dimension_semantics = [#tpu.dimension_semantics<parallel>, #tpu.dimension_semantics<parallel>, #tpu.dimension_semantics<arbitrary>], iteration_bounds = array<i64: 2, 1, 1>, scalar_prefetch = 0 : i64, scratch_operands = 3 : i64, tpu.core_type = #tpu.core_type<tc>, window_params = [{transform_indices = @transform_0, window_bounds = array<i64: 1, 8, 96>}, {transform_indices = @transform_1, window_bounds = array<i64: 1, 8, 96>}, {transform_indices = @transform_2, window_bounds = array<i64: 1, 8, 96>}, {transform_indices = @transform_3, window_bounds = array<i64: 1, 8, 32>}, {pipeline_mode = #tpu.pipeline_mode<synchronous>, transform_indices = @transform_4, window_bounds = array<i64: 32, 32>}, {pipeline_mode = #tpu.pipeline_mode<synchronous>, transform_indices = @transform_5, window_bounds = array<i64: 1, 32>}, {pipeline_mode = #tpu.pipeline_mode<synchronous>, transform_indices = @transform_6, window_bounds = array<i64: 1, 32>}, {pipeline_mode = #tpu.pipeline_mode<synchronous>, transform_indices = @transform_7, window_bounds = array<i64: 1, 32>}, {transform_indices = @transform_8, window_bounds = array<i64: 1, 8, 32>}]} {
    %c0_i32 = arith.constant 0 : i32
    %0 = arith.cmpi eq, %arg2, %c0_i32 : i32
    %1 = arith.extui %0 : i1 to i32
    %c0_i32_0 = arith.constant 0 : i32
    %2 = arith.cmpi ne, %1, %c0_i32_0 : i32
    scf.if %2 {
      %cst_88 = arith.constant 0xFF800000 : f32
      %151 = vector.broadcast %cst_88 : f32 to vector<4x8x1xf32>
      %c0_89 = arith.constant 0 : index
      %c0_90 = arith.constant 0 : index
      %c0_91 = arith.constant 0 : index
      %152 = vector.load %arg12[%c0_89, %c0_90, %c0_91] : memref<4x8x1xf32, #tpu.memory_space<vmem>>, vector<4x8x1xf32>
      tpu.vector_store %arg12[%c0_89, %c0_90, %c0_91], %151 {strides = array<i32>} : memref<4x8x1xf32, #tpu.memory_space<vmem>>, vector<4x8x1xf32>,
      %cst_92 = arith.constant 0.000000e+00 : f32
      %153 = vector.broadcast %cst_92 : f32 to vector<4x8x1xf32>
      %c0_93 = arith.constant 0 : index
      %c0_94 = arith.constant 0 : index
      %c0_95 = arith.constant 0 : index
      %154 = vector.load %arg13[%c0_93, %c0_94, %c0_95] : memref<4x8x1xf32, #tpu.memory_space<vmem>>, vector<4x8x1xf32>
      tpu.vector_store %arg13[%c0_93, %c0_94, %c0_95], %153 {strides = array<i32>} : memref<4x8x1xf32, #tpu.memory_space<vmem>>, vector<4x8x1xf32>,
      %cst_96 = arith.constant 0.000000e+00 : f32
      %155 = vector.broadcast %cst_96 : f32 to vector<8x32xf32>
      %c0_97 = arith.constant 0 : index
      %c0_98 = arith.constant 0 : index
      %156 = vector.load %arg14[%c0_97, %c0_98] : memref<8x32xf32, #tpu.memory_space<vmem>>, vector<8x32xf32>
      tpu.vector_store %arg14[%c0_97, %c0_98], %155 {strides = array<i32>} : memref<8x32xf32, #tpu.memory_space<vmem>>, vector<8x32xf32>,
    } else {
    }
    %c0 = arith.constant 0 : index
    %c0_1 = arith.constant 0 : index
    %c0_2 = arith.constant 0 : index
    %3 = vector.load %arg3[%c0, %c0_1, %c0_2] : memref<1x8x96xf32, #tpu.memory_space<vmem>>, vector<1x8x96xf32>
    %4 = vector.shape_cast %3 : vector<1x8x96xf32> to vector<8x96xf32>
    %c0_3 = arith.constant 0 : index
    %c0_4 = arith.constant 0 : index
    %c0_5 = arith.constant 0 : index
    %5 = vector.load %arg4[%c0_3, %c0_4, %c0_5] : memref<1x8x96xf32, #tpu.memory_space<vmem>>, vector<1x8x96xf32>
    %6 = vector.shape_cast %5 : vector<1x8x96xf32> to vector<8x96xf32>
    %c0_6 = arith.constant 0 : index
    %c0_7 = arith.constant 0 : index
    %c0_8 = arith.constant 0 : index
    %7 = vector.load %arg5[%c0_6, %c0_7, %c0_8] : memref<1x8x96xf32, #tpu.memory_space<vmem>>, vector<1x8x96xf32>
    %8 = vector.shape_cast %7 : vector<1x8x96xf32> to vector<8x96xf32>
    %9 = vector.extract_strided_slice %4 {offsets = [0, 0], sizes = [8, 32], strides = [1, 1]} : vector<8x96xf32> to vector<8x32xf32>
    %10 = vector.extract_strided_slice %6 {offsets = [0, 32], sizes = [8, 32], strides = [1, 1]} : vector<8x96xf32> to vector<8x32xf32>
    %11 = vector.extract_strided_slice %8 {offsets = [0, 64], sizes = [8, 32], strides = [1, 1]} : vector<8x96xf32> to vector<8x32xf32>
    %12 = vector.extract_strided_slice %9 {offsets = [0, 0], sizes = [8, 8], strides = [1, 1]} : vector<8x32xf32> to vector<8x8xf32>
    %13 = vector.extract_strided_slice %10 {offsets = [0, 0], sizes = [8, 8], strides = [1, 1]} : vector<8x32xf32> to vector<8x8xf32>
    %14 = vector.extract_strided_slice %11 {offsets = [0, 0], sizes = [8, 8], strides = [1, 1]} : vector<8x32xf32> to vector<8x8xf32>
    %cst = arith.constant dense<0.000000e+00> : vector<8x8xf32>
    %15 = tpu.matmul %12, %13, %cst {dimension_numbers = #tpu.dot_dimension_numbers<[1], [1], [0], [0], [0, 0, 1, 0], [], []>} : vector<8x8xf32>, vector<8x8xf32>, vector<8x8xf32> -> vector<8x8xf32>
    %cst_9 = arith.constant 0.353553385 : f32
    %16 = vector.broadcast %cst_9 : f32 to vector<8x8xf32>
    %17 = arith.mulf %15, %16 : vector<8x8xf32>
    %c0_10 = arith.constant 0 : index
    %c0_11 = arith.constant 0 : index
    %c0_12 = arith.constant 0 : index
    %18 = vector.load %arg12[%c0_10, %c0_11, %c0_12] : memref<4x8x1xf32, #tpu.memory_space<vmem>>, vector<1x8x1xf32>
    %19 = vector.shape_cast %18 : vector<1x8x1xf32> to vector<8x1xf32>
    %cst_13 = arith.constant dense<0xFF800000> : vector<8xf32>
    %20 = vector.multi_reduction <maximumf>, %17, %cst_13 [1] : vector<8x8xf32> to vector<8xf32>
    %21 = vector.shape_cast %20 : vector<8xf32> to vector<8x1xf32>
    %22 = arith.maximumf %19, %21 : vector<8x1xf32>
    %23 = arith.subf %19, %22 : vector<8x1xf32>
    %24 = math.exp %23 : vector<8x1xf32>
    %25 = vector.broadcast %22 : vector<8x1xf32> to vector<8x8xf32>
    %26 = arith.subf %17, %25 : vector<8x8xf32>
    %27 = math.exp %26 : vector<8x8xf32>
    %c0_14 = arith.constant 0 : index
    %c0_15 = arith.constant 0 : index
    %c0_16 = arith.constant 0 : index
    %28 = vector.load %arg13[%c0_14, %c0_15, %c0_16] : memref<4x8x1xf32, #tpu.memory_space<vmem>>, vector<1x8x1xf32>
    %29 = vector.shape_cast %28 : vector<1x8x1xf32> to vector<8x1xf32>
    %30 = arith.mulf %24, %29 : vector<8x1xf32>
    %cst_17 = arith.constant dense<0.000000e+00> : vector<8xf32>
    %31 = vector.multi_reduction <add>, %27, %cst_17 [1] : vector<8x8xf32> to vector<8xf32>
    %32 = vector.shape_cast %31 : vector<8xf32> to vector<8x1xf32>
    %33 = arith.addf %30, %32 : vector<8x1xf32>
    %c0_18 = arith.constant 0 : index
    %c0_19 = arith.constant 0 : index
    %c0_20 = arith.constant 0 : index
    %34 = vector.load %arg13[%c0_18, %c0_19, %c0_20] : memref<4x8x1xf32, #tpu.memory_space<vmem>>, vector<1x8x1xf32>
    %35 = vector.shape_cast %34 : vector<1x8x1xf32> to vector<8x1xf32>
    %36 = vector.shape_cast %33 : vector<8x1xf32> to vector<1x8x1xf32>
    tpu.vector_store %arg13[%c0_18, %c0_19, %c0_20], %36 {strides = array<i32>} : memref<4x8x1xf32, #tpu.memory_space<vmem>>, vector<1x8x1xf32>,
    %cst_21 = arith.constant dense<0.000000e+00> : vector<8x8xf32>
    %37 = tpu.matmul %27, %14, %cst_21 {dimension_numbers = #tpu.dot_dimension_numbers<[1], [0], [0], [1], [0, 0, 1, 1], [], []>} : vector<8x8xf32>, vector<8x8xf32>, vector<8x8xf32> -> vector<8x8xf32>
    %c0_22 = arith.constant 0 : index
    %c0_23 = arith.constant 0 : index
    %38 = vector.load %arg14[%c0_22, %c0_23] : memref<8x32xf32, #tpu.memory_space<vmem>>, vector<8x8xf32>
    %39 = vector.broadcast %24 : vector<8x1xf32> to vector<8x8xf32>
    %40 = arith.mulf %39, %38 : vector<8x8xf32>
    %41 = arith.addf %40, %37 : vector<8x8xf32>
    %c0_24 = arith.constant 0 : index
    %c0_25 = arith.constant 0 : index
    %42 = vector.load %arg14[%c0_24, %c0_25] : memref<8x32xf32, #tpu.memory_space<vmem>>, vector<8x8xf32>
    tpu.vector_store %arg14[%c0_24, %c0_25], %41 {strides = array<i32>} : memref<8x32xf32, #tpu.memory_space<vmem>>, vector<8x8xf32>,
    %c0_26 = arith.constant 0 : index
    %c0_27 = arith.constant 0 : index
    %c0_28 = arith.constant 0 : index
    %43 = vector.load %arg12[%c0_26, %c0_27, %c0_28] : memref<4x8x1xf32, #tpu.memory_space<vmem>>, vector<1x8x1xf32>
    %44 = vector.shape_cast %43 : vector<1x8x1xf32> to vector<8x1xf32>
    %45 = vector.shape_cast %22 : vector<8x1xf32> to vector<1x8x1xf32>
    tpu.vector_store %arg12[%c0_26, %c0_27, %c0_28], %45 {strides = array<i32>} : memref<4x8x1xf32, #tpu.memory_space<vmem>>, vector<1x8x1xf32>,
    %46 = vector.extract_strided_slice %9 {offsets = [0, 8], sizes = [8, 8], strides = [1, 1]} : vector<8x32xf32> to vector<8x8xf32>
    %47 = vector.extract_strided_slice %10 {offsets = [0, 8], sizes = [8, 8], strides = [1, 1]} : vector<8x32xf32> to vector<8x8xf32>
    %48 = vector.extract_strided_slice %11 {offsets = [0, 8], sizes = [8, 8], strides = [1, 1]} : vector<8x32xf32> to vector<8x8xf32>
    %cst_29 = arith.constant dense<0.000000e+00> : vector<8x8xf32>
    %49 = tpu.matmul %46, %47, %cst_29 {dimension_numbers = #tpu.dot_dimension_numbers<[1], [1], [0], [0], [0, 0, 1, 0], [], []>} : vector<8x8xf32>, vector<8x8xf32>, vector<8x8xf32> -> vector<8x8xf32>
    %cst_30 = arith.constant 0.353553385 : f32
    %50 = vector.broadcast %cst_30 : f32 to vector<8x8xf32>
    %51 = arith.mulf %49, %50 : vector<8x8xf32>
    %c1 = arith.constant 1 : index
    %c0_31 = arith.constant 0 : index
    %c0_32 = arith.constant 0 : index
    %52 = vector.load %arg12[%c1, %c0_31, %c0_32] : memref<4x8x1xf32, #tpu.memory_space<vmem>>, vector<1x8x1xf32>
    %53 = vector.shape_cast %52 : vector<1x8x1xf32> to vector<8x1xf32>
    %cst_33 = arith.constant dense<0xFF800000> : vector<8xf32>
    %54 = vector.multi_reduction <maximumf>, %51, %cst_33 [1] : vector<8x8xf32> to vector<8xf32>
    %55 = vector.shape_cast %54 : vector<8xf32> to vector<8x1xf32>
    %56 = arith.maximumf %53, %55 : vector<8x1xf32>
    %57 = arith.subf %53, %56 : vector<8x1xf32>
    %58 = math.exp %57 : vector<8x1xf32>
    %59 = vector.broadcast %56 : vector<8x1xf32> to vector<8x8xf32>
    %60 = arith.subf %51, %59 : vector<8x8xf32>
    %61 = math.exp %60 : vector<8x8xf32>
    %c1_34 = arith.constant 1 : index
    %c0_35 = arith.constant 0 : index
    %c0_36 = arith.constant 0 : index
    %62 = vector.load %arg13[%c1_34, %c0_35, %c0_36] : memref<4x8x1xf32, #tpu.memory_space<vmem>>, vector<1x8x1xf32>
    %63 = vector.shape_cast %62 : vector<1x8x1xf32> to vector<8x1xf32>
    %64 = arith.mulf %58, %63 : vector<8x1xf32>
    %cst_37 = arith.constant dense<0.000000e+00> : vector<8xf32>
    %65 = vector.multi_reduction <add>, %61, %cst_37 [1] : vector<8x8xf32> to vector<8xf32>
    %66 = vector.shape_cast %65 : vector<8xf32> to vector<8x1xf32>
    %67 = arith.addf %64, %66 : vector<8x1xf32>
    %c1_38 = arith.constant 1 : index
    %c0_39 = arith.constant 0 : index
    %c0_40 = arith.constant 0 : index
    %68 = vector.load %arg13[%c1_38, %c0_39, %c0_40] : memref<4x8x1xf32, #tpu.memory_space<vmem>>, vector<1x8x1xf32>
    %69 = vector.shape_cast %68 : vector<1x8x1xf32> to vector<8x1xf32>
    %70 = vector.shape_cast %67 : vector<8x1xf32> to vector<1x8x1xf32>
    tpu.vector_store %arg13[%c1_38, %c0_39, %c0_40], %70 {strides = array<i32>} : memref<4x8x1xf32, #tpu.memory_space<vmem>>, vector<1x8x1xf32>,
    %cst_41 = arith.constant dense<0.000000e+00> : vector<8x8xf32>
    %71 = tpu.matmul %61, %48, %cst_41 {dimension_numbers = #tpu.dot_dimension_numbers<[1], [0], [0], [1], [0, 0, 1, 1], [], []>} : vector<8x8xf32>, vector<8x8xf32>, vector<8x8xf32> -> vector<8x8xf32>
    %c0_42 = arith.constant 0 : index
    %c8 = arith.constant 8 : index
    %72 = vector.load %arg14[%c0_42, %c8] : memref<8x32xf32, #tpu.memory_space<vmem>>, vector<8x8xf32>
    %73 = vector.broadcast %58 : vector<8x1xf32> to vector<8x8xf32>
    %74 = arith.mulf %73, %72 : vector<8x8xf32>
    %75 = arith.addf %74, %71 : vector<8x8xf32>
    %c0_43 = arith.constant 0 : index
    %c8_44 = arith.constant 8 : index
    %76 = vector.load %arg14[%c0_43, %c8_44] : memref<8x32xf32, #tpu.memory_space<vmem>>, vector<8x8xf32>
    tpu.vector_store %arg14[%c0_43, %c8_44], %75 {strides = array<i32>} : memref<8x32xf32, #tpu.memory_space<vmem>>, vector<8x8xf32>,
    %c1_45 = arith.constant 1 : index
    %c0_46 = arith.constant 0 : index
    %c0_47 = arith.constant 0 : index
    %77 = vector.load %arg12[%c1_45, %c0_46, %c0_47] : memref<4x8x1xf32, #tpu.memory_space<vmem>>, vector<1x8x1xf32>
    %78 = vector.shape_cast %77 : vector<1x8x1xf32> to vector<8x1xf32>
    %79 = vector.shape_cast %56 : vector<8x1xf32> to vector<1x8x1xf32>
    tpu.vector_store %arg12[%c1_45, %c0_46, %c0_47], %79 {strides = array<i32>} : memref<4x8x1xf32, #tpu.memory_space<vmem>>, vector<1x8x1xf32>,
    %80 = vector.extract_strided_slice %9 {offsets = [0, 16], sizes = [8, 8], strides = [1, 1]} : vector<8x32xf32> to vector<8x8xf32>
    %81 = vector.extract_strided_slice %10 {offsets = [0, 16], sizes = [8, 8], strides = [1, 1]} : vector<8x32xf32> to vector<8x8xf32>
    %82 = vector.extract_strided_slice %11 {offsets = [0, 16], sizes = [8, 8], strides = [1, 1]} : vector<8x32xf32> to vector<8x8xf32>
    %cst_48 = arith.constant dense<0.000000e+00> : vector<8x8xf32>
    %83 = tpu.matmul %80, %81, %cst_48 {dimension_numbers = #tpu.dot_dimension_numbers<[1], [1], [0], [0], [0, 0, 1, 0], [], []>} : vector<8x8xf32>, vector<8x8xf32>, vector<8x8xf32> -> vector<8x8xf32>
    %cst_49 = arith.constant 0.353553385 : f32
    %84 = vector.broadcast %cst_49 : f32 to vector<8x8xf32>
    %85 = arith.mulf %83, %84 : vector<8x8xf32>
    %c2 = arith.constant 2 : index
    %c0_50 = arith.constant 0 : index
    %c0_51 = arith.constant 0 : index
    %86 = vector.load %arg12[%c2, %c0_50, %c0_51] : memref<4x8x1xf32, #tpu.memory_space<vmem>>, vector<1x8x1xf32>
    %87 = vector.shape_cast %86 : vector<1x8x1xf32> to vector<8x1xf32>
    %cst_52 = arith.constant dense<0xFF800000> : vector<8xf32>
    %88 = vector.multi_reduction <maximumf>, %85, %cst_52 [1] : vector<8x8xf32> to vector<8xf32>
    %89 = vector.shape_cast %88 : vector<8xf32> to vector<8x1xf32>
    %90 = arith.maximumf %87, %89 : vector<8x1xf32>
    %91 = arith.subf %87, %90 : vector<8x1xf32>
    %92 = math.exp %91 : vector<8x1xf32>
    %93 = vector.broadcast %90 : vector<8x1xf32> to vector<8x8xf32>
    %94 = arith.subf %85, %93 : vector<8x8xf32>
    %95 = math.exp %94 : vector<8x8xf32>
    %c2_53 = arith.constant 2 : index
    %c0_54 = arith.constant 0 : index
    %c0_55 = arith.constant 0 : index
    %96 = vector.load %arg13[%c2_53, %c0_54, %c0_55] : memref<4x8x1xf32, #tpu.memory_space<vmem>>, vector<1x8x1xf32>
    %97 = vector.shape_cast %96 : vector<1x8x1xf32> to vector<8x1xf32>
    %98 = arith.mulf %92, %97 : vector<8x1xf32>
    %cst_56 = arith.constant dense<0.000000e+00> : vector<8xf32>
    %99 = vector.multi_reduction <add>, %95, %cst_56 [1] : vector<8x8xf32> to vector<8xf32>
    %100 = vector.shape_cast %99 : vector<8xf32> to vector<8x1xf32>
    %101 = arith.addf %98, %100 : vector<8x1xf32>
    %c2_57 = arith.constant 2 : index
    %c0_58 = arith.constant 0 : index
    %c0_59 = arith.constant 0 : index
    %102 = vector.load %arg13[%c2_57, %c0_58, %c0_59] : memref<4x8x1xf32, #tpu.memory_space<vmem>>, vector<1x8x1xf32>
    %103 = vector.shape_cast %102 : vector<1x8x1xf32> to vector<8x1xf32>
    %104 = vector.shape_cast %101 : vector<8x1xf32> to vector<1x8x1xf32>
    tpu.vector_store %arg13[%c2_57, %c0_58, %c0_59], %104 {strides = array<i32>} : memref<4x8x1xf32, #tpu.memory_space<vmem>>, vector<1x8x1xf32>,
    %cst_60 = arith.constant dense<0.000000e+00> : vector<8x8xf32>
    %105 = tpu.matmul %95, %82, %cst_60 {dimension_numbers = #tpu.dot_dimension_numbers<[1], [0], [0], [1], [0, 0, 1, 1], [], []>} : vector<8x8xf32>, vector<8x8xf32>, vector<8x8xf32> -> vector<8x8xf32>
    %c0_61 = arith.constant 0 : index
    %c16 = arith.constant 16 : index
    %106 = vector.load %arg14[%c0_61, %c16] : memref<8x32xf32, #tpu.memory_space<vmem>>, vector<8x8xf32>
    %107 = vector.broadcast %92 : vector<8x1xf32> to vector<8x8xf32>
    %108 = arith.mulf %107, %106 : vector<8x8xf32>
    %109 = arith.addf %108, %105 : vector<8x8xf32>
    %c0_62 = arith.constant 0 : index
    %c16_63 = arith.constant 16 : index
    %110 = vector.load %arg14[%c0_62, %c16_63] : memref<8x32xf32, #tpu.memory_space<vmem>>, vector<8x8xf32>
    tpu.vector_store %arg14[%c0_62, %c16_63], %109 {strides = array<i32>} : memref<8x32xf32, #tpu.memory_space<vmem>>, vector<8x8xf32>,
    %c2_64 = arith.constant 2 : index
    %c0_65 = arith.constant 0 : index
    %c0_66 = arith.constant 0 : index
    %111 = vector.load %arg12[%c2_64, %c0_65, %c0_66] : memref<4x8x1xf32, #tpu.memory_space<vmem>>, vector<1x8x1xf32>
    %112 = vector.shape_cast %111 : vector<1x8x1xf32> to vector<8x1xf32>
    %113 = vector.shape_cast %90 : vector<8x1xf32> to vector<1x8x1xf32>
    tpu.vector_store %arg12[%c2_64, %c0_65, %c0_66], %113 {strides = array<i32>} : memref<4x8x1xf32, #tpu.memory_space<vmem>>, vector<1x8x1xf32>,
    %114 = vector.extract_strided_slice %9 {offsets = [0, 24], sizes = [8, 8], strides = [1, 1]} : vector<8x32xf32> to vector<8x8xf32>
    %115 = vector.extract_strided_slice %10 {offsets = [0, 24], sizes = [8, 8], strides = [1, 1]} : vector<8x32xf32> to vector<8x8xf32>
    %116 = vector.extract_strided_slice %11 {offsets = [0, 24], sizes = [8, 8], strides = [1, 1]} : vector<8x32xf32> to vector<8x8xf32>
    %cst_67 = arith.constant dense<0.000000e+00> : vector<8x8xf32>
    %117 = tpu.matmul %114, %115, %cst_67 {dimension_numbers = #tpu.dot_dimension_numbers<[1], [1], [0], [0], [0, 0, 1, 0], [], []>} : vector<8x8xf32>, vector<8x8xf32>, vector<8x8xf32> -> vector<8x8xf32>
    %cst_68 = arith.constant 0.353553385 : f32
    %118 = vector.broadcast %cst_68 : f32 to vector<8x8xf32>
    %119 = arith.mulf %117, %118 : vector<8x8xf32>
    %c3 = arith.constant 3 : index
    %c0_69 = arith.constant 0 : index
    %c0_70 = arith.constant 0 : index
    %120 = vector.load %arg12[%c3, %c0_69, %c0_70] : memref<4x8x1xf32, #tpu.memory_space<vmem>>, vector<1x8x1xf32>
    %121 = vector.shape_cast %120 : vector<1x8x1xf32> to vector<8x1xf32>
    %cst_71 = arith.constant dense<0xFF800000> : vector<8xf32>
    %122 = vector.multi_reduction <maximumf>, %119, %cst_71 [1] : vector<8x8xf32> to vector<8xf32>
    %123 = vector.shape_cast %122 : vector<8xf32> to vector<8x1xf32>
    %124 = arith.maximumf %121, %123 : vector<8x1xf32>
    %125 = arith.subf %121, %124 : vector<8x1xf32>
    %126 = math.exp %125 : vector<8x1xf32>
    %127 = vector.broadcast %124 : vector<8x1xf32> to vector<8x8xf32>
    %128 = arith.subf %119, %127 : vector<8x8xf32>
    %129 = math.exp %128 : vector<8x8xf32>
    %c3_72 = arith.constant 3 : index
    %c0_73 = arith.constant 0 : index
    %c0_74 = arith.constant 0 : index
    %130 = vector.load %arg13[%c3_72, %c0_73, %c0_74] : memref<4x8x1xf32, #tpu.memory_space<vmem>>, vector<1x8x1xf32>
    %131 = vector.shape_cast %130 : vector<1x8x1xf32> to vector<8x1xf32>
    %132 = arith.mulf %126, %131 : vector<8x1xf32>
    %cst_75 = arith.constant dense<0.000000e+00> : vector<8xf32>
    %133 = vector.multi_reduction <add>, %129, %cst_75 [1] : vector<8x8xf32> to vector<8xf32>
    %134 = vector.shape_cast %133 : vector<8xf32> to vector<8x1xf32>
    %135 = arith.addf %132, %134 : vector<8x1xf32>
    %c3_76 = arith.constant 3 : index
    %c0_77 = arith.constant 0 : index
    %c0_78 = arith.constant 0 : index
    %136 = vector.load %arg13[%c3_76, %c0_77, %c0_78] : memref<4x8x1xf32, #tpu.memory_space<vmem>>, vector<1x8x1xf32>
    %137 = vector.shape_cast %136 : vector<1x8x1xf32> to vector<8x1xf32>
    %138 = vector.shape_cast %135 : vector<8x1xf32> to vector<1x8x1xf32>
    tpu.vector_store %arg13[%c3_76, %c0_77, %c0_78], %138 {strides = array<i32>} : memref<4x8x1xf32, #tpu.memory_space<vmem>>, vector<1x8x1xf32>,
    %cst_79 = arith.constant dense<0.000000e+00> : vector<8x8xf32>
    %139 = tpu.matmul %129, %116, %cst_79 {dimension_numbers = #tpu.dot_dimension_numbers<[1], [0], [0], [1], [0, 0, 1, 1], [], []>} : vector<8x8xf32>, vector<8x8xf32>, vector<8x8xf32> -> vector<8x8xf32>
    %c0_80 = arith.constant 0 : index
    %c24 = arith.constant 24 : index
    %140 = vector.load %arg14[%c0_80, %c24] : memref<8x32xf32, #tpu.memory_space<vmem>>, vector<8x8xf32>
    %141 = vector.broadcast %126 : vector<8x1xf32> to vector<8x8xf32>
    %142 = arith.mulf %141, %140 : vector<8x8xf32>
    %143 = arith.addf %142, %139 : vector<8x8xf32>
    %c0_81 = arith.constant 0 : index
    %c24_82 = arith.constant 24 : index
    %144 = vector.load %arg14[%c0_81, %c24_82] : memref<8x32xf32, #tpu.memory_space<vmem>>, vector<8x8xf32>
    tpu.vector_store %arg14[%c0_81, %c24_82], %143 {strides = array<i32>} : memref<8x32xf32, #tpu.memory_space<vmem>>, vector<8x8xf32>,
    %c3_83 = arith.constant 3 : index
    %c0_84 = arith.constant 0 : index
    %c0_85 = arith.constant 0 : index
    %145 = vector.load %arg12[%c3_83, %c0_84, %c0_85] : memref<4x8x1xf32, #tpu.memory_space<vmem>>, vector<1x8x1xf32>
    %146 = vector.shape_cast %145 : vector<1x8x1xf32> to vector<8x1xf32>
    %147 = vector.shape_cast %124 : vector<8x1xf32> to vector<1x8x1xf32>
    tpu.vector_store %arg12[%c3_83, %c0_84, %c0_85], %147 {strides = array<i32>} : memref<4x8x1xf32, #tpu.memory_space<vmem>>, vector<1x8x1xf32>,
    %c0_i32_86 = arith.constant 0 : i32
    %148 = arith.cmpi eq, %arg2, %c0_i32_86 : i32
    %149 = arith.extui %148 : i1 to i32
    %c0_i32_87 = arith.constant 0 : i32
    %150 = arith.cmpi ne, %149, %c0_i32_87 : i32
    scf.if %150 {
      %c0_88 = arith.constant 0 : index
      %c0_89 = arith.constant 0 : index
      %c0_90 = arith.constant 0 : index
      %151 = vector.load %arg13[%c0_88, %c0_89, %c0_90] : memref<4x8x1xf32, #tpu.memory_space<vmem>>, vector<1x8x1xf32>
      %152 = vector.shape_cast %151 : vector<1x8x1xf32> to vector<8x1xf32>
      %cst_91 = arith.constant 1.000000e+00 : f32
      %153 = vector.broadcast %cst_91 : f32 to vector<8x1xf32>
      %154 = arith.divf %153, %152 : vector<8x1xf32>
      %c0_92 = arith.constant 0 : index
      %c0_93 = arith.constant 0 : index
      %155 = vector.load %arg14[%c0_92, %c0_93] : memref<8x32xf32, #tpu.memory_space<vmem>>, vector<8x8xf32>
      %156 = vector.broadcast %154 : vector<8x1xf32> to vector<8x8xf32>
      %157 = arith.mulf %155, %156 : vector<8x8xf32>
      %c0_94 = arith.constant 0 : index
      %c0_95 = arith.constant 0 : index
      %158 = vector.load %arg14[%c0_94, %c0_95] : memref<8x32xf32, #tpu.memory_space<vmem>>, vector<8x8xf32>
      tpu.vector_store %arg14[%c0_94, %c0_95], %157 {strides = array<i32>} : memref<8x32xf32, #tpu.memory_space<vmem>>, vector<8x8xf32>,
      %c1_96 = arith.constant 1 : index
      %c0_97 = arith.constant 0 : index
      %c0_98 = arith.constant 0 : index
      %159 = vector.load %arg13[%c1_96, %c0_97, %c0_98] : memref<4x8x1xf32, #tpu.memory_space<vmem>>, vector<1x8x1xf32>
      %160 = vector.shape_cast %159 : vector<1x8x1xf32> to vector<8x1xf32>
      %cst_99 = arith.constant 1.000000e+00 : f32
      %161 = vector.broadcast %cst_99 : f32 to vector<8x1xf32>
      %162 = arith.divf %161, %160 : vector<8x1xf32>
      %c0_100 = arith.constant 0 : index
      %c8_101 = arith.constant 8 : index
      %163 = vector.load %arg14[%c0_100, %c8_101] : memref<8x32xf32, #tpu.memory_space<vmem>>, vector<8x8xf32>
      %164 = vector.broadcast %162 : vector<8x1xf32> to vector<8x8xf32>
      %165 = arith.mulf %163, %164 : vector<8x8xf32>
      %c0_102 = arith.constant 0 : index
      %c8_103 = arith.constant 8 : index
      %166 = vector.load %arg14[%c0_102, %c8_103] : memref<8x32xf32, #tpu.memory_space<vmem>>, vector<8x8xf32>
      tpu.vector_store %arg14[%c0_102, %c8_103], %165 {strides = array<i32>} : memref<8x32xf32, #tpu.memory_space<vmem>>, vector<8x8xf32>,
      %c2_104 = arith.constant 2 : index
      %c0_105 = arith.constant 0 : index
      %c0_106 = arith.constant 0 : index
      %167 = vector.load %arg13[%c2_104, %c0_105, %c0_106] : memref<4x8x1xf32, #tpu.memory_space<vmem>>, vector<1x8x1xf32>
      %168 = vector.shape_cast %167 : vector<1x8x1xf32> to vector<8x1xf32>
      %cst_107 = arith.constant 1.000000e+00 : f32
      %169 = vector.broadcast %cst_107 : f32 to vector<8x1xf32>
      %170 = arith.divf %169, %168 : vector<8x1xf32>
      %c0_108 = arith.constant 0 : index
      %c16_109 = arith.constant 16 : index
      %171 = vector.load %arg14[%c0_108, %c16_109] : memref<8x32xf32, #tpu.memory_space<vmem>>, vector<8x8xf32>
      %172 = vector.broadcast %170 : vector<8x1xf32> to vector<8x8xf32>
      %173 = arith.mulf %171, %172 : vector<8x8xf32>
      %c0_110 = arith.constant 0 : index
      %c16_111 = arith.constant 16 : index
      %174 = vector.load %arg14[%c0_110, %c16_111] : memref<8x32xf32, #tpu.memory_space<vmem>>, vector<8x8xf32>
      tpu.vector_store %arg14[%c0_110, %c16_111], %173 {strides = array<i32>} : memref<8x32xf32, #tpu.memory_space<vmem>>, vector<8x8xf32>,
      %c3_112 = arith.constant 3 : index
      %c0_113 = arith.constant 0 : index
      %c0_114 = arith.constant 0 : index
      %175 = vector.load %arg13[%c3_112, %c0_113, %c0_114] : memref<4x8x1xf32, #tpu.memory_space<vmem>>, vector<1x8x1xf32>
      %176 = vector.shape_cast %175 : vector<1x8x1xf32> to vector<8x1xf32>
      %cst_115 = arith.constant 1.000000e+00 : f32
      %177 = vector.broadcast %cst_115 : f32 to vector<8x1xf32>
      %178 = arith.divf %177, %176 : vector<8x1xf32>
      %c0_116 = arith.constant 0 : index
      %c24_117 = arith.constant 24 : index
      %179 = vector.load %arg14[%c0_116, %c24_117] : memref<8x32xf32, #tpu.memory_space<vmem>>, vector<8x8xf32>
      %180 = vector.broadcast %178 : vector<8x1xf32> to vector<8x8xf32>
      %181 = arith.mulf %179, %180 : vector<8x8xf32>
      %c0_118 = arith.constant 0 : index
      %c24_119 = arith.constant 24 : index
      %182 = vector.load %arg14[%c0_118, %c24_119] : memref<8x32xf32, #tpu.memory_space<vmem>>, vector<8x8xf32>
      tpu.vector_store %arg14[%c0_118, %c24_119], %181 {strides = array<i32>} : memref<8x32xf32, #tpu.memory_space<vmem>>, vector<8x8xf32>,
      %c0_120 = arith.constant 0 : index
      %c0_121 = arith.constant 0 : index
      %183 = vector.load %arg14[%c0_120, %c0_121] : memref<8x32xf32, #tpu.memory_space<vmem>>, vector<8x32xf32>
      %c0_122 = arith.constant 0 : index
      %c0_123 = arith.constant 0 : index
      %184 = vector.load %arg7[%c0_122, %c0_123] : memref<32x32xf32, #tpu.memory_space<vmem>>, vector<32x32xf32>
      %cst_124 = arith.constant dense<0.000000e+00> : vector<8x32xf32>
      %185 = tpu.matmul %183, %184, %cst_124 {dimension_numbers = #tpu.dot_dimension_numbers<[1], [0], [0], [1], [0, 0, 1, 1], [], []>} : vector<8x32xf32>, vector<32x32xf32>, vector<8x32xf32> -> vector<8x32xf32>
      %c0_125 = arith.constant 0 : index
      %c0_126 = arith.constant 0 : index
      %186 = vector.load %arg8[%c0_125, %c0_126] : memref<1x32xf32, #tpu.memory_space<vmem>>, vector<1x32xf32>
      %187 = vector.broadcast %186 : vector<1x32xf32> to vector<8x32xf32>
      %188 = arith.addf %185, %187 : vector<8x32xf32>
      %c0_127 = arith.constant 0 : index
      %c0_128 = arith.constant 0 : index
      %c0_129 = arith.constant 0 : index
      %189 = vector.load %arg6[%c0_127, %c0_128, %c0_129] : memref<1x8x32xf32, #tpu.memory_space<vmem>>, vector<1x8x32xf32>
      %190 = vector.shape_cast %189 : vector<1x8x32xf32> to vector<8x32xf32>
      %191 = arith.addf %188, %190 : vector<8x32xf32>
      %cst_130 = arith.constant dense<0.000000e+00> : vector<8xf32>
      %192 = vector.multi_reduction <add>, %191, %cst_130 [1] : vector<8x32xf32> to vector<8xf32>
      %193 = vector.shape_cast %192 : vector<8xf32> to vector<8x1xf32>
      %cst_131 = arith.constant 3.200000e+01 : f32
      %194 = vector.broadcast %cst_131 : f32 to vector<8x1xf32>
      %195 = arith.divf %193, %194 : vector<8x1xf32>
      %196 = vector.broadcast %195 : vector<8x1xf32> to vector<8x32xf32>
      %197 = arith.subf %191, %196 : vector<8x32xf32>
      %198 = arith.mulf %197, %197 : vector<8x32xf32>
      %cst_132 = arith.constant dense<0.000000e+00> : vector<8xf32>
      %199 = vector.multi_reduction <add>, %198, %cst_132 [1] : vector<8x32xf32> to vector<8xf32>
      %200 = vector.shape_cast %199 : vector<8xf32> to vector<8x1xf32>
      %cst_133 = arith.constant 3.200000e+01 : f32
      %201 = vector.broadcast %cst_133 : f32 to vector<8x1xf32>
      %202 = arith.divf %200, %201 : vector<8x1xf32>
      %203 = vector.broadcast %195 : vector<8x1xf32> to vector<8x32xf32>
      %204 = arith.subf %191, %203 : vector<8x32xf32>
      %cst_134 = arith.constant 9.99999974E-6 : f32
      %205 = vector.broadcast %cst_134 : f32 to vector<8x1xf32>
      %206 = arith.addf %202, %205 : vector<8x1xf32>
      %207 = math.rsqrt %206 : vector<8x1xf32>
      %208 = vector.broadcast %207 : vector<8x1xf32> to vector<8x32xf32>
      %209 = arith.mulf %204, %208 : vector<8x32xf32>
      %c0_135 = arith.constant 0 : index
      %c0_136 = arith.constant 0 : index
      %210 = vector.load %arg9[%c0_135, %c0_136] : memref<1x32xf32, #tpu.memory_space<vmem>>, vector<1x32xf32>
      %211 = vector.broadcast %210 : vector<1x32xf32> to vector<8x32xf32>
      %212 = arith.mulf %209, %211 : vector<8x32xf32>
      %c0_137 = arith.constant 0 : index
      %c0_138 = arith.constant 0 : index
      %213 = vector.load %arg10[%c0_137, %c0_138] : memref<1x32xf32, #tpu.memory_space<vmem>>, vector<1x32xf32>
      %214 = vector.broadcast %213 : vector<1x32xf32> to vector<8x32xf32>
      %215 = arith.addf %212, %214 : vector<8x32xf32>
      %c0_139 = arith.constant 0 : index
      %c0_140 = arith.constant 0 : index
      %c0_141 = arith.constant 0 : index
      %216 = vector.load %arg11[%c0_139, %c0_140, %c0_141] : memref<1x8x32xf32, #tpu.memory_space<vmem>>, vector<1x8x32xf32>
      %217 = vector.shape_cast %216 : vector<1x8x32xf32> to vector<8x32xf32>
      %218 = vector.shape_cast %215 : vector<8x32xf32> to vector<1x8x32xf32>
      tpu.vector_store %arg11[%c0_139, %c0_140, %c0_141], %218 {strides = array<i32>} : memref<1x8x32xf32, #tpu.memory_space<vmem>>, vector<1x8x32xf32>,
    } else {
    }
    return
  }
  func.func @transform_0(%arg0: i32, %arg1: i32, %arg2: i32) -> (i32, i32, i32) {
    %c0_i32 = arith.constant 0 : i32
    %c0_i32_0 = arith.constant 0 : i32
    return %arg0, %arg1, %c0_i32 : i32, i32, i32
  }
  func.func @transform_1(%arg0: i32, %arg1: i32, %arg2: i32) -> (i32, i32, i32) {
    %c0_i32 = arith.constant 0 : i32
    %c0_i32_0 = arith.constant 0 : i32
    return %arg0, %arg2, %c0_i32 : i32, i32, i32
  }
  func.func @transform_2(%arg0: i32, %arg1: i32, %arg2: i32) -> (i32, i32, i32) {
    %c0_i32 = arith.constant 0 : i32
    %c0_i32_0 = arith.constant 0 : i32
    return %arg0, %arg2, %c0_i32 : i32, i32, i32
  }
  func.func @transform_3(%arg0: i32, %arg1: i32, %arg2: i32) -> (i32, i32, i32) {
    %c0_i32 = arith.constant 0 : i32
    %c0_i32_0 = arith.constant 0 : i32
    return %arg0, %arg1, %c0_i32 : i32, i32, i32
  }
  func.func @transform_4(%arg0: i32, %arg1: i32, %arg2: i32) -> (i32, i32) {
    %c0_i32 = arith.constant 0 : i32
    %c0_i32_0 = arith.constant 0 : i32
    %c0_i32_1 = arith.constant 0 : i32
    return %c0_i32, %c0_i32_0 : i32, i32
  }
  func.func @transform_5(%arg0: i32, %arg1: i32, %arg2: i32) -> (i32, i32) {
    %c0_i32 = arith.constant 0 : i32
    %c0_i32_0 = arith.constant 0 : i32
    %c0_i32_1 = arith.constant 0 : i32
    return %c0_i32, %c0_i32_0 : i32, i32
  }
  func.func @transform_6(%arg0: i32, %arg1: i32, %arg2: i32) -> (i32, i32) {
    %c0_i32 = arith.constant 0 : i32
    %c0_i32_0 = arith.constant 0 : i32
    %c0_i32_1 = arith.constant 0 : i32
    return %c0_i32, %c0_i32_0 : i32, i32
  }
  func.func @transform_7(%arg0: i32, %arg1: i32, %arg2: i32) -> (i32, i32) {
    %c0_i32 = arith.constant 0 : i32
    %c0_i32_0 = arith.constant 0 : i32
    %c0_i32_1 = arith.constant 0 : i32
    return %c0_i32, %c0_i32_0 : i32, i32
  }
  func.func @transform_8(%arg0: i32, %arg1: i32, %arg2: i32) -> (i32, i32, i32) {
    %c0_i32 = arith.constant 0 : i32
    %c0_i32_0 = arith.constant 0 : i32
    return %arg0, %arg1, %c0_i32 : i32, i32, i32
  }
}

</mosaic_0001>

<bundles_post_ra>
// kernel: encoder.8
= control target key start
LH: loop header
LB: loop body
LE: loop exit
PB: predicated region body
PF: predicated region fallthrough
CT: control target
= control target key end

     0   :  { %8 = vsyncpa [#allocation4], 0  ;;  %s226_s0 = inlined_call_operand.vmem [shape: f32[16,32], index: 0, kind: input, shape index: {}]   ;;  %s227_s1 = inlined_call_operand.hbm [shape: f32[32,96], index: 1, kind: input, shape index: {}]   ;;  %s228_s2 = inlined_call_operand.hbm [shape: f32[1,96], index: 2, kind: input, shape index: {}]   ;;  %s229_s3 = inlined_call_operand.vmem [shape: f32[16,96], index: 3, kind: output, shape index: {}]  }
   0x1   :  { %s16_s14 = sshll.u32 %s227_s1, 4  ;;  %s17_s14 = int_to_ptr.hbm [resolvable:$true] %s16_s14 }
   0x2   :  { %9 = vsyncpa [#allocation6], 0  ;;  %s177_s15 = smov [#allocation3]   ;;  %s30_s19 = sshll.u32 %s228_s2, 4  ;;  %s31_s19 = int_to_ptr.hbm [resolvable:$true] %s30_s19 }
   0x3   :  { %s18_s16 = sshll.u32 %s177_s15, 4  ;;  %s178_s20 = smov 128   ;;  %s19_s16 = int_to_ptr.vmem [resolvable:$true] %s18_s16 }
   0x4   :  { %s179_s21 = smov 8   ;;  %s180_s22 = smov [#allocation5]  }
   0x5   :  { %24 = dma.hbm_to_vmem [thread:$0]  %s17_s14, 512, %s19_s16, [#allocation4], %s178_s20, %s178_s20, %s179_s21  }
   0x6   :  { %s32_s23 = sshll.u32 %s180_s22, 4  ;;  %s33_s23 = int_to_ptr.vmem [resolvable:$true] %s32_s23 }
   0x7   :  { %35 = dma.hbm_to_vmem [thread:$0]  %s31_s19, 16, %s33_s23, [#allocation6]  }
   0x8   :  { %173 = dma.done.wait [#allocation4], 512  }
   0x9   :  { %174 = vsyncadd [#allocation4], 4294966784 }
   0xa   :  { %175 = dma.done.wait [#allocation6], 16  }
   0xb   :  { %176 = vsyncadd [#allocation6], 4294967280  ;;  %vm48_vm0 = vcmask 785408   ;;  %v181_v0 = vmov 0.0   ;;  %v58_v1 = vld [vmem:[#allocation3 + $0x18] sm:$0xff]  ;;  %v57_v2 = vld [vmem:[#allocation3 + $0x10] sm:$0xff] }
   0xc   :  { %49 = vst.msk [vmem:[#allocation2] sm:$0xff] %vm48_vm0, %v181_v0  ;;  %78 = vmatpush.msra.mxu0 %v58_v1  ;;  %115 = vmatpush.msra.mxu1 %v58_v1  ;;  %v56_v3 = vld [vmem:[#allocation3 + $0x8] sm:$0xff]  ;;  %v55_v4 = vld [vmem:[#allocation3] sm:$0xff]  ;;  %v53_v5 = vld [vmem:[%s226_s0] sm:$0xff]  ;;  %vm59_vm1 = vcmask 261120  }
   0xd   :  { %50 = vst.msk [vmem:[#allocation2 + $0x8] sm:$0xff] %vm48_vm0, %v181_v0  ;;  %v54_v6 = vld [vmem:[%s226_s0 + $0x8] sm:$0xff]  ;;  %v124_v13 = vld [vmem:[#allocation5] ss:$0 sm:$0xff] }
   0xe   :  { %79 = vmatpush.msra.mxu0 %v57_v2  ;;  %116 = vmatpush.msra.mxu1 %v57_v2 }
  0x10   :  { %80 = vmatpush.msra.mxu0 %v56_v3  ;;  %117 = vmatpush.msra.mxu1 %v56_v3 }
  0x12   :  { %81 = vmatpush.msra.mxu0 %v55_v4  ;;  %118 = vmatpush.msra.mxu1 %v55_v4 }
  0x13   :  { %113 = vmatmul.msk.f32.vlgmr.msra.gmra.mxu0 %vm59_vm1, %v53_v5  ;;  %114 = vmatmul.msk.f32.vlgmr.msra.gmra.mxu1 %vm59_vm1, %v54_v6  ;;  %v51_v7 = vld [vmem:[#allocation2] sm:$0xff] }
  0x14   :  { %v52_v8 = vld [vmem:[#allocation2 + $0x8] sm:$0xff] }
  0x90   :  { %v83_v9 = vpop.f32.mrf.mxu0  ;;  %v86_v10 = vpop.f32.mrf.mxu1 }
  0x91   :  { %v89_v11 = vadd.f32 %v83_v9, %v51_v7  ;;  %v90_v12 = vadd.f32 %v86_v10, %v52_v8 }
  0x93   :  { %92 = vst.msk [vmem:[#allocation2] sm:$0xff] %vm48_vm0, %v89_v11 }
  0x94   :  { %93 = vst.msk [vmem:[#allocation2 + $0x8] sm:$0xff] %vm48_vm0, %v90_v12 }
  0x9a   :  { %v97_v14 = vld [vmem:[#allocation2] sm:$0xff] }
  0x9b   :  { %v103_v15 = vadd.f32 %v124_v13, %v97_v14  ;;  %v98_v16 = vld [vmem:[#allocation2 + $0x8] sm:$0xff] }
  0x9c   :  { %v104_v17 = vadd.f32 %v124_v13, %v98_v16 }
  0x9d   :  { %105 = vst.msk [vmem:[%s229_s3] sm:$0xff] %vm48_vm0, %v103_v15 }
  0x9e   :  { %106 = vst.msk [vmem:[%s229_s3 + $0x8] sm:$0xff] %vm48_vm0, %v104_v17 }
  0x9f   :  { %111 = vsyncpa [#allocation4], 1 }
  0xa0   :  { %112 = vsyncpa [#allocation6], 1 }

// kernel: encoder.10
= control target key start
LH: loop header
LB: loop body
LE: loop exit
PB: predicated region body
PF: predicated region fallthrough
CT: control target
= control target key end

     0   :  { %8 = vsyncpa [#allocation4], 0  ;;  %s228_s0 = inlined_call_operand.vmem [shape: f32[16,32], index: 0, kind: input, shape index: {}]   ;;  %s229_s1 = inlined_call_operand.hbm [shape: f32[32,64], index: 1, kind: input, shape index: {}]   ;;  %s230_s2 = inlined_call_operand.hbm [shape: f32[1,64], index: 2, kind: input, shape index: {}]   ;;  %s231_s3 = inlined_call_operand.vmem [shape: f32[16,64], index: 3, kind: output, shape index: {}]  }
   0x1   :  { %s16_s14 = sshll.u32 %s229_s1, 4  ;;  %s17_s14 = int_to_ptr.hbm [resolvable:$true] %s16_s14 }
   0x2   :  { %9 = vsyncpa [#allocation6], 0  ;;  %s179_s15 = smov [#allocation3]   ;;  %s30_s19 = sshll.u32 %s230_s2, 4  ;;  %s31_s19 = int_to_ptr.hbm [resolvable:$true] %s30_s19 }
   0x3   :  { %s18_s16 = sshll.u32 %s179_s15, 4  ;;  %s180_s20 = smov 128   ;;  %s19_s16 = int_to_ptr.vmem [resolvable:$true] %s18_s16 }
   0x4   :  { %s181_s21 = smov 8   ;;  %s182_s22 = smov [#allocation5]  }
   0x5   :  { %24 = dma.hbm_to_vmem [thread:$0]  %s17_s14, 512, %s19_s16, [#allocation4], %s180_s20, %s180_s20, %s181_s21  }
   0x6   :  { %s32_s23 = sshll.u32 %s182_s22, 4  ;;  %s33_s23 = int_to_ptr.vmem [resolvable:$true] %s32_s23 }
   0x7   :  { %35 = dma.hbm_to_vmem [thread:$0]  %s31_s19, 16, %s33_s23, [#allocation6]  }
   0x8   :  { %175 = dma.done.wait [#allocation4], 512  }
   0x9   :  { %176 = vsyncadd [#allocation4], 4294966784 }
   0xa   :  { %177 = dma.done.wait [#allocation6], 16  }
   0xb   :  { %178 = vsyncadd [#allocation6], 4294967280  ;;  %vm48_vm0 = vcmask 523264   ;;  %v183_v0 = vmov 0.0   ;;  %v58_v1 = vld [vmem:[#allocation3 + $0x18] sm:$0xff]  ;;  %v57_v2 = vld [vmem:[#allocation3 + $0x10] sm:$0xff] }
   0xc   :  { %49 = vst.msk [vmem:[#allocation2] sm:$0xff] %vm48_vm0, %v183_v0  ;;  %78 = vmatpush.msra.mxu0 %v58_v1  ;;  %117 = vmatpush.msra.mxu1 %v58_v1  ;;  %v56_v3 = vld [vmem:[#allocation3 + $0x8] sm:$0xff]  ;;  %v55_v4 = vld [vmem:[#allocation3] sm:$0xff]  ;;  %v53_v5 = vld [vmem:[%s228_s0] sm:$0xff]  ;;  %vm59_vm1 = vcmask 261120  }
   0xd   :  { %50 = vst.msk [vmem:[#allocation2 + $0x8] sm:$0xff] %vm48_vm0, %v183_v0  ;;  %v54_v6 = vld [vmem:[%s228_s0 + $0x8] sm:$0xff]  ;;  %v126_v13 = vld [vmem:[#allocation5] ss:$0 sm:$0xff] }
   0xe   :  { %79 = vmatpush.msra.mxu0 %v57_v2  ;;  %118 = vmatpush.msra.mxu1 %v57_v2 }
  0x10   :  { %80 = vmatpush.msra.mxu0 %v56_v3  ;;  %119 = vmatpush.msra.mxu1 %v56_v3 }
  0x12   :  { %81 = vmatpush.msra.mxu0 %v55_v4  ;;  %120 = vmatpush.msra.mxu1 %v55_v4 }
  0x13   :  { %115 = vmatmul.msk.f32.vlgmr.msra.gmra.mxu0 %vm59_vm1, %v53_v5  ;;  %116 = vmatmul.msk.f32.vlgmr.msra.gmra.mxu1 %vm59_vm1, %v54_v6  ;;  %v51_v7 = vld [vmem:[#allocation2] sm:$0xff] }
  0x14   :  { %v52_v8 = vld [vmem:[#allocation2 + $0x8] sm:$0xff] }
  0x90   :  { %v83_v9 = vpop.f32.mrf.mxu0  ;;  %v86_v10 = vpop.f32.mrf.mxu1 }
  0x91   :  { %v89_v11 = vadd.f32 %v83_v9, %v51_v7  ;;  %v90_v12 = vadd.f32 %v86_v10, %v52_v8 }
  0x93   :  { %92 = vst.msk [vmem:[#allocation2] sm:$0xff] %vm48_vm0, %v89_v11 }
  0x94   :  { %93 = vst.msk [vmem:[#allocation2 + $0x8] sm:$0xff] %vm48_vm0, %v90_v12 }
  0x9a   :  { %v97_v14 = vld [vmem:[#allocation2] sm:$0xff] }
  0x9b   :  { %v103_v15 = vadd.f32 %v126_v13, %v97_v14  ;;  %v98_v16 = vld [vmem:[#allocation2 + $0x8] sm:$0xff] }
  0x9c   :  { %v104_v17 = vadd.f32 %v126_v13, %v98_v16 }
  0x9d   :  { %v105_v18 = vmax.f32 %v103_v15, 0.0 }
  0x9e   :  { %v106_v19 = vmax.f32 %v104_v17, 0.0 }
  0x9f   :  { %107 = vst.msk [vmem:[%s231_s3] sm:$0xff] %vm48_vm0, %v105_v18 }
  0xa0   :  { %108 = vst.msk [vmem:[%s231_s3 + $0x8] sm:$0xff] %vm48_vm0, %v106_v19 }
  0xa1   :  { %113 = vsyncpa [#allocation4], 1 }
  0xa2   :  { %114 = vsyncpa [#allocation6], 1 }

// kernel: encoder.9
= control target key start
LH: loop header
LB: loop body
LE: loop exit
PB: predicated region body
PF: predicated region fallthrough
CT: control target
= control target key end

     0   :  { %13 = vsyncpa [#allocation6], 0  ;;  %s1800_s0 = inlined_call_operand.vmem [shape: f32[2,8,96], index: 0, kind: input, shape index: {}, may-alias: {0,1,2}]   ;;  %s1801_s1 = inlined_call_operand.vmem [shape: f32[2,8,96], index: 1, kind: input, shape index: {}, may-alias: {0,1,2}]   ;;  %s1802_s2 = inlined_call_operand.vmem [shape: f32[2,8,96], index: 2, kind: input, shape index: {}, may-alias: {0,1,2}]   ;;  %s1803_s3 = inlined_call_operand.vmem [shape: f32[2,8,32], index: 3, kind: input, shape index: {}]   ;;  %s1804_s4 = inlined_call_operand.hbm [shape: f32[32,32], index: 4, kind: input, shape index: {}]   ;;  %s1805_s5 = inlined_call_operand.hbm [shape: f32[1,32], index: 5, kind: input, shape index: {}]   ;;  %s1806_s6 = inlined_call_operand.hbm [shape: f32[1,32], index: 6, kind: input, shape index: {}]   ;;  %s1807_s7 = inlined_call_operand.hbm [shape: f32[1,32], index: 7, kind: input, shape index: {}]   ;;  %s1808_s8 = inlined_call_operand.vmem [shape: f32[2,8,32], index: 8, kind: output, shape index: {}]  }
   0x1   :  { %14 = vsyncpa [#allocation8], 0 }
   0x2   :  { %15 = vsyncpa [#allocation11], 0  ;;  %s1593_s27 = smov 0   ;;  %s1595_s28 = smov 0  }
   0x3   :  { %s1597_s29 = smov 0  }
   0x4 LB: > { %s295_s10 = sshll.u32 %s1805_s5, 4  ;;  %s1216_s11 = sadd.s32 4294967295, %s1522_s29   ;;  %s1522_s29 = sphi %s1597_s29, %s21_s29   ;;  %s1518_s28 = sphi %s1595_s28, %s1813_s28   ;;  %s1514_s27 = sphi %s1593_s27, %s1812_s27   ;;  %s296_s10 = int_to_ptr.hbm [resolvable:$true] %s295_s10 }
   0x5   : > { %p1218_p0 = scmp.ge.s32.totalorder %s1522_s29, 1  ;;  %p269_p1 = scmp.lt.s32.totalorder %s1522_s29, 3 }
   0x6   : > { %p1614_p2 = scmp.eq.s32.totalorder %s1216_s11, 0  ;;  %s1524_s14 = smov [#allocation7]  }
   0x7   : > { %p1618_p3 = pnand %p1218_p0, %p269_p1  ;;  %s297_s15 = sshll.u32 %s1524_s14, 4  ;;  %s298_s15 = int_to_ptr.vmem [resolvable:$true] %s297_s15 }
   0x8   : > { %s40_s17 = sadd.s32 1, %s1518_s28  ;;  %s280_s20 = sshll.u32 %s1804_s4, 4  ;;  %s281_s20 = int_to_ptr.hbm [resolvable:$true] %s280_s20 }
   0x9   : > { %p1265_p4 = pneg %p1618_p3  ;;  %p42_p6 = scmp.ge.s32.totalorder %s40_s17, 2 }
   0xa   : > { %s1525_s21 = smov [#allocation5]   ;;  %s307_s25 = sshll.u32 %s1806_s6, 4  ;;  %s308_s25 = int_to_ptr.hbm [resolvable:$true] %s307_s25 }
   0xb   : > { %p1626_p5 = pnand %p1614_p2, %p1265_p4  ;;  %s1815_s17 = smov (%p42_p6, %s40_s17), 0 }
   0xc   : > { %s282_s22 = sshll.u32 %s1525_s21, 4  ;;  %s1526_s26 = smov 128   ;;  %s283_s22 = int_to_ptr.vmem [resolvable:$true] %s282_s22 }
   0xd   : > { %1271 = dma.hbm_to_vmem [thread:$0]  (!%p1626_p5), %s296_s10, 16, %s298_s15, [#allocation8]  }
   0xe   : > { %s1527_s30 = smov 8   ;;  %s1528_s9 = smov [#allocation9]  }
   0xf   : > { %1268 = dma.hbm_to_vmem [thread:$0]  (!%p1626_p5), %s281_s20, 512, %s283_s22, [#allocation6], %s1526_s26, %s1526_s26, %s1527_s30  }
  0x10   : > { %s309_s11 = sshll.u32 %s1528_s9, 4  ;;  %s319_s10 = sshll.u32 %s1807_s7, 4  ;;  %s310_s11 = int_to_ptr.vmem [resolvable:$true] %s309_s11  ;;  %s320_s10 = int_to_ptr.hbm [resolvable:$true] %s319_s10 }
  0x11   : > { %1274 = dma.hbm_to_vmem [thread:$0]  (!%p1626_p5), %s308_s25, 16, %s310_s11, [#allocation8]  }
  0x12   : > { %s1529_s15 = smov [#allocation10]   ;;  %374 = sbr.rel (%p1618_p3) target bundleno = 1615 (0x64f), region = 52 }
  0x13   : > { %s321_s19 = sshll.u32 %s1529_s15, 4  ;;  %s322_s19 = int_to_ptr.vmem [resolvable:$true] %s321_s19 }
  0x14   : > { %1277 = dma.hbm_to_vmem [thread:$0]  (!%p1626_p5), %s320_s10, 16, %s322_s19, [#allocation11]  }
  0x17   : > { %1501 = dma.done.wait (%p1614_p2), [#allocation6], 512  }
  0x18   : > { %1503 = vsyncadd (%p1614_p2), [#allocation6], 4294966784 }
  0x19   : > { %1505 = dma.done.wait (%p1614_p2), [#allocation8], 32  }
  0x1a   : > { %1507 = vsyncadd (%p1614_p2), [#allocation8], 4294967264 }
  0x1b   : > { %1509 = dma.done.wait (%p1614_p2), [#allocation11], 16  }
  0x1c   : > { %1511 = vsyncadd (%p1614_p2), [#allocation11], 4294967280  ;;  %p449_p7 = scmp.lt.s32.totalorder %s1514_s27, 1  ;;  %s1530_s22 = smov 96   ;;  %vm505_vm0 = vcmask 64512   ;;  %vm488_vm1 = vcmask 7168  }
  0x1d   : > { %s1532_s25 = smov 120   ;;  %v1533_v3 = vmov -inf   ;;  %v1534_v7 = vmov 0   ;;  %v1535_v8 = vmov 0.0   ;;  %s1536_s11 = smov 64   ;;  %vm497_vm2 = vcmask 261120  }
  0x1e   : > { %s1817_s27 = smov (!%p449_p7, %s1514_s27), 1  ;;  %489 = vst.msk [vmem:[#allocation2] sm:$0xff] %vm488_vm1, %v1533_v3  ;;  %1334 = vset.pattern.permute.xlu1 %v1534_v7  ;;  %1335 = vset.pattern.permute.xlu0 %v1534_v7  ;;  %s1537_s14 = smov 112   ;;  %vm685_vm7 = vcmask 130112  }
  0x1f   : > { %s1666_s13 = sshll.u32 %s1817_s27, 3  ;;  %s1531_s27 = smov 88   ;;  %490 = vst.msk [vmem:[#allocation2 + $0x8] sm:$0xff] %vm488_vm1, %v1533_v3  ;;  %1336 = vset.pattern.permute.xlu2 %v1534_v7 }
  0x20   : > { %s462_s21 = scalar_lea.vmem %s1801_s1, %s1666_s13  ;;  %s455_s12 = scalar_lea.vmem %s1800_s0, %s1666_s13  ;;  %491 = vst.msk [vmem:[#allocation2 + $0x10] sm:$0xff] %vm488_vm1, %v1533_v3 }
  0x21   : > { %v500_v0 = vld [vmem:[%s462_s21] sm:$0xff]  ;;  %492 = vst.msk [vmem:[#allocation2 + $0x18] sm:$0xff] %vm488_vm1, %v1533_v3  ;;  %s469_s9 = scalar_lea.vmem %s1802_s2, %s1666_s13  ;;  %s1538_s18 = smov 104  }
  0x22   : > { %503 = vrot.lane.b32.xlu0 %v500_v0, %s1530_s22  ;;  %v499_v2 = vld [vmem:[%s455_s12] sm:$0xff]  ;;  %595 = vrot.lane.b32.xlu1 %v500_v0, %s1531_s27  ;;  %493 = vst.msk [vmem:[#allocation3] sm:$0xff] %vm488_vm1, %v1535_v8  ;;  %s1539_s10 = smov 80   ;;  %s1540_s15 = smov 72  }
  0x23   : > { %593 = vrot.lane.b32.xlu2 %v499_v2, %s1532_s25  ;;  %494 = vst.msk [vmem:[#allocation3 + $0x8] sm:$0xff] %vm488_vm1, %v1535_v8  ;;  %v1695_v10 = vld [vmem:[%s469_s9] sm:$0xff]  ;;  %s1541_s19 = smov 56   ;;  %s1542_s16 = smov 48  }
  0x24   : > { %495 = vst.msk [vmem:[#allocation3 + $0x10] sm:$0xff] %vm488_vm1, %v1535_v8  ;;  %s1543_s20 = smov 40   ;;  %s1544_s21 = smov 8  }
  0x25   : > { %496 = vst.msk [vmem:[#allocation3 + $0x18] sm:$0xff] %vm488_vm1, %v1535_v8  ;;  %v1700_v12 = vld [vmem:[#allocation2] sm:$0xff]  ;;  %s1545_s22 = smov 24   ;;  %s1546_s23 = smov 16  }
  0x26   : > { %v623_v28 = vld [vmem:[#allocation2 + $0x8] sm:$0xff]  ;;  %498 = vst.msk [vmem:[#allocation4] sm:$0xff] %vm497_vm2, %v1535_v8  ;;  %s476_s27 = scalar_lea.vmem %s1803_s3, %s1666_s13  ;;  %s483_s30 = scalar_lea.vmem %s1808_s8, %s1666_s13 }
  0x27   : > { %v1724_v40 = vld [vmem:[#allocation2 + $0x10] sm:$0xff] }
  0x28   : > { %v1726_v41 = vld [vmem:[#allocation2 + $0x18] sm:$0xff] }
  0x29   : > { %v548_v59 = vld [vmem:[#allocation3] sm:$0xff] }
  0x2b   : > { %557 = vrot.lane.b32.xlu2 %v1695_v10, %s1536_s11 }
  0x33   : > { %688 = vrot.lane.b32.xlu2 %v499_v2, %s1537_s14 }
  0x3b   : > { %783 = vrot.lane.b32.xlu2 %v499_v2, %s1538_s18 }
  0x7d   : > { %v594_v11 = vpop.permute.xlu2 %593 }
  0x85   : > { %v558_v16 = vpop.permute.xlu2 %557 }
  0x86   : > { %578 = vmatpush.msra.mxu1 %v558_v16 }
  0x8d   : > { %v689_v22 = vpop.permute.xlu2 %688 }
  0x94   : > { %v504_v1 = vpop.permute.xlu0 %503  ;;  %v596_v9 = vpop.permute.xlu1 %595 }
  0x95   : > { %1234 = vmatpush.xpose.msk.msra.mxu0 %vm505_vm0, %v504_v1  ;;  %1237 = vmatpush.xpose.msk.msra.mxu2 %vm505_vm0, %v596_v9  ;;  %v784_v27 = vpop.permute.xlu2 %783 }
  0x98   : > { %1235 = vmatmul.msk.f32.vlgmr.msra.gmra.mxu0 %vm505_vm0, %v499_v2  ;;  %1238 = vmatmul.msk.f32.vlgmr.msra.gmra.mxu2 %vm505_vm0, %v594_v11 }
 0x115   : > { %v528_v4 = vpop.f32.mrf.mxu0 }
 0x116   : > { %v531_v5 = vmul.f32 0.35355338, %v528_v4 }
 0x118   : > { %v533_v6 = vsel %vm505_vm0, %v531_v5, -inf }
 0x119   : > { %534 = vmax.xlane.f32.xlu0 %v533_v6 }
 0x11b   : > { %v618_v20 = vpop.f32.mrf.mxu2 }
 0x11c   : > { %v621_v21 = vmul.f32 0.35355338, %v618_v20 }
 0x11e   : > { %v624_v24 = vsel %vm505_vm0, %v621_v21, -inf }
 0x18c   : > { %v535_v13 = vpop.xlane.xlu0 %534 }
 0x18d   : > { %v1703_v14 = vmax.f32 %v1700_v12, %v535_v13 }
 0x18f   : > { %v537_v15 = vsub.f32 %v1700_v12, %v1703_v14  ;;  %592 = vst.msk [vmem:[#allocation2] sm:$0xff] %vm488_vm1, %v1703_v14  ;;  %542 = vperm.xlu1 %1334, %v1703_v14  }
 0x191   : > { %v538_v48 = vmul.f32 1.442695, %v537_v15 }
 0x197   : > { %690 = vrot.lane.b32.xlu1 %v500_v0, %s1539_s10 }
 0x19f   : > { %785 = vrot.lane.b32.xlu1 %v500_v0, %s1540_s15 }
 0x1c9   : > { %625 = vmax.xlane.f32.xlu1 %v624_v24 }
 0x201   : > { %v543_v17 = vpop.permute.xlu1 %542 }
 0x202   : > { %v545_v18 = vsub.f32 %v531_v5, %v543_v17 }
 0x204   : > { %v546_v19 = vmul.f32 1.442695, %v545_v18 }
 0x206   : > { %1340 = vpow2.f32 %v546_v19 }
 0x207   : > { %1342 = vpow2.f32 %v538_v48 }
 0x209   : > { %v691_v23 = vpop.permute.xlu1 %690 }
 0x20a   : > { %1240 = vmatpush.xpose.msk.msrb.mxu1 %vm505_vm0, %v691_v23 }
 0x20c   : > { %v1341_v25 = vpop.eup %1340 }
 0x20d   : > { %1236 = vmatmul.msk.f32.vlgmr.msra.gmra.mxu1 %vm505_vm0, %v1341_v25  ;;  %v550_v39 = vsel %vm505_vm0, %v1341_v25, 0.0  ;;  %v1343_v51 = vpop.eup %1342 }
 0x20e   : > { %v549_v60 = vmul.f32 %v1343_v51, %v548_v59 }
 0x211   : > { %v786_v26 = vpop.permute.xlu1 %785 }
 0x212   : > { %1243 = vmatpush.xpose.msk.msrb.mxu0 %vm505_vm0, %v786_v26 }
 0x215   : > { %1241 = vmatmul.msk.f32.vlgmr.msrb.gmra.mxu1 %vm505_vm0, %v689_v22  ;;  %1244 = vmatmul.msk.f32.vlgmr.msrb.gmra.mxu0 %vm505_vm0, %v784_v27 }
 0x23c   : > { %v626_v29 = vpop.xlane.xlu1 %625 }
 0x23d   : > { %v627_v30 = vmax.f32 %v623_v28, %v626_v29 }
 0x23f   : > { %v628_v31 = vsub.f32 %v623_v28, %v627_v30  ;;  %687 = vst.msk [vmem:[#allocation2 + $0x8] sm:$0xff] %vm488_vm1, %v627_v30 }
 0x241   : > { %v629_v57 = vmul.f32 1.442695, %v628_v31 }
 0x28a   : > { %v1717_v32 = vpop.f32.mrf.mxu1 }
 0x292   : > { %v713_v33 = vpop.f32.mrf.mxu1  ;;  %v808_v34 = vpop.f32.mrf.mxu0 }
 0x293   : > { %v716_v35 = vmul.f32 0.35355338, %v713_v33  ;;  %v811_v36 = vmul.f32 0.35355338, %v808_v34  ;;  %v830_v34 = vld [vmem:[#allocation3 + $0x18] sm:$0xff] }
 0x295   : > { %v719_v37 = vsel %vm505_vm0, %v716_v35, -inf  ;;  %v814_v38 = vsel %vm505_vm0, %v811_v36, -inf }
 0x296   : > { %720 = vmax.xlane.f32.xlu2 %v719_v37  ;;  %815 = vmax.xlane.f32.xlu0 %v814_v38 }
 0x2aa   : > { %633 = vperm.xlu0 %1335, %v627_v30  }
 0x2ae   : > { %647 = vrot.lane.b32.xlu2 %v1695_v10, %s1541_s19 }
 0x2b6   : > { %742 = vrot.lane.b32.xlu2 %v1695_v10, %s1542_s16 }
 0x2df   : > { %551 = vadd.xlane.f32.xlu2 %v550_v39 }
 0x309   : > { %v721_v42 = vpop.xlane.xlu2 %720  ;;  %v816_v43 = vpop.xlane.xlu0 %815 }
 0x30a   : > { %v1729_v44 = vmax.f32 %v1724_v40, %v721_v42  ;;  %v1732_v45 = vmax.f32 %v1726_v41, %v816_v43 }
 0x30c   : > { %v723_v46 = vsub.f32 %v1724_v40, %v1729_v44  ;;  %782 = vst.msk [vmem:[#allocation2 + $0x10] sm:$0xff] %vm488_vm1, %v1729_v44  ;;  %v818_v47 = vsub.f32 %v1726_v41, %v1732_v45  ;;  %728 = vperm.xlu1 %1334, %v1729_v44   ;;  %823 = vperm.xlu0 %1335, %v1732_v45  }
 0x30d   : > { %877 = vst.msk [vmem:[#allocation2 + $0x18] sm:$0xff] %vm488_vm1, %v1732_v45 }
 0x30e   : > { %v724_v17 = vmul.f32 1.442695, %v723_v46 }
 0x311   : > { %v648_v49 = vpop.permute.xlu2 %647 }
 0x312   : > { %668 = vmatpush.msra.mxu3 %v648_v49 }
 0x314   : > { %837 = vrot.lane.b32.xlu1 %v1695_v10, %s1543_s20  ;;  %v583_v10 = vld [vmem:[#allocation4] sm:$0xff] }
 0x319   : > { %v743_v50 = vpop.permute.xlu2 %742 }
 0x31a   : > { %763 = vmatpush.msrb.mxu3 %v743_v50 }
 0x31c   : > { %v634_v52 = vpop.permute.xlu0 %633  ;;  %586 = vperm.xlu1 %1334, %v1343_v51  }
 0x31d   : > { %v636_v53 = vsub.f32 %v621_v21, %v634_v52  ;;  %v640_v21 = vld [vmem:[#allocation3 + $0x8] sm:$0xff] }
 0x31f   : > { %v637_v54 = vmul.f32 1.442695, %v636_v53 }
 0x321   : > { %1344 = vpow2.f32 %v637_v54 }
 0x322   : > { %1346 = vpow2.f32 %v629_v57 }
 0x327   : > { %v1345_v55 = vpop.eup %1344 }
 0x328   : > { %1239 = vmatmul.msk.f32.vlgmr.msra.gmra.mxu3 %vm505_vm0, %v1345_v55  ;;  %v642_v56 = vsel %vm505_vm0, %v1345_v55, 0.0  ;;  %v1347_v58 = vpop.eup %1346 }
 0x329   : > { %v641_v25 = vmul.f32 %v1347_v58, %v640_v21 }
 0x336   : > { %643 = vadd.xlane.f32.xlu0 %v642_v56 }
 0x34a   : > { %676 = vperm.xlu0 %1335, %v1347_v58  }
 0x352   : > { %v552_v61 = vpop.xlane.xlu2 %551 }
 0x353   : > { %v553_v62 = vadd.f32 %v552_v61, %v549_v60 }
 0x355   : > { %555 = vst.msk [vmem:[#allocation3] sm:$0xff] %vm488_vm1, %v553_v62 }
 0x35c   : > { %v881_v11 = vld [vmem:[#allocation3] sm:$0xff] }
 0x35d   : > { %v893_v23 = vand.u32 2147483648, %v881_v11  ;;  %vm887_vm4 = vweird.f32 %v881_v11  ;;  %v891_v24 = vand.u32 2147483647, %v881_v11 }
 0x35f   : > { %v894_v29 = vor.u32 1.1754944e-38, %v893_v23  ;;  %vm892_vm6 = vcmp.eq.f32.partialorder %v891_v24, 8.507059e+37 }
 0x37e   : > { %v824_v63 = vpop.permute.xlu0 %823  ;;  %v729_v0 = vpop.permute.xlu1 %728 }
 0x37f   : > { %v826_v1 = vsub.f32 %v811_v36, %v824_v63  ;;  %v731_v2 = vsub.f32 %v716_v35, %v729_v0  ;;  %v735_v35 = vld [vmem:[#allocation3 + $0x10] sm:$0xff] }
 0x381   : > { %v827_v3 = vmul.f32 1.442695, %v826_v1  ;;  %v732_v4 = vmul.f32 1.442695, %v731_v2 }
 0x383   : > { %1348 = vpow2.f32 %v827_v3 }
 0x384   : > { %1350 = vpow2.f32 %v732_v4 }
 0x385   : > { %1352 = vrcp.f32 %v881_v11 }
 0x386   : > { %v838_v5 = vpop.permute.xlu1 %837  ;;  %1354 = vpow2.f32 %v724_v17 }
 0x387   : > { %858 = vmatpush.msrb.mxu2 %v838_v5 }
 0x389   : > { %v1349_v6 = vpop.eup %1348 }
 0x38a   : > { %v1351_v7 = vpop.eup %1350  ;;  %1245 = vmatmul.msk.f32.vlgmr.msrb.gmra.mxu2 %vm505_vm0, %v1349_v6  ;;  %v832_v9 = vsel %vm505_vm0, %v1349_v6, 0.0 }
 0x38b   : > { %1242 = vmatmul.msk.f32.vlgmr.msrb.gmra.mxu3 %vm505_vm0, %v1351_v7  ;;  %833 = vadd.xlane.f32.xlu2 %v832_v9  ;;  %v737_v8 = vsel %vm505_vm0, %v1351_v7, 0.0  ;;  %v1353_v15 = vpop.eup %1352 }
 0x38c   : > { %738 = vadd.xlane.f32.xlu1 %v737_v8  ;;  %v883_v16 = vmul.f32 %v1353_v15, %v881_v11  ;;  %v1355_v20 = vpop.eup %1354  ;;  %vm888_vm3 = vweird.f32 %v1353_v15 }
 0x38d   : > { %vm889_vm5 = vmor %vm887_vm4, %vm888_vm3  ;;  %v736_v38 = vmul.f32 %v1355_v20, %v735_v35 }
 0x38e   : > { %v587_v12 = vpop.permute.xlu1 %586  ;;  %v884_v18 = vsub.f32 1.0, %v883_v16 }
 0x38f   : > { %v589_v13 = vmul.f32 %v587_v12, %v583_v10 }
 0x390   : > { %v885_v19 = vmul.f32 %v1353_v15, %v884_v18 }
 0x391   : > { %v590_v14 = vadd.f32 %v589_v13, %v1717_v32  ;;  %v819_v32 = vmul.f32 1.442695, %v818_v47 }
 0x392   : > { %v886_v22 = vadd.f32 %v1353_v15, %v885_v19 }
 0x393   : > { %591 = vst.msk [vmem:[#allocation4] sm:$0xff] %vm505_vm0, %v590_v14  ;;  %1356 = vpow2.f32 %v819_v32  ;;  %v980_v32 = vld [vmem:[#allocation5 + $0x10] sm:$0xff] }
 0x394   : > { %v890_v27 = vsel %vm889_vm5, %v1353_v15, %v886_v22 }
 0x395   : > { %v895_v31 = vsel %vm892_vm6, %v894_v29, %v890_v27  ;;  %vm780_vm6 = vcmask 195712  }
 0x399   : > { %v1357_v33 = vpop.eup %1356 }
 0x39a   : > { %v831_v36 = vmul.f32 %v1357_v33, %v830_v34  ;;  %v673_v41 = vld [vmem:[#allocation4] sm:$0xff]  ;;  %v978_v34 = vld [vmem:[#allocation5] sm:$0xff] }
 0x3a5   : > { %771 = vperm.xlu1 %1334, %v1355_v20  }
 0x3a9   : > { %v644_v26 = vpop.xlane.xlu0 %643 }
 0x3aa   : > { %v645_v28 = vadd.f32 %v644_v26, %v641_v25 }
 0x3ab   : > { %v670_v30 = vpop.f32.mrf.mxu3 }
 0x3ac   : > { %646 = vst.msk [vmem:[#allocation3 + $0x8] sm:$0xff] %vm488_vm1, %v645_v28  ;;  %681 = vrot.lane.b32.xlu2 %v670_v30, %s1544_s21 }
 0x3ad   : > { %900 = vperm.xlu1 %1334, %v895_v31   ;;  %v981_v31 = vld [vmem:[#allocation5 + $0x18] sm:$0xff] }
 0x3ae   : > { %1002 = vmatpush.msra.mxu1 %v981_v31 }
 0x3b0   : > { %1003 = vmatpush.msra.mxu1 %v980_v32 }
 0x3b3   : > { %v1760_v42 = vld [vmem:[#allocation3 + $0x8] sm:$0xff] }
 0x3b4   : > { %1358 = vrcp.f32 %v1760_v42  ;;  %vm911_vm11 = vweird.f32 %v1760_v42  ;;  %v917_v10 = vand.u32 2147483648, %v1760_v42  ;;  %v915_v13 = vand.u32 2147483647, %v1760_v42 }
 0x3b6   : > { %v918_v16 = vor.u32 1.1754944e-38, %v917_v10  ;;  %vm916_vm5 = vcmp.eq.f32.partialorder %v915_v13, 8.507059e+37  ;;  %v1339_v10 = vld [vmem:[#allocation10] ss:$0 sm:$0xff] }
 0x3ba   : > { %v1359_v48 = vpop.eup %1358 }
 0x3bb   : > { %v907_v51 = vmul.f32 %v1359_v48, %v1760_v42  ;;  %vm912_vm12 = vweird.f32 %v1359_v48 }
 0x3bc   : > { %v677_v44 = vpop.permute.xlu0 %676  ;;  %vm913_vm4 = vmor %vm911_vm11, %vm912_vm12 }
 0x3bd   : > { %v679_v45 = vmul.f32 %v677_v44, %v673_v41  ;;  %v908_v55 = vsub.f32 1.0, %v907_v51  ;;  %v1547_v51 = vmov 32.0  }
 0x3bf   : > { %v909_v62 = vmul.f32 %v1359_v48, %v908_v55 }
 0x3c1   : > { %v910_v7 = vadd.f32 %v1359_v48, %v909_v62 }
 0x3c3   : > { %v914_v15 = vsel %vm913_vm4, %v1359_v48, %v910_v7 }
 0x3c4   : > { %v919_v17 = vsel %vm916_vm5, %v918_v16, %v914_v15 }
 0x3fe   : > { %v834_v37 = vpop.xlane.xlu2 %833 }
 0x3ff   : > { %v835_v39 = vadd.f32 %v834_v37, %v831_v36  ;;  %v739_v40 = vpop.xlane.xlu1 %738 }
 0x400   : > { %v740_v43 = vadd.f32 %v739_v40, %v736_v38 }
 0x401   : > { %836 = vst.msk [vmem:[#allocation3 + $0x18] sm:$0xff] %vm488_vm1, %v835_v39 }
 0x402   : > { %741 = vst.msk [vmem:[#allocation3 + $0x10] sm:$0xff] %vm488_vm1, %v740_v43 }
 0x406   : > { %v682_v46 = vpop.permute.xlu2 %681 }
 0x407   : > { %v684_v47 = vadd.f32 %v682_v46, %v679_v45  ;;  %v1337_v45 = vld [vmem:[#allocation7] ss:$0 sm:$0xff] }
 0x408   : > { %v953_v49 = vld [vmem:[#allocation3 + $0x18] sm:$0xff] }
 0x409   : > { %686 = vst.msk [vmem:[#allocation4] sm:$0xff] %vm685_vm7, %v684_v47  ;;  %v929_v50 = vld [vmem:[#allocation3 + $0x10] sm:$0xff]  ;;  %1360 = vrcp.f32 %v953_v49  ;;  %v965_v61 = vand.u32 2147483648, %v953_v49  ;;  %v963_v1 = vand.u32 2147483647, %v953_v49  ;;  %vm959_vm10 = vweird.f32 %v953_v49  ;;  %v1010_v47 = vld [vmem:[%s476_s27] sm:$0xff] }
 0x40a   : > { %1362 = vrcp.f32 %v929_v50  ;;  %v941_v63 = vand.u32 2147483648, %v929_v50  ;;  %v939_v3 = vand.u32 2147483647, %v929_v50  ;;  %vm935_vm13 = vweird.f32 %v929_v50 }
 0x40b   : > { %v966_v6 = vor.u32 1.1754944e-38, %v965_v61  ;;  %vm964_vm1 = vcmp.eq.f32.partialorder %v963_v1, 8.507059e+37  ;;  %1364 = vrcp.f32 %v1547_v51 }
 0x40c   : > { %v942_v9 = vor.u32 1.1754944e-38, %v941_v63  ;;  %vm940_vm3 = vcmp.eq.f32.partialorder %v939_v3, 8.507059e+37 }
 0x40d   : > { %v860_v52 = vpop.f32.mrf.mxu2 }
 0x40e   : > { %v765_v53 = vpop.f32.mrf.mxu3  ;;  %871 = vrot.lane.b32.xlu2 %v860_v52, %s1545_s22 }
 0x40f   : > { %v1361_v54 = vpop.eup %1360  ;;  %776 = vrot.lane.b32.xlu0 %v765_v53, %s1546_s23 }
 0x410   : > { %v1363_v56 = vpop.eup %1362  ;;  %v955_v57 = vmul.f32 %v1361_v54, %v953_v49  ;;  %vm960_vm8 = vweird.f32 %v1361_v54  ;;  %v768_v19 = vld [vmem:[#allocation4] sm:$0xff] }
 0x411   : > { %v931_v58 = vmul.f32 %v1363_v56, %v929_v50  ;;  %vm936_vm9 = vweird.f32 %v1363_v56  ;;  %vm961_vm14 = vmor %vm959_vm10, %vm960_vm8  ;;  %vm875_vm8 = vcmask 261312   ;;  %v1365_v52 = vpop.eup %1364 }
 0x412   : > { %v956_v59 = vsub.f32 1.0, %v955_v57  ;;  %vm937_vm15 = vmor %vm935_vm13, %vm936_vm9  ;;  %v1016_v53 = vmul.f32 32.0, %v1365_v52 }
 0x413   : > { %v932_v60 = vsub.f32 1.0, %v931_v58 }
 0x414   : > { %v957_v0 = vmul.f32 %v1361_v54, %v956_v59 }
 0x415   : > { %v933_v2 = vmul.f32 %v1363_v56, %v932_v60 }
 0x416   : > { %v958_v4 = vadd.f32 %v1361_v54, %v957_v0 }
 0x417   : > { %866 = vperm.xlu0 %1335, %v1357_v33   ;;  %v934_v5 = vadd.f32 %v1363_v56, %v933_v2  ;;  %v772_v18 = vpop.permute.xlu1 %771  ;;  %v979_v33 = vld [vmem:[#allocation5 + $0x8] sm:$0xff] }
 0x418   : > { %v962_v8 = vsel %vm961_vm14, %v1361_v54, %v958_v4  ;;  %v774_v20 = vmul.f32 %v772_v18, %v768_v19  ;;  %1004 = vmatpush.msra.mxu1 %v979_v33  ;;  %v1017_v54 = vsub.f32 1.0, %v1016_v53 }
 0x419   : > { %v938_v11 = vsel %vm937_vm15, %v1363_v56, %v934_v5  ;;  %v967_v12 = vsel %vm964_vm1, %v966_v6, %v962_v8 }
 0x41a   : > { %v943_v14 = vsel %vm940_vm3, %v942_v9, %v938_v11  ;;  %972 = vperm.xlu1 %1334, %v967_v12   ;;  %1005 = vmatpush.msra.mxu1 %v978_v34  ;;  %v1018_v55 = vmul.f32 %v1365_v52, %v1017_v54  ;;  %v1338_v9 = vld [vmem:[#allocation9] ss:$0 sm:$0xff] }
 0x41b   : > { %948 = vperm.xlu2 %1336, %v943_v14  }
 0x41c   : > { %v1019_v56 = vadd.f32 %v1365_v52, %v1018_v55 }
 0x41f   : > { %924 = vperm.xlu0 %1335, %v919_v17   ;;  %v901_v28 = vpop.permute.xlu1 %900 }
 0x468   : > { %v872_v26 = vpop.permute.xlu2 %871 }
 0x475   : > { %v949_v38 = vpop.permute.xlu2 %948 }
 0x481   : > { %v777_v21 = vpop.permute.xlu0 %776 }
 0x482   : > { %v779_v22 = vadd.f32 %v777_v21, %v774_v20 }
 0x484   : > { %781 = vst.msk [vmem:[#allocation4] sm:$0xff] %vm780_vm6, %v779_v22 }
 0x489   : > { %v867_v23 = vpop.permute.xlu0 %866 }
 0x48b   : > { %v863_v24 = vld [vmem:[#allocation4] sm:$0xff] }
 0x48c   : > { %v869_v25 = vmul.f32 %v867_v23, %v863_v24  ;;  %v973_v42 = vpop.permute.xlu1 %972 }
 0x48e   : > { %v874_v27 = vadd.f32 %v872_v26, %v869_v25 }
 0x490   : > { %876 = vst.msk [vmem:[#allocation4] sm:$0xff] %vm875_vm8, %v874_v27 }
 0x491   : > { %v925_v35 = vpop.permute.xlu0 %924 }
 0x497   : > { %v897_v29 = vld [vmem:[#allocation4] sm:$0xff] }
 0x498   : > { %v903_v30 = vmul.f32 %v901_v28, %v897_v29 }
 0x49a   : > { %904 = vst.msk [vmem:[#allocation4] sm:$0xff] %vm505_vm0, %v903_v30  ;;  %vm1020_vm0 = vweird.f32 %v1365_v52 }
 0x49b   : > { %v1021_v57 = vsel %vm1020_vm0, %v1365_v52, %v1019_v56 }
 0x4a1   : > { %v921_v36 = vld [vmem:[#allocation4] sm:$0xff] }
 0x4a2   : > { %v927_v37 = vmul.f32 %v925_v35, %v921_v36 }
 0x4a4   : > { %928 = vst.msk [vmem:[#allocation4] sm:$0xff] %vm685_vm7, %v927_v37 }
 0x4ab   : > { %v945_v39 = vld [vmem:[#allocation4] sm:$0xff] }
 0x4ac   : > { %v951_v40 = vmul.f32 %v949_v38, %v945_v39 }
 0x4ae   : > { %952 = vst.msk [vmem:[#allocation4] sm:$0xff] %vm780_vm6, %v951_v40 }
 0x4b5   : > { %v969_v43 = vld [vmem:[#allocation4] sm:$0xff] }
 0x4b6   : > { %v975_v44 = vmul.f32 %v973_v42, %v969_v43 }
 0x4b8   : > { %976 = vst.msk [vmem:[#allocation4] sm:$0xff] %vm875_vm8, %v975_v44 }
 0x4bf   : > { %v977_v41 = vld [vmem:[#allocation4] sm:$0xff] }
 0x4c0   : > { %1246 = vmatmul.msk.f32.vlgmr.msra.gmra.mxu1 %vm497_vm2, %v977_v41 }
 0x53d   : > { %v1007_v46 = vpop.f32.mrf.mxu1 }
 0x53e   : > { %v1008_v48 = vadd.f32 %v1337_v45, %v1007_v46 }
 0x540   : > { %v1011_v49 = vadd.f32 %v1010_v47, %v1008_v48 }
 0x542   : > { %v1012_v50 = vsel %vm497_vm2, %v1011_v49, 0.0 }
 0x543   : > { %1013 = vadd.xlane.f32.xlu0 %v1012_v50 }
 0x5b6   : > { %v1014_v58 = vpop.xlane.xlu0 %1013 }
 0x5b7   : > { %v1022_v59 = vmul.f32 %v1021_v57, %v1014_v58 }
 0x5b9   : > { %v1023_v60 = vsub.f32 %v1011_v49, %v1022_v59 }
 0x5bb   : > { %v1024_v61 = vmul.f32 %v1023_v60, %v1023_v60 }
 0x5bd   : > { %v1025_v62 = vsel %vm497_vm2, %v1024_v61, 0.0 }
 0x5be   : > { %1026 = vadd.xlane.f32.xlu2 %v1025_v62 }
 0x631   : > { %v1027_v63 = vpop.xlane.xlu2 %1026 }
 0x632   : > { %v1028_v0 = vmul.f32 %v1027_v63, %v1021_v57 }
 0x634   : > { %v1029_v1 = vadd.f32 1e-05, %v1028_v0 }
 0x636   : > { %1366 = vrsqrt.f32 %v1029_v1  ;;  %vm1036_vm9 = vweird.f32 %v1029_v1 }
 0x63c   : > { %v1367_v2 = vpop.eup %1366 }
 0x63d   : > { %v1031_v3 = vmul.f32 %v1367_v2, %v1029_v1  ;;  %vm1037_vm7 = vweird.f32 %v1367_v2 }
 0x63e   : > { %vm1038_vm10 = vmor %vm1036_vm9, %vm1037_vm7 }
 0x63f   : > { %v1032_v4 = vmul.f32 %v1367_v2, %v1031_v3 }
 0x641   : > { %v1033_v5 = vmul.f32 0.5, %v1032_v4 }
 0x643   : > { %v1034_v6 = vsub.f32 1.5, %v1033_v5 }
 0x645   : > { %v1035_v7 = vmul.f32 %v1367_v2, %v1034_v6 }
 0x647   : > { %v1039_v8 = vsel %vm1038_vm10, %v1367_v2, %v1035_v7 }
 0x648   : > { %v1040_v11 = vmul.f32 %v1039_v8, %v1023_v60 }
 0x64a   : > { %v1045_v12 = vmul.f32 %v1338_v9, %v1040_v11 }
 0x64c   : > { %v1050_v13 = vadd.f32 %v1339_v10, %v1045_v12 }
 0x64e   : > { %1051 = vst.msk [vmem:[%s483_s30] sm:$0xff] %vm497_vm2, %v1050_v13 }
 0x64f PF: > { %s21_s29 = sadd.s32 1, %s1522_s29   ;;  %s1812_s27 = smov %s1518_s28 }
 0x650   : > { %p18_p8 = scmp.ge.s32.totalorder %s21_s29, 4   ;;  %s1813_s28 = smov %s1815_s17 }
 0x652   :  { %20 = sbr.rel (!%p18_p8) target bundleno = 4 (0x4), region = 122 }
 0x657   :  { %1077 = vsyncpa [#allocation6], 1 }
 0x658   :  { %1079 = vsyncpa [#allocation6 + $0x1], 1 }
 0x659   :  { %1080 = vsyncpa [#allocation8], 1 }
 0x65a   :  { %1081 = vsyncpa [#allocation11], 1 }

// kernel: encoder.11
= control target key start
LH: loop header
LB: loop body
LE: loop exit
PB: predicated region body
PF: predicated region fallthrough
CT: control target
= control target key end

     0   :  { %11 = vsyncpa [#allocation4], 0  ;;  %s405_s0 = inlined_call_operand.vmem [shape: f32[16,64], index: 0, kind: input, shape index: {}]   ;;  %s406_s1 = inlined_call_operand.vmem [shape: f32[64,32], index: 1, kind: input, shape index: {}]   ;;  %s407_s2 = inlined_call_operand.hbm [shape: f32[1,32], index: 2, kind: input, shape index: {}]   ;;  %s408_s3 = inlined_call_operand.vmem [shape: f32[16,32], index: 3, kind: input, shape index: {}]   ;;  %s409_s4 = inlined_call_operand.hbm [shape: f32[1,32], index: 4, kind: input, shape index: {}]   ;;  %s410_s5 = inlined_call_operand.hbm [shape: f32[1,32], index: 5, kind: input, shape index: {}]   ;;  %s411_s6 = inlined_call_operand.vmem [shape: f32[16,32], index: 6, kind: output, shape index: {}]  }
   0x1   :  { %12 = vsyncpa [#allocation6], 0  ;;  %s35_s23 = sshll.u32 %s409_s4, 4  ;;  %s304_s24 = smov [#allocation5]   ;;  %s36_s23 = int_to_ptr.hbm [resolvable:$true] %s35_s23 }
   0x2   :  { %s37_s25 = sshll.u32 %s304_s24, 4  ;;  %s22_s28 = sshll.u32 %s407_s2, 4  ;;  %s38_s25 = int_to_ptr.vmem [resolvable:$true] %s37_s25  ;;  %s23_s28 = int_to_ptr.hbm [resolvable:$true] %s22_s28 }
   0x3   :  { %40 = dma.hbm_to_vmem [thread:$0]  %s36_s23, 16, %s38_s25, [#allocation6]  }
   0x4   :  { %s305_s29 = smov [#allocation3]   ;;  %s46_s9 = sshll.u32 %s410_s5, 4  ;;  %s47_s9 = int_to_ptr.hbm [resolvable:$true] %s46_s9 }
   0x5   :  { %s24_s30 = sshll.u32 %s305_s29, 4  ;;  %s306_s4 = smov [#allocation7]   ;;  %s25_s30 = int_to_ptr.vmem [resolvable:$true] %s24_s30 }
   0x6   :  { %27 = dma.hbm_to_vmem [thread:$0]  %s23_s28, 16, %s25_s30, [#allocation4]  }
   0x7   :  { %s48_s10 = sshll.u32 %s306_s4, 4  ;;  %s49_s10 = int_to_ptr.vmem [resolvable:$true] %s48_s10 }
   0x8   :  { %51 = dma.hbm_to_vmem [thread:$0]  %s47_s9, 16, %s49_s10, [#allocation6]  }
   0x9   :  { %300 = dma.done.wait [#allocation4], 16  }
   0xa   :  { %301 = vsyncadd [#allocation4], 4294967280 }
   0xb   :  { %302 = dma.done.wait [#allocation6], 32  }
   0xc   :  { %303 = vsyncadd [#allocation6], 4294967264  ;;  %vm68_vm0 = vcmask 261120   ;;  %v307_v0 = vmov 0.0   ;;  %v82_v1 = vld [vmem:[%s406_s1 + $0x38] sm:$0xff]  ;;  %v81_v2 = vld [vmem:[%s406_s1 + $0x30] sm:$0xff] }
   0xd   :  { %69 = vst.msk [vmem:[#allocation2] sm:$0xff] %vm68_vm0, %v307_v0  ;;  %98 = vmatpush.msra.mxu0 %v82_v1  ;;  %206 = vmatpush.msra.mxu1 %v82_v1  ;;  %v80_v3 = vld [vmem:[%s406_s1 + $0x28] sm:$0xff]  ;;  %v79_v4 = vld [vmem:[%s406_s1 + $0x20] sm:$0xff]  ;;  %v78_v5 = vld [vmem:[%s406_s1 + $0x18] sm:$0xff]  ;;  %vm83_vm1 = vcmask 523264   ;;  %v308_v28 = vmov 32.0  }
   0xe   :  { %70 = vst.msk [vmem:[#allocation2 + $0x8] sm:$0xff] %vm68_vm0, %v307_v0  ;;  %v77_v6 = vld [vmem:[%s406_s1 + $0x10] sm:$0xff]  ;;  %v76_v7 = vld [vmem:[%s406_s1 + $0x8] sm:$0xff]  ;;  %v75_v8 = vld [vmem:[%s406_s1] sm:$0xff]  ;;  %222 = vrcp.f32 %v308_v28 }
   0xf   :  { %99 = vmatpush.msra.mxu0 %v81_v2  ;;  %207 = vmatpush.msra.mxu1 %v81_v2  ;;  %v73_v9 = vld [vmem:[%s405_s0] sm:$0xff]  ;;  %v74_v10 = vld [vmem:[%s405_s0 + $0x8] sm:$0xff]  ;;  %v219_v17 = vld [vmem:[#allocation3] ss:$0 sm:$0xff] }
  0x10   :  { %v129_v19 = vld [vmem:[%s408_s3] sm:$0xff]  ;;  %v130_v24 = vld [vmem:[%s408_s3 + $0x8] sm:$0xff]  ;;  %v220_v59 = vld [vmem:[#allocation5] ss:$0 sm:$0xff] }
  0x11   :  { %100 = vmatpush.msra.mxu0 %v80_v3  ;;  %208 = vmatpush.msra.mxu1 %v80_v3  ;;  %v221_v62 = vld [vmem:[#allocation7] ss:$0 sm:$0xff] }
  0x13   :  { %101 = vmatpush.msra.mxu0 %v79_v4  ;;  %209 = vmatpush.msra.mxu1 %v79_v4 }
  0x14   :  { %v71_v11 = vld [vmem:[#allocation2] sm:$0xff]  ;;  %v223_v29 = vpop.eup %222 }
  0x15   :  { %102 = vmatpush.msra.mxu0 %v78_v5  ;;  %210 = vmatpush.msra.mxu1 %v78_v5  ;;  %v72_v12 = vld [vmem:[#allocation2 + $0x8] sm:$0xff]  ;;  %v140_v30 = vmul.f32 32.0, %v223_v29  ;;  %vm144_vm2 = vweird.f32 %v223_v29 }
  0x17   :  { %103 = vmatpush.msra.mxu0 %v77_v6  ;;  %211 = vmatpush.msra.mxu1 %v77_v6  ;;  %v141_v31 = vsub.f32 1.0, %v140_v30 }
  0x19   :  { %104 = vmatpush.msra.mxu0 %v76_v7  ;;  %212 = vmatpush.msra.mxu1 %v76_v7  ;;  %v142_v32 = vmul.f32 %v223_v29, %v141_v31 }
  0x1b   :  { %105 = vmatpush.msra.mxu0 %v75_v8  ;;  %213 = vmatpush.msra.mxu1 %v75_v8  ;;  %v143_v33 = vadd.f32 %v223_v29, %v142_v32 }
  0x1c   :  { %204 = vmatmul.msk.f32.vlgmr.msra.gmra.mxu0 %vm83_vm1, %v73_v9  ;;  %205 = vmatmul.msk.f32.vlgmr.msra.gmra.mxu1 %vm83_vm1, %v74_v10 }
  0x1d   :  { %v145_v34 = vsel %vm144_vm2, %v223_v29, %v143_v33 }
  0x99   :  { %v107_v13 = vpop.f32.mrf.mxu0  ;;  %v110_v14 = vpop.f32.mrf.mxu1 }
  0x9a   :  { %v113_v15 = vadd.f32 %v107_v13, %v71_v11  ;;  %v114_v16 = vadd.f32 %v110_v14, %v72_v12 }
  0x9c   :  { %116 = vst.msk [vmem:[#allocation2] sm:$0xff] %vm68_vm0, %v113_v15 }
  0x9d   :  { %117 = vst.msk [vmem:[#allocation2 + $0x8] sm:$0xff] %vm68_vm0, %v114_v16 }
  0xa3   :  { %v121_v18 = vld [vmem:[#allocation2] sm:$0xff] }
  0xa4   :  { %v127_v20 = vadd.f32 %v219_v17, %v121_v18  ;;  %v122_v21 = vld [vmem:[#allocation2 + $0x8] sm:$0xff] }
  0xa5   :  { %v128_v23 = vadd.f32 %v219_v17, %v122_v21 }
  0xa6   :  { %v131_v22 = vadd.f32 %v129_v19, %v127_v20 }
  0xa7   :  { %v132_v26 = vadd.f32 %v130_v24, %v128_v23 }
  0xa8   :  { %v133_v25 = vsel %vm68_vm0, %v131_v22, 0.0 }
  0xa9   :  { %134 = vadd.xlane.f32.xlu0 %v133_v25  ;;  %v136_v27 = vsel %vm68_vm0, %v132_v26, 0.0 }
  0xb1   :  { %137 = vadd.xlane.f32.xlu0 %v136_v27 }
 0x11c   :  { %v135_v35 = vpop.xlane.xlu0 %134 }
 0x11d   :  { %v146_v36 = vmul.f32 %v145_v34, %v135_v35 }
 0x11f   :  { %v148_v37 = vsub.f32 %v131_v22, %v146_v36 }
 0x121   :  { %v150_v38 = vmul.f32 %v148_v37, %v148_v37 }
 0x123   :  { %v152_v39 = vsel %vm68_vm0, %v150_v38, 0.0 }
 0x124   :  { %153 = vadd.xlane.f32.xlu1 %v152_v39  ;;  %v138_v40 = vpop.xlane.xlu0 %137 }
 0x125   :  { %v147_v41 = vmul.f32 %v145_v34, %v138_v40 }
 0x127   :  { %v149_v42 = vsub.f32 %v132_v26, %v147_v41 }
 0x129   :  { %v151_v43 = vmul.f32 %v149_v42, %v149_v42 }
 0x12b   :  { %v155_v44 = vsel %vm68_vm0, %v151_v43, 0.0 }
 0x12c   :  { %156 = vadd.xlane.f32.xlu1 %v155_v44 }
 0x197   :  { %v154_v45 = vpop.xlane.xlu1 %153 }
 0x198   :  { %v158_v46 = vmul.f32 %v154_v45, %v145_v34 }
 0x19a   :  { %v160_v47 = vadd.f32 1e-05, %v158_v46 }
 0x19c   :  { %224 = vrsqrt.f32 %v160_v47  ;;  %vm168_vm4 = vweird.f32 %v160_v47 }
 0x19f   :  { %v157_v48 = vpop.xlane.xlu1 %156 }
 0x1a0   :  { %v159_v49 = vmul.f32 %v157_v48, %v145_v34 }
 0x1a2   :  { %v225_v50 = vpop.eup %224  ;;  %v161_v51 = vadd.f32 1e-05, %v159_v49 }
 0x1a3   :  { %v163_v52 = vmul.f32 %v225_v50, %v160_v47  ;;  %vm169_vm3 = vweird.f32 %v225_v50 }
 0x1a4   :  { %226 = vrsqrt.f32 %v161_v51  ;;  %vm170_vm5 = vmor %vm168_vm4, %vm169_vm3  ;;  %vm178_vm7 = vweird.f32 %v161_v51 }
 0x1a5   :  { %v164_v53 = vmul.f32 %v225_v50, %v163_v52 }
 0x1a7   :  { %v165_v54 = vmul.f32 0.5, %v164_v53 }
 0x1a9   :  { %v166_v55 = vsub.f32 1.5, %v165_v54 }
 0x1aa   :  { %v227_v56 = vpop.eup %226 }
 0x1ab   :  { %v167_v57 = vmul.f32 %v225_v50, %v166_v55  ;;  %v173_v58 = vmul.f32 %v227_v56, %v161_v51  ;;  %vm179_vm6 = vweird.f32 %v227_v56 }
 0x1ac   :  { %vm180_vm8 = vmor %vm178_vm7, %vm179_vm6 }
 0x1ad   :  { %v171_v60 = vsel %vm170_vm5, %v225_v50, %v167_v57  ;;  %v174_v61 = vmul.f32 %v227_v56, %v173_v58 }
 0x1ae   :  { %v182_v63 = vmul.f32 %v171_v60, %v148_v37 }
 0x1af   :  { %v175_v0 = vmul.f32 0.5, %v174_v61 }
 0x1b0   :  { %v188_v1 = vmul.f32 %v220_v59, %v182_v63 }
 0x1b1   :  { %v176_v2 = vsub.f32 1.5, %v175_v0 }
 0x1b2   :  { %v194_v3 = vadd.f32 %v221_v62, %v188_v1 }
 0x1b3   :  { %v177_v4 = vmul.f32 %v227_v56, %v176_v2 }
 0x1b4   :  { %196 = vst.msk [vmem:[%s411_s6] sm:$0xff] %vm68_vm0, %v194_v3 }
 0x1b5   :  { %v181_v5 = vsel %vm180_vm8, %v227_v56, %v177_v4 }
 0x1b6   :  { %v183_v6 = vmul.f32 %v181_v5, %v149_v42 }
 0x1b8   :  { %v189_v7 = vmul.f32 %v220_v59, %v183_v6 }
 0x1ba   :  { %v195_v8 = vadd.f32 %v221_v62, %v189_v7 }
 0x1bc   :  { %197 = vst.msk [vmem:[%s411_s6 + $0x8] sm:$0xff] %vm68_vm0, %v195_v8 }
 0x1bd   :  { %202 = vsyncpa [#allocation4], 1 }
 0x1be   :  { %203 = vsyncpa [#allocation6], 1 }

// kernel: encoder.12
= control target key start
LH: loop header
LB: loop body
LE: loop exit
PB: predicated region body
PF: predicated region fallthrough
CT: control target
= control target key end

     0   :  { %8 = vsyncpa [#allocation4], 0  ;;  %s131_s15 = smov [#allocation3]   ;;  %s186_s0 = inlined_call_operand.vmem [shape: f32[16,32], index: 0, kind: input, shape index: {}]   ;;  %s187_s1 = inlined_call_operand.vmem [shape: f32[32,96], index: 1, kind: input, shape index: {}]   ;;  %s188_s2 = inlined_call_operand.hbm [shape: f32[1,96], index: 2, kind: input, shape index: {}]   ;;  %s189_s3 = inlined_call_operand.vmem [shape: f32[16,96], index: 3, kind: output, shape index: {}]  }
   0x1   :  { %s18_s14 = sshll.u32 %s188_s2, 4  ;;  %s20_s16 = sshll.u32 %s131_s15, 4  ;;  %s19_s14 = int_to_ptr.hbm [resolvable:$true] %s18_s14  ;;  %s21_s16 = int_to_ptr.vmem [resolvable:$true] %s20_s16 }
   0x2   :  { %23 = dma.hbm_to_vmem [thread:$0]  %s19_s14, 16, %s21_s16, [#allocation4]  }
   0x3   :  { %129 = dma.done.wait [#allocation4], 16  }
   0x4   :  { %130 = vsyncadd [#allocation4], 4294967280  ;;  %vm32_vm0 = vcmask 785408   ;;  %v132_v0 = vmov 0.0   ;;  %v42_v1 = vld [vmem:[%s187_s1 + $0x18] sm:$0xff]  ;;  %v41_v2 = vld [vmem:[%s187_s1 + $0x10] sm:$0xff] }
   0x5   :  { %33 = vst.msk [vmem:[#allocation2] sm:$0xff] %vm32_vm0, %v132_v0  ;;  %62 = vmatpush.msra.mxu0 %v42_v1  ;;  %98 = vmatpush.msra.mxu1 %v42_v1  ;;  %v40_v3 = vld [vmem:[%s187_s1 + $0x8] sm:$0xff]  ;;  %v39_v4 = vld [vmem:[%s187_s1] sm:$0xff]  ;;  %vm43_vm1 = vcmask 261120   ;;  %v104_v13 = vld [vmem:[#allocation3] ss:$0 sm:$0xff] }
   0x6   :  { %34 = vst.msk [vmem:[#allocation2 + $0x8] sm:$0xff] %vm32_vm0, %v132_v0  ;;  %v37_v5 = vld [vmem:[%s186_s0] sm:$0xff]  ;;  %v38_v6 = vld [vmem:[%s186_s0 + $0x8] sm:$0xff] }
   0x7   :  { %63 = vmatpush.msra.mxu0 %v41_v2  ;;  %99 = vmatpush.msra.mxu1 %v41_v2 }
   0x9   :  { %64 = vmatpush.msra.mxu0 %v40_v3  ;;  %100 = vmatpush.msra.mxu1 %v40_v3 }
   0xb   :  { %65 = vmatpush.msra.mxu0 %v39_v4  ;;  %101 = vmatpush.msra.mxu1 %v39_v4 }
   0xc   :  { %96 = vmatmul.msk.f32.vlgmr.msra.gmra.mxu0 %vm43_vm1, %v37_v5  ;;  %97 = vmatmul.msk.f32.vlgmr.msra.gmra.mxu1 %vm43_vm1, %v38_v6  ;;  %v35_v7 = vld [vmem:[#allocation2] sm:$0xff] }
   0xd   :  { %v36_v8 = vld [vmem:[#allocation2 + $0x8] sm:$0xff] }
  0x89   :  { %v67_v9 = vpop.f32.mrf.mxu0  ;;  %v70_v10 = vpop.f32.mrf.mxu1 }
  0x8a   :  { %v73_v11 = vadd.f32 %v67_v9, %v35_v7  ;;  %v74_v12 = vadd.f32 %v70_v10, %v36_v8 }
  0x8c   :  { %76 = vst.msk [vmem:[#allocation2] sm:$0xff] %vm32_vm0, %v73_v11 }
  0x8d   :  { %77 = vst.msk [vmem:[#allocation2 + $0x8] sm:$0xff] %vm32_vm0, %v74_v12 }
  0x93   :  { %v81_v14 = vld [vmem:[#allocation2] sm:$0xff] }
  0x94   :  { %v87_v15 = vadd.f32 %v104_v13, %v81_v14  ;;  %v82_v16 = vld [vmem:[#allocation2 + $0x8] sm:$0xff] }
  0x95   :  { %v88_v17 = vadd.f32 %v104_v13, %v82_v16 }
  0x96   :  { %89 = vst.msk [vmem:[%s189_s3] sm:$0xff] %vm32_vm0, %v87_v15 }
  0x97   :  { %90 = vst.msk [vmem:[%s189_s3 + $0x8] sm:$0xff] %vm32_vm0, %v88_v17 }
  0x98   :  { %95 = vsyncpa [#allocation4], 1 }

// kernel: encoder.14
= control target key start
LH: loop header
LB: loop body
LE: loop exit
PB: predicated region body
PF: predicated region fallthrough
CT: control target
= control target key end

     0   :  { %vm18_vm0 = vcmask 523264   ;;  %v91_v2 = vmov 0.0   ;;  %vm29_vm1 = vcmask 261120   ;;  %s145_s1 = inlined_call_operand.vmem [shape: f32[32,64], index: 1, kind: input, shape index: {}]   ;;  %s146_s2 = inlined_call_operand.vmem [shape: f32[1,64], index: 2, kind: input, shape index: {}]   ;;  %s147_s0 = inlined_call_operand.vmem [shape: f32[16,32], index: 0, kind: input, shape index: {}]   ;;  %s148_s3 = inlined_call_operand.vmem [shape: f32[16,64], index: 3, kind: output, shape index: {}]  }
   0x1   :  { %v28_v0 = vld [vmem:[%s145_s1 + $0x18] sm:$0xff]  ;;  %v27_v1 = vld [vmem:[%s145_s1 + $0x10] sm:$0xff]  ;;  %19 = vst.msk [vmem:[#allocation2] sm:$0xff] %vm18_vm0, %v91_v2  ;;  %v26_v3 = vld [vmem:[%s145_s1 + $0x8] sm:$0xff] }
   0x2   :  { %48 = vmatpush.msra.mxu0 %v28_v0  ;;  %85 = vmatpush.msra.mxu1 %v28_v0  ;;  %20 = vst.msk [vmem:[#allocation2 + $0x8] sm:$0xff] %vm18_vm0, %v91_v2  ;;  %v25_v4 = vld [vmem:[%s145_s1] sm:$0xff]  ;;  %v24_v6 = vld [vmem:[%s147_s0 + $0x8] sm:$0xff] }
   0x3   :  { %v23_v5 = vld [vmem:[%s147_s0] sm:$0xff] }
   0x4   :  { %49 = vmatpush.msra.mxu0 %v27_v1  ;;  %86 = vmatpush.msra.mxu1 %v27_v1  ;;  %v90_v13 = vld [vmem:[%s146_s2] ss:$0 sm:$0xff] }
   0x6   :  { %50 = vmatpush.msra.mxu0 %v26_v3  ;;  %87 = vmatpush.msra.mxu1 %v26_v3 }
   0x8   :  { %51 = vmatpush.msra.mxu0 %v25_v4  ;;  %88 = vmatpush.msra.mxu1 %v25_v4  ;;  %v21_v7 = vld [vmem:[#allocation2] sm:$0xff] }
   0x9   :  { %83 = vmatmul.msk.f32.vlgmr.msra.gmra.mxu0 %vm29_vm1, %v23_v5  ;;  %84 = vmatmul.msk.f32.vlgmr.msra.gmra.mxu1 %vm29_vm1, %v24_v6  ;;  %v22_v8 = vld [vmem:[#allocation2 + $0x8] sm:$0xff] }
  0x86   :  { %v53_v9 = vpop.f32.mrf.mxu0  ;;  %v56_v10 = vpop.f32.mrf.mxu1 }
  0x87   :  { %v59_v11 = vadd.f32 %v53_v9, %v21_v7  ;;  %v60_v12 = vadd.f32 %v56_v10, %v22_v8 }
  0x89   :  { %62 = vst.msk [vmem:[#allocation2] sm:$0xff] %vm18_vm0, %v59_v11 }
  0x8a   :  { %63 = vst.msk [vmem:[#allocation2 + $0x8] sm:$0xff] %vm18_vm0, %v60_v12 }
  0x90   :  { %v67_v14 = vld [vmem:[#allocation2] sm:$0xff] }
  0x91   :  { %v73_v15 = vadd.f32 %v90_v13, %v67_v14  ;;  %v68_v16 = vld [vmem:[#allocation2 + $0x8] sm:$0xff] }
  0x92   :  { %v74_v17 = vadd.f32 %v90_v13, %v68_v16 }
  0x93   :  { %v75_v18 = vmax.f32 %v73_v15, 0.0 }
  0x94   :  { %v76_v19 = vmax.f32 %v74_v17, 0.0 }
  0x95   :  { %77 = vst.msk [vmem:[%s148_s3] sm:$0xff] %vm18_vm0, %v75_v18 }
  0x96   :  { %78 = vst.msk [vmem:[%s148_s3 + $0x8] sm:$0xff] %vm18_vm0, %v76_v19 }

// kernel: encoder.15
= control target key start
LH: loop header
LB: loop body
LE: loop exit
PB: predicated region body
PF: predicated region fallthrough
CT: control target
= control target key end

     0   :  { %vm28_vm0 = vcmask 261120   ;;  %v226_v2 = vmov 0.0   ;;  %s324_s0 = inlined_call_operand.vmem [shape: f32[16,64], index: 0, kind: input, shape index: {}]   ;;  %s325_s1 = inlined_call_operand.vmem [shape: f32[64,32], index: 1, kind: input, shape index: {}]   ;;  %s326_s2 = inlined_call_operand.vmem [shape: f32[1,32], index: 2, kind: input, shape index: {}]   ;;  %s327_s3 = inlined_call_operand.vmem [shape: f32[16,32], index: 3, kind: input, shape index: {}]   ;;  %s328_s4 = inlined_call_operand.vmem [shape: f32[1,32], index: 4, kind: input, shape index: {}]   ;;  %s329_s5 = inlined_call_operand.vmem [shape: f32[1,32], index: 5, kind: input, shape index: {}]   ;;  %s330_s6 = inlined_call_operand.hbm [shape: f32[16,32], index: 6, kind: output, shape index: {}]  }
   0x1   :  { %v42_v0 = vld [vmem:[%s325_s1 + $0x38] sm:$0xff]  ;;  %v41_v1 = vld [vmem:[%s325_s1 + $0x30] sm:$0xff]  ;;  %29 = vst.msk [vmem:[#allocation2] sm:$0xff] %vm28_vm0, %v226_v2  ;;  %v40_v3 = vld [vmem:[%s325_s1 + $0x28] sm:$0xff] }
   0x2   :  { %58 = vmatpush.msra.mxu0 %v42_v0  ;;  %178 = vmatpush.msra.mxu1 %v42_v0  ;;  %30 = vst.msk [vmem:[#allocation2 + $0x8] sm:$0xff] %vm28_vm0, %v226_v2  ;;  %v39_v4 = vld [vmem:[%s325_s1 + $0x20] sm:$0xff] }
   0x4   :  { %59 = vmatpush.msra.mxu0 %v41_v1  ;;  %179 = vmatpush.msra.mxu1 %v41_v1 }
   0x5   :  { %11 = vsyncpa [#allocation4], 0  ;;  %v38_v5 = vld [vmem:[%s325_s1 + $0x18] sm:$0xff]  ;;  %v37_v6 = vld [vmem:[%s325_s1 + $0x10] sm:$0xff]  ;;  %vm43_vm1 = vcmask 523264   ;;  %v227_v28 = vmov 32.0  }
   0x6   :  { %60 = vmatpush.msra.mxu0 %v40_v3  ;;  %180 = vmatpush.msra.mxu1 %v40_v3  ;;  %v36_v7 = vld [vmem:[%s325_s1 + $0x8] sm:$0xff]  ;;  %v35_v8 = vld [vmem:[%s325_s1] sm:$0xff]  ;;  %194 = vrcp.f32 %v227_v28  ;;  %s164_s26 = sshll.u32 %s330_s6, 4  ;;  %s230_s27 = smov 8   ;;  %s165_s26 = int_to_ptr.hbm [resolvable:$true] %s164_s26 }
   0x7   :  { %v33_v9 = vld [vmem:[%s324_s0] sm:$0xff]  ;;  %v34_v10 = vld [vmem:[%s324_s0 + $0x8] sm:$0xff] }
   0x8   :  { %61 = vmatpush.msra.mxu0 %v39_v4  ;;  %181 = vmatpush.msra.mxu1 %v39_v4  ;;  %v31_v11 = vld [vmem:[#allocation2] sm:$0xff]  ;;  %v90_v24 = vld [vmem:[%s327_s3 + $0x8] sm:$0xff] }
   0x9   :  { %v32_v12 = vld [vmem:[#allocation2 + $0x8] sm:$0xff]  ;;  %v191_v17 = vld [vmem:[%s326_s2] ss:$0 sm:$0xff] }
   0xa   :  { %62 = vmatpush.msra.mxu0 %v38_v5  ;;  %182 = vmatpush.msra.mxu1 %v38_v5  ;;  %v89_v19 = vld [vmem:[%s327_s3] sm:$0xff] }
   0xb   :  { %v192_v59 = vld [vmem:[%s328_s4] ss:$0 sm:$0xff]  ;;  %s228_s4 = smov [#allocation3]  }
   0xc   :  { %63 = vmatpush.msra.mxu0 %v37_v6  ;;  %183 = vmatpush.msra.mxu1 %v37_v6  ;;  %v195_v29 = vpop.eup %194  ;;  %v193_v63 = vld [vmem:[%s329_s5] ss:$0 sm:$0xff]  ;;  %s162_s23 = sshll.u32 %s228_s4, 4  ;;  %s229_s5 = smov 128   ;;  %s163_s23 = int_to_ptr.vmem [resolvable:$true] %s162_s23 }
   0xd   :  { %v100_v30 = vmul.f32 32.0, %v195_v29  ;;  %vm104_vm2 = vweird.f32 %v195_v29 }
   0xe   :  { %64 = vmatpush.msra.mxu0 %v36_v7  ;;  %184 = vmatpush.msra.mxu1 %v36_v7 }
   0xf   :  { %v101_v31 = vsub.f32 1.0, %v100_v30 }
  0x10   :  { %65 = vmatpush.msra.mxu0 %v35_v8  ;;  %185 = vmatpush.msra.mxu1 %v35_v8 }
  0x11   :  { %176 = vmatmul.msk.f32.vlgmr.msra.gmra.mxu0 %vm43_vm1, %v33_v9  ;;  %177 = vmatmul.msk.f32.vlgmr.msra.gmra.mxu1 %vm43_vm1, %v34_v10  ;;  %v102_v32 = vmul.f32 %v195_v29, %v101_v31 }
  0x13   :  { %v103_v33 = vadd.f32 %v195_v29, %v102_v32 }
  0x15   :  { %v105_v34 = vsel %vm104_vm2, %v195_v29, %v103_v33 }
  0x8e   :  { %v67_v13 = vpop.f32.mrf.mxu0  ;;  %v70_v14 = vpop.f32.mrf.mxu1 }
  0x8f   :  { %v73_v15 = vadd.f32 %v67_v13, %v31_v11  ;;  %v74_v16 = vadd.f32 %v70_v14, %v32_v12 }
  0x91   :  { %76 = vst.msk [vmem:[#allocation2] sm:$0xff] %vm28_vm0, %v73_v15 }
  0x92   :  { %77 = vst.msk [vmem:[#allocation2 + $0x8] sm:$0xff] %vm28_vm0, %v74_v16 }
  0x98   :  { %v81_v18 = vld [vmem:[#allocation2] sm:$0xff] }
  0x99   :  { %v87_v20 = vadd.f32 %v191_v17, %v81_v18  ;;  %v82_v21 = vld [vmem:[#allocation2 + $0x8] sm:$0xff] }
  0x9a   :  { %v88_v23 = vadd.f32 %v191_v17, %v82_v21 }
  0x9b   :  { %v91_v22 = vadd.f32 %v89_v19, %v87_v20 }
  0x9c   :  { %v92_v26 = vadd.f32 %v90_v24, %v88_v23 }
  0x9d   :  { %v93_v25 = vsel %vm28_vm0, %v91_v22, 0.0 }
  0x9e   :  { %94 = vadd.xlane.f32.xlu0 %v93_v25  ;;  %v96_v27 = vsel %vm28_vm0, %v92_v26, 0.0 }
  0xa6   :  { %97 = vadd.xlane.f32.xlu0 %v96_v27 }
 0x111   :  { %v95_v35 = vpop.xlane.xlu0 %94 }
 0x112   :  { %v106_v36 = vmul.f32 %v105_v34, %v95_v35 }
 0x114   :  { %v108_v37 = vsub.f32 %v91_v22, %v106_v36 }
 0x116   :  { %v110_v38 = vmul.f32 %v108_v37, %v108_v37 }
 0x118   :  { %v112_v39 = vsel %vm28_vm0, %v110_v38, 0.0 }
 0x119   :  { %113 = vadd.xlane.f32.xlu1 %v112_v39  ;;  %v98_v40 = vpop.xlane.xlu0 %97 }
 0x11a   :  { %v107_v41 = vmul.f32 %v105_v34, %v98_v40 }
 0x11c   :  { %v109_v42 = vsub.f32 %v92_v26, %v107_v41 }
 0x11e   :  { %v111_v43 = vmul.f32 %v109_v42, %v109_v42 }
 0x120   :  { %v115_v44 = vsel %vm28_vm0, %v111_v43, 0.0 }
 0x121   :  { %116 = vadd.xlane.f32.xlu1 %v115_v44 }
 0x18c   :  { %v114_v45 = vpop.xlane.xlu1 %113 }
 0x18d   :  { %v118_v46 = vmul.f32 %v114_v45, %v105_v34 }
 0x18f   :  { %v120_v47 = vadd.f32 1e-05, %v118_v46 }
 0x191   :  { %196 = vrsqrt.f32 %v120_v47  ;;  %vm128_vm4 = vweird.f32 %v120_v47 }
 0x194   :  { %v117_v48 = vpop.xlane.xlu1 %116 }
 0x195   :  { %v119_v49 = vmul.f32 %v117_v48, %v105_v34 }
 0x197   :  { %v197_v50 = vpop.eup %196  ;;  %v121_v51 = vadd.f32 1e-05, %v119_v49 }
 0x198   :  { %v123_v52 = vmul.f32 %v197_v50, %v120_v47  ;;  %vm129_vm3 = vweird.f32 %v197_v50 }
 0x199   :  { %198 = vrsqrt.f32 %v121_v51  ;;  %vm130_vm5 = vmor %vm128_vm4, %vm129_vm3  ;;  %vm138_vm7 = vweird.f32 %v121_v51 }
 0x19a   :  { %v124_v53 = vmul.f32 %v197_v50, %v123_v52 }
 0x19c   :  { %v125_v54 = vmul.f32 0.5, %v124_v53 }
 0x19e   :  { %v126_v55 = vsub.f32 1.5, %v125_v54 }
 0x19f   :  { %v199_v56 = vpop.eup %198 }
 0x1a0   :  { %v127_v57 = vmul.f32 %v197_v50, %v126_v55  ;;  %v133_v58 = vmul.f32 %v199_v56, %v121_v51  ;;  %vm139_vm6 = vweird.f32 %v199_v56 }
 0x1a1   :  { %vm140_vm8 = vmor %vm138_vm7, %vm139_vm6 }
 0x1a2   :  { %v131_v60 = vsel %vm130_vm5, %v197_v50, %v127_v57  ;;  %v134_v61 = vmul.f32 %v199_v56, %v133_v58 }
 0x1a3   :  { %v142_v62 = vmul.f32 %v131_v60, %v108_v37 }
 0x1a4   :  { %v135_v0 = vmul.f32 0.5, %v134_v61 }
 0x1a5   :  { %v148_v1 = vmul.f32 %v192_v59, %v142_v62 }
 0x1a6   :  { %v136_v2 = vsub.f32 1.5, %v135_v0 }
 0x1a7   :  { %v154_v3 = vadd.f32 %v193_v63, %v148_v1 }
 0x1a8   :  { %v137_v4 = vmul.f32 %v199_v56, %v136_v2 }
 0x1a9   :  { %156 = vst.msk [vmem:[#allocation3] sm:$0xff] %vm28_vm0, %v154_v3 }
 0x1aa   :  { %v141_v5 = vsel %vm140_vm8, %v199_v56, %v137_v4 }
 0x1ab   :  { %v143_v6 = vmul.f32 %v141_v5, %v109_v42 }
 0x1ad   :  { %v149_v7 = vmul.f32 %v192_v59, %v143_v6 }
 0x1af   :  { %v155_v8 = vadd.f32 %v193_v63, %v149_v7 }
 0x1b1   :  { %157 = vst.msk [vmem:[#allocation3 + $0x8] sm:$0xff] %vm28_vm0, %v155_v8 }
 0x1b2   :  { %170 = dma.vmem_to_hbm [thread:$0]  %s163_s23, 256, %s165_s26, [#allocation4], %s229_s5, %s229_s5, %s230_s27  }
 0x1b3   :  { %224 = dma.done.wait [#allocation4], 256  }
 0x1b4   :  { %225 = vsyncadd [#allocation4], 4294967040 }
 0x1b5   :  { %175 = vsyncpa [#allocation4], 1 }

// kernel: encoder.13
= control target key start
LH: loop header
LB: loop body
LE: loop exit
PB: predicated region body
PF: predicated region fallthrough
CT: control target
= control target key end

     0   :  { %13 = vsyncpa [#allocation6], 0  ;;  %s1725_s0 = inlined_call_operand.vmem [shape: f32[2,8,96], index: 0, kind: input, shape index: {}, may-alias: {0,1,2}]   ;;  %s1726_s1 = inlined_call_operand.vmem [shape: f32[2,8,96], index: 1, kind: input, shape index: {}, may-alias: {0,1,2}]   ;;  %s1727_s2 = inlined_call_operand.vmem [shape: f32[2,8,96], index: 2, kind: input, shape index: {}, may-alias: {0,1,2}]   ;;  %s1728_s3 = inlined_call_operand.vmem [shape: f32[2,8,32], index: 3, kind: input, shape index: {}]   ;;  %s1729_s4 = inlined_call_operand.vmem [shape: f32[32,32], index: 4, kind: input, shape index: {}]   ;;  %s1730_s5 = inlined_call_operand.hbm [shape: f32[1,32], index: 5, kind: input, shape index: {}]   ;;  %s1731_s6 = inlined_call_operand.hbm [shape: f32[1,32], index: 6, kind: input, shape index: {}]   ;;  %s1732_s7 = inlined_call_operand.hbm [shape: f32[1,32], index: 7, kind: input, shape index: {}]   ;;  %s1733_s8 = inlined_call_operand.vmem [shape: f32[2,8,32], index: 8, kind: output, shape index: {}]  }
   0x1   :  { %14 = vsyncpa [#allocation8], 0  ;;  %s1515_s27 = smov 0   ;;  %s1517_s28 = smov 0  }
   0x2   :  { %s1519_s29 = smov 0  }
   0x3 LB: > { %s295_s10 = sshll.u32 %s1731_s6, 4  ;;  %s1189_s11 = sadd.s32 4294967295, %s1447_s29   ;;  %s1447_s29 = sphi %s1519_s29, %s20_s29   ;;  %s1443_s28 = sphi %s1517_s28, %s1738_s28   ;;  %s1439_s27 = sphi %s1515_s27, %s1737_s27   ;;  %s296_s10 = int_to_ptr.hbm [resolvable:$true] %s295_s10 }
   0x4   : > { %p1191_p0 = scmp.ge.s32.totalorder %s1447_s29, 1  ;;  %p268_p1 = scmp.lt.s32.totalorder %s1447_s29, 3 }
   0x5   : > { %p1536_p2 = scmp.eq.s32.totalorder %s1189_s11, 0  ;;  %s1449_s14 = smov [#allocation7]  }
   0x6   : > { %p1540_p3 = pnand %p1191_p0, %p268_p1  ;;  %s297_s15 = sshll.u32 %s1449_s14, 4  ;;  %s298_s15 = int_to_ptr.vmem [resolvable:$true] %s297_s15 }
   0x7   : > { %s39_s17 = sadd.s32 1, %s1443_s28  ;;  %s283_s20 = sshll.u32 %s1730_s5, 4  ;;  %s284_s20 = int_to_ptr.hbm [resolvable:$true] %s283_s20 }
   0x8   : > { %p1232_p4 = pneg %p1540_p3  ;;  %p41_p6 = scmp.ge.s32.totalorder %s39_s17, 2 }
   0x9   : > { %s307_s23 = sshll.u32 %s1732_s7, 4  ;;  %s1450_s24 = smov [#allocation5]   ;;  %s308_s23 = int_to_ptr.hbm [resolvable:$true] %s307_s23 }
   0xa   : > { %p1548_p5 = pnand %p1536_p2, %p1232_p4  ;;  %s1740_s17 = smov (%p41_p6, %s39_s17), 0 }
   0xb   : > { %s285_s25 = sshll.u32 %s1450_s24, 4  ;;  %s1451_s26 = smov [#allocation9]   ;;  %s286_s25 = int_to_ptr.vmem [resolvable:$true] %s285_s25 }
   0xc   : > { %1238 = dma.hbm_to_vmem [thread:$0]  (!%p1548_p5), %s296_s10, 16, %s298_s15, [#allocation8]  }
   0xd   : > { %1235 = dma.hbm_to_vmem [thread:$0]  (!%p1548_p5), %s284_s20, 16, %s286_s25, [#allocation6]  }
   0xe   : > { %s309_s30 = sshll.u32 %s1451_s26, 4  ;;  %362 = sbr.rel (%p1540_p3) target bundleno = 1609 (0x649), region = 52  ;;  %s310_s30 = int_to_ptr.vmem [resolvable:$true] %s309_s30 }
   0xf   : > { %1241 = dma.hbm_to_vmem [thread:$0]  (!%p1548_p5), %s308_s23, 16, %s310_s30, [#allocation8]  }
  0x13   : > { %1430 = dma.done.wait (%p1536_p2), [#allocation6], 16  }
  0x14   : > { %1432 = vsyncadd (%p1536_p2), [#allocation6], 4294967280 }
  0x15   : > { %1434 = dma.done.wait (%p1536_p2), [#allocation8], 32  }
  0x16   : > { %1436 = vsyncadd (%p1536_p2), [#allocation8], 4294967264  ;;  %p432_p7 = scmp.lt.s32.totalorder %s1439_s27, 1  ;;  %s1452_s14 = smov 96   ;;  %vm488_vm0 = vcmask 64512   ;;  %vm471_vm1 = vcmask 7168  }
  0x17   : > { %s1454_s18 = smov 120   ;;  %v1455_v3 = vmov -inf   ;;  %v1456_v7 = vmov 0   ;;  %v1457_v8 = vmov 0.0   ;;  %s1458_s22 = smov 64   ;;  %vm480_vm2 = vcmask 261120  }
  0x18   : > { %s1742_s27 = smov (!%p432_p7, %s1439_s27), 1  ;;  %472 = vst.msk [vmem:[#allocation2] sm:$0xff] %vm471_vm1, %v1455_v3  ;;  %1293 = vset.pattern.permute.xlu1 %v1456_v7  ;;  %1294 = vset.pattern.permute.xlu0 %v1456_v7  ;;  %s1459_s23 = smov 112   ;;  %vm668_vm7 = vcmask 130112  }
  0x19   : > { %s1579_s9 = sshll.u32 %s1742_s27, 3  ;;  %s1453_s27 = smov 88   ;;  %473 = vst.msk [vmem:[#allocation2 + $0x8] sm:$0xff] %vm471_vm1, %v1455_v3  ;;  %1295 = vset.pattern.permute.xlu2 %v1456_v7 }
  0x1a   : > { %s445_s13 = scalar_lea.vmem %s1726_s1, %s1579_s9  ;;  %s438_s12 = scalar_lea.vmem %s1725_s0, %s1579_s9  ;;  %474 = vst.msk [vmem:[#allocation2 + $0x10] sm:$0xff] %vm471_vm1, %v1455_v3 }
  0x1b   : > { %v483_v0 = vld [vmem:[%s445_s13] sm:$0xff]  ;;  %475 = vst.msk [vmem:[#allocation2 + $0x18] sm:$0xff] %vm471_vm1, %v1455_v3  ;;  %s452_s21 = scalar_lea.vmem %s1727_s2, %s1579_s9  ;;  %s1460_s24 = smov 104  }
  0x1c   : > { %486 = vrot.lane.b32.xlu0 %v483_v0, %s1452_s14  ;;  %v482_v2 = vld [vmem:[%s438_s12] sm:$0xff]  ;;  %578 = vrot.lane.b32.xlu1 %v483_v0, %s1453_s27  ;;  %476 = vst.msk [vmem:[#allocation3] sm:$0xff] %vm471_vm1, %v1457_v8  ;;  %s1461_s25 = smov 80   ;;  %s1462_s26 = smov 72  }
  0x1d   : > { %576 = vrot.lane.b32.xlu2 %v482_v2, %s1454_s18  ;;  %477 = vst.msk [vmem:[#allocation3 + $0x8] sm:$0xff] %vm471_vm1, %v1457_v8  ;;  %v1608_v10 = vld [vmem:[%s452_s21] sm:$0xff]  ;;  %s1463_s30 = smov 56   ;;  %s1464_s10 = smov 48  }
  0x1e   : > { %478 = vst.msk [vmem:[#allocation3 + $0x10] sm:$0xff] %vm471_vm1, %v1457_v8  ;;  %s1465_s11 = smov 40   ;;  %s1466_s13 = smov 8  }
  0x1f   : > { %479 = vst.msk [vmem:[#allocation3 + $0x18] sm:$0xff] %vm471_vm1, %v1457_v8  ;;  %v1613_v12 = vld [vmem:[#allocation2] sm:$0xff]  ;;  %s1467_s14 = smov 24   ;;  %s1468_s15 = smov 16  }
  0x20   : > { %v606_v28 = vld [vmem:[#allocation2 + $0x8] sm:$0xff]  ;;  %481 = vst.msk [vmem:[#allocation4] sm:$0xff] %vm480_vm2, %v1457_v8 }
  0x21   : > { %v1637_v40 = vld [vmem:[#allocation2 + $0x10] sm:$0xff] }
  0x22   : > { %v1639_v41 = vld [vmem:[#allocation2 + $0x18] sm:$0xff] }
  0x23   : > { %v531_v59 = vld [vmem:[#allocation3] sm:$0xff] }
  0x25   : > { %540 = vrot.lane.b32.xlu2 %v1608_v10, %s1458_s22 }
  0x2d   : > { %671 = vrot.lane.b32.xlu2 %v482_v2, %s1459_s23 }
  0x35   : > { %766 = vrot.lane.b32.xlu2 %v482_v2, %s1460_s24 }
  0x77   : > { %v577_v11 = vpop.permute.xlu2 %576 }
  0x7f   : > { %v541_v16 = vpop.permute.xlu2 %540 }
  0x80   : > { %561 = vmatpush.msra.mxu1 %v541_v16 }
  0x87   : > { %v672_v22 = vpop.permute.xlu2 %671 }
  0x8e   : > { %v487_v1 = vpop.permute.xlu0 %486  ;;  %v579_v9 = vpop.permute.xlu1 %578 }
  0x8f   : > { %1205 = vmatpush.xpose.msk.msra.mxu0 %vm488_vm0, %v487_v1  ;;  %1208 = vmatpush.xpose.msk.msra.mxu2 %vm488_vm0, %v579_v9  ;;  %v767_v27 = vpop.permute.xlu2 %766 }
  0x92   : > { %1206 = vmatmul.msk.f32.vlgmr.msra.gmra.mxu0 %vm488_vm0, %v482_v2  ;;  %1209 = vmatmul.msk.f32.vlgmr.msra.gmra.mxu2 %vm488_vm0, %v577_v11 }
 0x10f   : > { %v511_v4 = vpop.f32.mrf.mxu0 }
 0x110   : > { %v514_v5 = vmul.f32 0.35355338, %v511_v4 }
 0x112   : > { %v516_v6 = vsel %vm488_vm0, %v514_v5, -inf }
 0x113   : > { %517 = vmax.xlane.f32.xlu0 %v516_v6 }
 0x115   : > { %v601_v20 = vpop.f32.mrf.mxu2 }
 0x116   : > { %v604_v21 = vmul.f32 0.35355338, %v601_v20 }
 0x118   : > { %v607_v24 = vsel %vm488_vm0, %v604_v21, -inf }
 0x186   : > { %v518_v13 = vpop.xlane.xlu0 %517 }
 0x187   : > { %v1616_v14 = vmax.f32 %v1613_v12, %v518_v13 }
 0x189   : > { %v520_v15 = vsub.f32 %v1613_v12, %v1616_v14  ;;  %575 = vst.msk [vmem:[#allocation2] sm:$0xff] %vm471_vm1, %v1616_v14  ;;  %525 = vperm.xlu1 %1293, %v1616_v14  }
 0x18b   : > { %v521_v48 = vmul.f32 1.442695, %v520_v15 }
 0x191   : > { %673 = vrot.lane.b32.xlu1 %v483_v0, %s1461_s25  ;;  %s459_s25 = scalar_lea.vmem %s1728_s3, %s1579_s9 }
 0x199   : > { %768 = vrot.lane.b32.xlu1 %v483_v0, %s1462_s26 }
 0x1c3   : > { %608 = vmax.xlane.f32.xlu1 %v607_v24 }
 0x1fb   : > { %v526_v17 = vpop.permute.xlu1 %525 }
 0x1fc   : > { %v528_v18 = vsub.f32 %v514_v5, %v526_v17 }
 0x1fe   : > { %v529_v19 = vmul.f32 1.442695, %v528_v18 }
 0x200   : > { %1299 = vpow2.f32 %v529_v19 }
 0x201   : > { %1301 = vpow2.f32 %v521_v48 }
 0x203   : > { %v674_v23 = vpop.permute.xlu1 %673 }
 0x204   : > { %1211 = vmatpush.xpose.msk.msrb.mxu1 %vm488_vm0, %v674_v23 }
 0x206   : > { %v1300_v25 = vpop.eup %1299 }
 0x207   : > { %1207 = vmatmul.msk.f32.vlgmr.msra.gmra.mxu1 %vm488_vm0, %v1300_v25  ;;  %v533_v39 = vsel %vm488_vm0, %v1300_v25, 0.0  ;;  %v1302_v51 = vpop.eup %1301 }
 0x208   : > { %v532_v60 = vmul.f32 %v1302_v51, %v531_v59 }
 0x20b   : > { %v769_v26 = vpop.permute.xlu1 %768 }
 0x20c   : > { %1214 = vmatpush.xpose.msk.msrb.mxu0 %vm488_vm0, %v769_v26 }
 0x20f   : > { %1212 = vmatmul.msk.f32.vlgmr.msrb.gmra.mxu1 %vm488_vm0, %v672_v22  ;;  %1215 = vmatmul.msk.f32.vlgmr.msrb.gmra.mxu0 %vm488_vm0, %v767_v27 }
 0x236   : > { %v609_v29 = vpop.xlane.xlu1 %608 }
 0x237   : > { %v610_v30 = vmax.f32 %v606_v28, %v609_v29 }
 0x239   : > { %v611_v31 = vsub.f32 %v606_v28, %v610_v30  ;;  %670 = vst.msk [vmem:[#allocation2 + $0x8] sm:$0xff] %vm471_vm1, %v610_v30 }
 0x23b   : > { %v612_v57 = vmul.f32 1.442695, %v611_v31 }
 0x284   : > { %v1630_v32 = vpop.f32.mrf.mxu1 }
 0x28c   : > { %v696_v33 = vpop.f32.mrf.mxu1  ;;  %v791_v34 = vpop.f32.mrf.mxu0 }
 0x28d   : > { %v699_v35 = vmul.f32 0.35355338, %v696_v33  ;;  %v794_v36 = vmul.f32 0.35355338, %v791_v34  ;;  %v813_v34 = vld [vmem:[#allocation3 + $0x18] sm:$0xff] }
 0x28f   : > { %v702_v37 = vsel %vm488_vm0, %v699_v35, -inf  ;;  %v797_v38 = vsel %vm488_vm0, %v794_v36, -inf }
 0x290   : > { %703 = vmax.xlane.f32.xlu2 %v702_v37  ;;  %798 = vmax.xlane.f32.xlu0 %v797_v38 }
 0x2a4   : > { %616 = vperm.xlu0 %1294, %v610_v30  }
 0x2a8   : > { %630 = vrot.lane.b32.xlu2 %v1608_v10, %s1463_s30 }
 0x2b0   : > { %725 = vrot.lane.b32.xlu2 %v1608_v10, %s1464_s10  ;;  %s466_s10 = scalar_lea.vmem %s1733_s8, %s1579_s9 }
 0x2d9   : > { %534 = vadd.xlane.f32.xlu2 %v533_v39 }
 0x303   : > { %v704_v42 = vpop.xlane.xlu2 %703  ;;  %v799_v43 = vpop.xlane.xlu0 %798 }
 0x304   : > { %v1642_v44 = vmax.f32 %v1637_v40, %v704_v42  ;;  %v1645_v45 = vmax.f32 %v1639_v41, %v799_v43 }
 0x306   : > { %v706_v46 = vsub.f32 %v1637_v40, %v1642_v44  ;;  %765 = vst.msk [vmem:[#allocation2 + $0x10] sm:$0xff] %vm471_vm1, %v1642_v44  ;;  %v801_v47 = vsub.f32 %v1639_v41, %v1645_v45  ;;  %711 = vperm.xlu1 %1293, %v1642_v44   ;;  %806 = vperm.xlu0 %1294, %v1645_v45  }
 0x307   : > { %860 = vst.msk [vmem:[#allocation2 + $0x18] sm:$0xff] %vm471_vm1, %v1645_v45 }
 0x308   : > { %v707_v17 = vmul.f32 1.442695, %v706_v46 }
 0x30b   : > { %v631_v49 = vpop.permute.xlu2 %630 }
 0x30c   : > { %651 = vmatpush.msra.mxu3 %v631_v49 }
 0x30e   : > { %820 = vrot.lane.b32.xlu1 %v1608_v10, %s1465_s11  ;;  %v566_v10 = vld [vmem:[#allocation4] sm:$0xff] }
 0x313   : > { %v726_v50 = vpop.permute.xlu2 %725 }
 0x314   : > { %746 = vmatpush.msrb.mxu3 %v726_v50 }
 0x316   : > { %v617_v52 = vpop.permute.xlu0 %616  ;;  %569 = vperm.xlu1 %1293, %v1302_v51  }
 0x317   : > { %v619_v53 = vsub.f32 %v604_v21, %v617_v52  ;;  %v623_v21 = vld [vmem:[#allocation3 + $0x8] sm:$0xff] }
 0x319   : > { %v620_v54 = vmul.f32 1.442695, %v619_v53 }
 0x31b   : > { %1303 = vpow2.f32 %v620_v54 }
 0x31c   : > { %1305 = vpow2.f32 %v612_v57 }
 0x321   : > { %v1304_v55 = vpop.eup %1303 }
 0x322   : > { %1210 = vmatmul.msk.f32.vlgmr.msra.gmra.mxu3 %vm488_vm0, %v1304_v55  ;;  %v625_v56 = vsel %vm488_vm0, %v1304_v55, 0.0  ;;  %v1306_v58 = vpop.eup %1305 }
 0x323   : > { %v624_v25 = vmul.f32 %v1306_v58, %v623_v21 }
 0x330   : > { %626 = vadd.xlane.f32.xlu0 %v625_v56 }
 0x344   : > { %659 = vperm.xlu0 %1294, %v1306_v58  }
 0x34c   : > { %v535_v61 = vpop.xlane.xlu2 %534 }
 0x34d   : > { %v536_v62 = vadd.f32 %v535_v61, %v532_v60 }
 0x34f   : > { %538 = vst.msk [vmem:[#allocation3] sm:$0xff] %vm471_vm1, %v536_v62 }
 0x356   : > { %v864_v11 = vld [vmem:[#allocation3] sm:$0xff] }
 0x357   : > { %v876_v23 = vand.u32 2147483648, %v864_v11  ;;  %vm870_vm4 = vweird.f32 %v864_v11  ;;  %v874_v24 = vand.u32 2147483647, %v864_v11 }
 0x359   : > { %v877_v29 = vor.u32 1.1754944e-38, %v876_v23  ;;  %vm875_vm6 = vcmp.eq.f32.partialorder %v874_v24, 8.507059e+37 }
 0x378   : > { %v807_v63 = vpop.permute.xlu0 %806  ;;  %v712_v0 = vpop.permute.xlu1 %711 }
 0x379   : > { %v809_v1 = vsub.f32 %v794_v36, %v807_v63  ;;  %v714_v2 = vsub.f32 %v699_v35, %v712_v0  ;;  %v718_v35 = vld [vmem:[#allocation3 + $0x10] sm:$0xff] }
 0x37b   : > { %v810_v3 = vmul.f32 1.442695, %v809_v1  ;;  %v715_v4 = vmul.f32 1.442695, %v714_v2 }
 0x37d   : > { %1307 = vpow2.f32 %v810_v3 }
 0x37e   : > { %1309 = vpow2.f32 %v715_v4 }
 0x37f   : > { %1311 = vrcp.f32 %v864_v11 }
 0x380   : > { %v821_v5 = vpop.permute.xlu1 %820  ;;  %1313 = vpow2.f32 %v707_v17 }
 0x381   : > { %841 = vmatpush.msrb.mxu2 %v821_v5 }
 0x383   : > { %v1308_v6 = vpop.eup %1307 }
 0x384   : > { %v1310_v7 = vpop.eup %1309  ;;  %1216 = vmatmul.msk.f32.vlgmr.msrb.gmra.mxu2 %vm488_vm0, %v1308_v6  ;;  %v815_v9 = vsel %vm488_vm0, %v1308_v6, 0.0 }
 0x385   : > { %1213 = vmatmul.msk.f32.vlgmr.msrb.gmra.mxu3 %vm488_vm0, %v1310_v7  ;;  %816 = vadd.xlane.f32.xlu2 %v815_v9  ;;  %v720_v8 = vsel %vm488_vm0, %v1310_v7, 0.0  ;;  %v1312_v15 = vpop.eup %1311 }
 0x386   : > { %721 = vadd.xlane.f32.xlu1 %v720_v8  ;;  %v866_v16 = vmul.f32 %v1312_v15, %v864_v11  ;;  %v1314_v20 = vpop.eup %1313  ;;  %vm871_vm3 = vweird.f32 %v1312_v15 }
 0x387   : > { %vm872_vm5 = vmor %vm870_vm4, %vm871_vm3  ;;  %v719_v38 = vmul.f32 %v1314_v20, %v718_v35 }
 0x388   : > { %v570_v12 = vpop.permute.xlu1 %569  ;;  %v867_v18 = vsub.f32 1.0, %v866_v16 }
 0x389   : > { %v572_v13 = vmul.f32 %v570_v12, %v566_v10 }
 0x38a   : > { %v868_v19 = vmul.f32 %v1312_v15, %v867_v18 }
 0x38b   : > { %v573_v14 = vadd.f32 %v572_v13, %v1630_v32  ;;  %v802_v32 = vmul.f32 1.442695, %v801_v47 }
 0x38c   : > { %v869_v22 = vadd.f32 %v1312_v15, %v868_v19 }
 0x38d   : > { %574 = vst.msk [vmem:[#allocation4] sm:$0xff] %vm488_vm0, %v573_v14  ;;  %1315 = vpow2.f32 %v802_v32  ;;  %v963_v32 = vld [vmem:[%s1729_s4 + $0x10] sm:$0xff] }
 0x38e   : > { %v873_v27 = vsel %vm872_vm5, %v1312_v15, %v869_v22 }
 0x38f   : > { %v878_v31 = vsel %vm875_vm6, %v877_v29, %v873_v27  ;;  %vm763_vm6 = vcmask 195712  }
 0x393   : > { %v1316_v33 = vpop.eup %1315 }
 0x394   : > { %v814_v36 = vmul.f32 %v1316_v33, %v813_v34  ;;  %v656_v41 = vld [vmem:[#allocation4] sm:$0xff] }
 0x395   : > { %v961_v34 = vld [vmem:[%s1729_s4] sm:$0xff] }
 0x39f   : > { %754 = vperm.xlu1 %1293, %v1314_v20  }
 0x3a3   : > { %v627_v26 = vpop.xlane.xlu0 %626 }
 0x3a4   : > { %v628_v28 = vadd.f32 %v627_v26, %v624_v25 }
 0x3a5   : > { %v653_v30 = vpop.f32.mrf.mxu3 }
 0x3a6   : > { %629 = vst.msk [vmem:[#allocation3 + $0x8] sm:$0xff] %vm471_vm1, %v628_v28  ;;  %664 = vrot.lane.b32.xlu2 %v653_v30, %s1466_s13 }
 0x3a7   : > { %883 = vperm.xlu1 %1293, %v878_v31   ;;  %v964_v31 = vld [vmem:[%s1729_s4 + $0x18] sm:$0xff] }
 0x3a8   : > { %985 = vmatpush.msra.mxu1 %v964_v31 }
 0x3aa   : > { %986 = vmatpush.msra.mxu1 %v963_v32 }
 0x3ad   : > { %v1673_v42 = vld [vmem:[#allocation3 + $0x8] sm:$0xff] }
 0x3ae   : > { %1317 = vrcp.f32 %v1673_v42  ;;  %vm894_vm11 = vweird.f32 %v1673_v42  ;;  %v900_v10 = vand.u32 2147483648, %v1673_v42  ;;  %v898_v13 = vand.u32 2147483647, %v1673_v42 }
 0x3b0   : > { %v901_v16 = vor.u32 1.1754944e-38, %v900_v10  ;;  %vm899_vm5 = vcmp.eq.f32.partialorder %v898_v13, 8.507059e+37  ;;  %v1298_v10 = vld [vmem:[#allocation9] ss:$0 sm:$0xff] }
 0x3b4   : > { %v1318_v48 = vpop.eup %1317 }
 0x3b5   : > { %v890_v51 = vmul.f32 %v1318_v48, %v1673_v42  ;;  %vm895_vm12 = vweird.f32 %v1318_v48 }
 0x3b6   : > { %v660_v44 = vpop.permute.xlu0 %659  ;;  %vm896_vm4 = vmor %vm894_vm11, %vm895_vm12 }
 0x3b7   : > { %v662_v45 = vmul.f32 %v660_v44, %v656_v41  ;;  %v891_v55 = vsub.f32 1.0, %v890_v51  ;;  %v1469_v51 = vmov 32.0  }
 0x3b9   : > { %v892_v62 = vmul.f32 %v1318_v48, %v891_v55 }
 0x3bb   : > { %v893_v7 = vadd.f32 %v1318_v48, %v892_v62 }
 0x3bd   : > { %v897_v15 = vsel %vm896_vm4, %v1318_v48, %v893_v7 }
 0x3be   : > { %v902_v17 = vsel %vm899_vm5, %v901_v16, %v897_v15 }
 0x3f8   : > { %v817_v37 = vpop.xlane.xlu2 %816 }
 0x3f9   : > { %v818_v39 = vadd.f32 %v817_v37, %v814_v36  ;;  %v722_v40 = vpop.xlane.xlu1 %721 }
 0x3fa   : > { %v723_v43 = vadd.f32 %v722_v40, %v719_v38 }
 0x3fb   : > { %819 = vst.msk [vmem:[#allocation3 + $0x18] sm:$0xff] %vm471_vm1, %v818_v39 }
 0x3fc   : > { %724 = vst.msk [vmem:[#allocation3 + $0x10] sm:$0xff] %vm471_vm1, %v723_v43 }
 0x400   : > { %v665_v46 = vpop.permute.xlu2 %664 }
 0x401   : > { %v667_v47 = vadd.f32 %v665_v46, %v662_v45  ;;  %v1296_v45 = vld [vmem:[#allocation5] ss:$0 sm:$0xff] }
 0x402   : > { %v936_v49 = vld [vmem:[#allocation3 + $0x18] sm:$0xff] }
 0x403   : > { %669 = vst.msk [vmem:[#allocation4] sm:$0xff] %vm668_vm7, %v667_v47  ;;  %v912_v50 = vld [vmem:[#allocation3 + $0x10] sm:$0xff]  ;;  %1319 = vrcp.f32 %v936_v49  ;;  %v948_v61 = vand.u32 2147483648, %v936_v49  ;;  %v946_v1 = vand.u32 2147483647, %v936_v49  ;;  %vm942_vm10 = vweird.f32 %v936_v49  ;;  %v993_v47 = vld [vmem:[%s459_s25] sm:$0xff] }
 0x404   : > { %1321 = vrcp.f32 %v912_v50  ;;  %v924_v63 = vand.u32 2147483648, %v912_v50  ;;  %v922_v3 = vand.u32 2147483647, %v912_v50  ;;  %vm918_vm13 = vweird.f32 %v912_v50 }
 0x405   : > { %v949_v6 = vor.u32 1.1754944e-38, %v948_v61  ;;  %vm947_vm1 = vcmp.eq.f32.partialorder %v946_v1, 8.507059e+37  ;;  %1323 = vrcp.f32 %v1469_v51 }
 0x406   : > { %v925_v9 = vor.u32 1.1754944e-38, %v924_v63  ;;  %vm923_vm3 = vcmp.eq.f32.partialorder %v922_v3, 8.507059e+37 }
 0x407   : > { %v843_v52 = vpop.f32.mrf.mxu2 }
 0x408   : > { %v748_v53 = vpop.f32.mrf.mxu3  ;;  %854 = vrot.lane.b32.xlu2 %v843_v52, %s1467_s14 }
 0x409   : > { %v1320_v54 = vpop.eup %1319  ;;  %759 = vrot.lane.b32.xlu0 %v748_v53, %s1468_s15 }
 0x40a   : > { %v1322_v56 = vpop.eup %1321  ;;  %v938_v57 = vmul.f32 %v1320_v54, %v936_v49  ;;  %vm943_vm8 = vweird.f32 %v1320_v54  ;;  %v751_v19 = vld [vmem:[#allocation4] sm:$0xff] }
 0x40b   : > { %v914_v58 = vmul.f32 %v1322_v56, %v912_v50  ;;  %vm919_vm9 = vweird.f32 %v1322_v56  ;;  %vm944_vm14 = vmor %vm942_vm10, %vm943_vm8  ;;  %vm858_vm8 = vcmask 261312   ;;  %v1324_v52 = vpop.eup %1323 }
 0x40c   : > { %v939_v59 = vsub.f32 1.0, %v938_v57  ;;  %vm920_vm15 = vmor %vm918_vm13, %vm919_vm9  ;;  %v999_v53 = vmul.f32 32.0, %v1324_v52 }
 0x40d   : > { %v915_v60 = vsub.f32 1.0, %v914_v58 }
 0x40e   : > { %v940_v0 = vmul.f32 %v1320_v54, %v939_v59 }
 0x40f   : > { %v916_v2 = vmul.f32 %v1322_v56, %v915_v60 }
 0x410   : > { %v941_v4 = vadd.f32 %v1320_v54, %v940_v0 }
 0x411   : > { %849 = vperm.xlu0 %1294, %v1316_v33   ;;  %v917_v5 = vadd.f32 %v1322_v56, %v916_v2  ;;  %v755_v18 = vpop.permute.xlu1 %754  ;;  %v962_v33 = vld [vmem:[%s1729_s4 + $0x8] sm:$0xff] }
 0x412   : > { %v945_v8 = vsel %vm944_vm14, %v1320_v54, %v941_v4  ;;  %v757_v20 = vmul.f32 %v755_v18, %v751_v19  ;;  %987 = vmatpush.msra.mxu1 %v962_v33  ;;  %v1000_v54 = vsub.f32 1.0, %v999_v53 }
 0x413   : > { %v921_v11 = vsel %vm920_vm15, %v1322_v56, %v917_v5  ;;  %v950_v12 = vsel %vm947_vm1, %v949_v6, %v945_v8 }
 0x414   : > { %v926_v14 = vsel %vm923_vm3, %v925_v9, %v921_v11  ;;  %955 = vperm.xlu1 %1293, %v950_v12   ;;  %988 = vmatpush.msra.mxu1 %v961_v34  ;;  %v1001_v55 = vmul.f32 %v1324_v52, %v1000_v54  ;;  %v1297_v9 = vld [vmem:[#allocation7] ss:$0 sm:$0xff] }
 0x415   : > { %931 = vperm.xlu2 %1295, %v926_v14  }
 0x416   : > { %v1002_v56 = vadd.f32 %v1324_v52, %v1001_v55 }
 0x419   : > { %907 = vperm.xlu0 %1294, %v902_v17   ;;  %v884_v28 = vpop.permute.xlu1 %883 }
 0x462   : > { %v855_v26 = vpop.permute.xlu2 %854 }
 0x46f   : > { %v932_v38 = vpop.permute.xlu2 %931 }
 0x47b   : > { %v760_v21 = vpop.permute.xlu0 %759 }
 0x47c   : > { %v762_v22 = vadd.f32 %v760_v21, %v757_v20 }
 0x47e   : > { %764 = vst.msk [vmem:[#allocation4] sm:$0xff] %vm763_vm6, %v762_v22 }
 0x483   : > { %v850_v23 = vpop.permute.xlu0 %849 }
 0x485   : > { %v846_v24 = vld [vmem:[#allocation4] sm:$0xff] }
 0x486   : > { %v852_v25 = vmul.f32 %v850_v23, %v846_v24  ;;  %v956_v42 = vpop.permute.xlu1 %955 }
 0x488   : > { %v857_v27 = vadd.f32 %v855_v26, %v852_v25 }
 0x48a   : > { %859 = vst.msk [vmem:[#allocation4] sm:$0xff] %vm858_vm8, %v857_v27 }
 0x48b   : > { %v908_v35 = vpop.permute.xlu0 %907 }
 0x491   : > { %v880_v29 = vld [vmem:[#allocation4] sm:$0xff] }
 0x492   : > { %v886_v30 = vmul.f32 %v884_v28, %v880_v29 }
 0x494   : > { %887 = vst.msk [vmem:[#allocation4] sm:$0xff] %vm488_vm0, %v886_v30  ;;  %vm1003_vm0 = vweird.f32 %v1324_v52 }
 0x495   : > { %v1004_v57 = vsel %vm1003_vm0, %v1324_v52, %v1002_v56 }
 0x49b   : > { %v904_v36 = vld [vmem:[#allocation4] sm:$0xff] }
 0x49c   : > { %v910_v37 = vmul.f32 %v908_v35, %v904_v36 }
 0x49e   : > { %911 = vst.msk [vmem:[#allocation4] sm:$0xff] %vm668_vm7, %v910_v37 }
 0x4a5   : > { %v928_v39 = vld [vmem:[#allocation4] sm:$0xff] }
 0x4a6   : > { %v934_v40 = vmul.f32 %v932_v38, %v928_v39 }
 0x4a8   : > { %935 = vst.msk [vmem:[#allocation4] sm:$0xff] %vm763_vm6, %v934_v40 }
 0x4af   : > { %v952_v43 = vld [vmem:[#allocation4] sm:$0xff] }
 0x4b0   : > { %v958_v44 = vmul.f32 %v956_v42, %v952_v43 }
 0x4b2   : > { %959 = vst.msk [vmem:[#allocation4] sm:$0xff] %vm858_vm8, %v958_v44 }
 0x4b9   : > { %v960_v41 = vld [vmem:[#allocation4] sm:$0xff] }
 0x4ba   : > { %1217 = vmatmul.msk.f32.vlgmr.msra.gmra.mxu1 %vm480_vm2, %v960_v41 }
 0x537   : > { %v990_v46 = vpop.f32.mrf.mxu1 }
 0x538   : > { %v991_v48 = vadd.f32 %v1296_v45, %v990_v46 }
 0x53a   : > { %v994_v49 = vadd.f32 %v993_v47, %v991_v48 }
 0x53c   : > { %v995_v50 = vsel %vm480_vm2, %v994_v49, 0.0 }
 0x53d   : > { %996 = vadd.xlane.f32.xlu0 %v995_v50 }
 0x5b0   : > { %v997_v58 = vpop.xlane.xlu0 %996 }
 0x5b1   : > { %v1005_v59 = vmul.f32 %v1004_v57, %v997_v58 }
 0x5b3   : > { %v1006_v60 = vsub.f32 %v994_v49, %v1005_v59 }
 0x5b5   : > { %v1007_v61 = vmul.f32 %v1006_v60, %v1006_v60 }
 0x5b7   : > { %v1008_v62 = vsel %vm480_vm2, %v1007_v61, 0.0 }
 0x5b8   : > { %1009 = vadd.xlane.f32.xlu2 %v1008_v62 }
 0x62b   : > { %v1010_v63 = vpop.xlane.xlu2 %1009 }
 0x62c   : > { %v1011_v0 = vmul.f32 %v1010_v63, %v1004_v57 }
 0x62e   : > { %v1012_v1 = vadd.f32 1e-05, %v1011_v0 }
 0x630   : > { %1325 = vrsqrt.f32 %v1012_v1  ;;  %vm1019_vm9 = vweird.f32 %v1012_v1 }
 0x636   : > { %v1326_v2 = vpop.eup %1325 }
 0x637   : > { %v1014_v3 = vmul.f32 %v1326_v2, %v1012_v1  ;;  %vm1020_vm7 = vweird.f32 %v1326_v2 }
 0x638   : > { %vm1021_vm10 = vmor %vm1019_vm9, %vm1020_vm7 }
 0x639   : > { %v1015_v4 = vmul.f32 %v1326_v2, %v1014_v3 }
 0x63b   : > { %v1016_v5 = vmul.f32 0.5, %v1015_v4 }
 0x63d   : > { %v1017_v6 = vsub.f32 1.5, %v1016_v5 }
 0x63f   : > { %v1018_v7 = vmul.f32 %v1326_v2, %v1017_v6 }
 0x641   : > { %v1022_v8 = vsel %vm1021_vm10, %v1326_v2, %v1018_v7 }
 0x642   : > { %v1023_v11 = vmul.f32 %v1022_v8, %v1006_v60 }
 0x644   : > { %v1028_v12 = vmul.f32 %v1297_v9, %v1023_v11 }
 0x646   : > { %v1033_v13 = vadd.f32 %v1298_v10, %v1028_v12 }
 0x648   : > { %1034 = vst.msk [vmem:[%s466_s10] sm:$0xff] %vm480_vm2, %v1033_v13 }
 0x649 PF: > { %s20_s29 = sadd.s32 1, %s1447_s29   ;;  %s1737_s27 = smov %s1443_s28 }
 0x64a   : > { %p17_p8 = scmp.ge.s32.totalorder %s20_s29, 4   ;;  %s1738_s28 = smov %s1740_s17 }
 0x64c   :  { %19 = sbr.rel (!%p17_p8) target bundleno = 3 (0x3), region = 118 }
 0x651   :  { %1060 = vsyncpa [#allocation6], 1 }
 0x652   :  { %1062 = vsyncpa [#allocation6 + $0x1], 1 }
 0x653   :  { %1063 = vsyncpa [#allocation8], 1 }

</bundles_post_ra>
